<compile_context>
chip_gen: v7x
topology: tpu7x:2x2x1
jax: 0.10.0
libtpu: 0.0.40
codegen_flags: <defaults>
</compile_context>

<pallas_src>
import functools
import math

import jax
import jax.numpy as jnp
from jax import lax
from jax.experimental import pallas as pl
from jax.experimental.pallas import tpu as pltpu


# Safe on every current generation: above v5e's 16 MiB default scoped limit,
# well under v7x's 64 MiB/TC physical VMEM.  Actual per-step footprint of the
# kernels below is ~1-2 MiB at the test shapes.
_VMEM_LIMIT_BYTES = 32 * 1024 * 1024


# ----------------------------------------------------------------------------
# Kernel 1: implicit-GEMM conv (one image per grid step) + per-image BN
# partial statistics.  Grid = (N,), fully parallel.
# ----------------------------------------------------------------------------
def _conv_stats_kernel(x_ref, w_ref, z_ref, stats_ref, *,
                       ksize, dilation, hout, wout, wp, cout):
    """x_ref:(1,Lp,Cin) bf16, w_ref:(k*k,Cin,Cout) bf16,
       z_ref:(1,Hout,Wout,Cout) bf16, stats_ref:(1,2,Cout) f32."""
    mrows = hout * wp
    acc = jnp.zeros((mrows, cout), jnp.float32)

    # Output position m = ho*Wp + wo needs padded-input row m + (ky*Wp+kx)*dil,
    # so each tap is a shifted row window of the flattened resident block.
    for ky in range(ksize):
        for kx in range(ksize):
            off = (ky * wp + kx) * dilation
            lhs = x_ref[0, off:off + mrows, :]             # (mrows, Cin) bf16
            acc = acc + jnp.dot(lhs, w_ref[ky * ksize + kx],
                                preferred_element_type=jnp.float32)

    # Columns wo >= Wout are junk (they wrap into the next padded row); zero
    # them so they pollute neither the statistics nor the stored z.
    wcol = lax.broadcasted_iota(jnp.int32, (hout, wp, cout), 1)
    acc = jnp.where(wcol.reshape(mrows, cout) < wout, acc, 0.0)

    # f32 partial stats for training-mode BatchNorm (reduced over N in XLA).
    stats_ref[0, 0:1, :] = jnp.sum(acc, axis=0, keepdims=True)
    stats_ref[0, 1:2, :] = jnp.sum(acc * acc, axis=0, keepdims=True)

    # bf16 conv output; junk width columns dropped before the HBM write.
    z_ref[0] = acc.reshape(hout, wp, cout)[:, :wout, :].astype(z_ref.dtype)


# ----------------------------------------------------------------------------
# Kernel 2: elementwise BatchNorm (folded to scale/shift) + ReLU.
# ----------------------------------------------------------------------------
def _bn_relu_kernel(z_ref, scale_ref, shift_ref, y_ref):
    z = z_ref[0].astype(jnp.float32)                       # (Hout, Wout, Cout)
    y_ref[0] = jnp.maximum(z * scale_ref[...] + shift_ref[...], 0.0)


# ----------------------------------------------------------------------------
# ConvBn2d_D forward (training-mode BatchNorm, matching nn.Module defaults).
# ----------------------------------------------------------------------------
def conv_bn_relu_forward(x_nchw, params, *, kernel_size, padding, dilation,
                         eps=1e-5):
    w3d = params["w3d"].astype(jnp.bfloat16)      # (k*k, Cin, Cout)
    gamma = params["gamma"]                       # (Cout,) f32
    beta = params["beta"]                         # (Cout,) f32

    N, Cin, H, W = x_nchw.shape
    KK, _, Cout = w3d.shape
    Hp, Wp = H + 2 * padding, W + 2 * padding
    Hout = Hp - dilation * (kernel_size - 1)
    Wout = Wp - dilation * (kernel_size - 1)

    # Layout glue (single XLA pass): NCHW f32 -> padded NHWC bf16, spatial dims
    # flattened, plus a small zero tail so the last tap's window stays in
    # bounds of the VMEM block.
    x = jnp.transpose(x_nchw, (0, 2, 3, 1)).astype(jnp.bfloat16)
    xp = jnp.pad(x, ((0, 0), (padding, padding), (padding, padding), (0, 0)))
    overhang = (kernel_size - 1) * dilation
    Lp = Hp * Wp + overhang
    Lp += (-Lp) % 8
    x_flat = jnp.pad(xp.reshape(N, Hp * Wp, Cin),
                     ((0, 0), (0, Lp - Hp * Wp), (0, 0)))

    conv_kernel = functools.partial(
        _conv_stats_kernel, ksize=kernel_size, dilation=dilation,
        hout=Hout, wout=Wout, wp=Wp, cout=Cout)

    z, stats = pl.pallas_call(
        conv_kernel,
        out_shape=(
            jax.ShapeDtypeStruct((N, Hout, Wout, Cout), jnp.bfloat16),
            jax.ShapeDtypeStruct((N, 2, Cout), jnp.float32),
        ),
        grid_spec=pltpu.PrefetchScalarGridSpec(
            num_scalar_prefetch=0,
            grid=(N,),
            in_specs=[
                pl.BlockSpec((1, Lp, Cin), lambda n: (n, 0, 0)),
                pl.BlockSpec((KK, Cin, Cout), lambda n: (0, 0, 0)),
            ],
            out_specs=[
                pl.BlockSpec((1, Hout, Wout, Cout), lambda n: (n, 0, 0, 0)),
                pl.BlockSpec((1, 2, Cout), lambda n: (n, 0, 0)),
            ],
        ),
        compiler_params=pltpu.CompilerParams(
            dimension_semantics=("parallel",),
            vmem_limit_bytes=_VMEM_LIMIT_BYTES),
    )(x_flat, w3d)

    # Training-mode BN statistics over all N*Hout*Wout positions (tiny
    # reduction, done in XLA).  Conv bias omitted: it cancels exactly under
    # the mean subtraction.
    m_total = N * Hout * Wout
    ssum = jnp.sum(stats[:, 0, :], axis=0)
    ssq = jnp.sum(stats[:, 1, :], axis=0)
    mean = ssum / m_total
    var = jnp.maximum(ssq / m_total - mean * mean, 0.0)    # biased variance
    scale = gamma * lax.rsqrt(var + eps)
    shift = beta - mean * scale

    y = pl.pallas_call(
        _bn_relu_kernel,
        out_shape=jax.ShapeDtypeStruct((N, Hout, Wout, Cout), jnp.float32),
        grid_spec=pltpu.PrefetchScalarGridSpec(
            num_scalar_prefetch=0,
            grid=(N,),
            in_specs=[
                pl.BlockSpec((1, Hout, Wout, Cout), lambda n: (n, 0, 0, 0)),
                pl.BlockSpec((1, Cout), lambda n: (0, 0)),
                pl.BlockSpec((1, Cout), lambda n: (0, 0)),
            ],
            out_specs=pl.BlockSpec((1, Hout, Wout, Cout),
                                   lambda n: (n, 0, 0, 0)),
        ),
        compiler_params=pltpu.CompilerParams(
            dimension_semantics=("parallel",),
            vmem_limit_bytes=_VMEM_LIMIT_BYTES),
    )(z, scale[None, :], shift[None, :])

    # Single NCHW transpose to match the PyTorch module's output layout.
    # (A downstream consumer that accepts NHWC could take `y` directly.)
    return jnp.transpose(y, (0, 3, 1, 2))


# ----------------------------------------------------------------------------
# Parameters (deterministic, synthetic) and a pure-JAX f32 reference.
# ----------------------------------------------------------------------------
def init_convbn_params(key, cin, cout, ksize):
    k1, k2, k3, k4 = jax.random.split(key, 4)
    fan_in = cin * ksize * ksize
    w = jax.random.normal(k1, (cout, cin, ksize, ksize), jnp.float32) / math.sqrt(fan_in)
    b = 0.01 * jax.random.normal(k2, (cout,), jnp.float32)   # cancels under BN
    gamma = 1.0 + 0.1 * jax.random.normal(k3, (cout,), jnp.float32)
    beta = 0.1 * jax.random.normal(k4, (cout,), jnp.float32)
    # (Cout, Cin, kh, kw) -> (kh*kw, Cin, Cout); tap index t = ky*k + kx.
    w3d = jnp.transpose(w, (2, 3, 1, 0)).reshape(ksize * ksize, cin, cout)
    return dict(w=w, b=b, w3d=w3d, gamma=gamma, beta=beta)


def reference_forward(x, p, *, padding, dilation, eps=1e-5):
    z = lax.conv_general_dilated(
        x, p["w"], window_strides=(1, 1),
        padding=((padding, padding), (padding, padding)),
        rhs_dilation=(dilation, dilation),
        dimension_numbers=("NCHW", "OIHW", "NCHW"),
        precision=lax.Precision.HIGHEST)
    z = z + p["b"][None, :, None, None]
    mean = jnp.mean(z, axis=(0, 2, 3), keepdims=True)
    var = jnp.mean((z - mean) ** 2, axis=(0, 2, 3), keepdims=True)
    y = (z - mean) / jnp.sqrt(var + eps)
    y = y * p["gamma"][None, :, None, None] + p["beta"][None, :, None, None]
    return jnp.maximum(y, 0.0)


if __name__ == "__main__":
    key = jax.random.PRNGKey(0)
    k_x, k_p = jax.random.split(key)

    # Small shapes consistent with the module: a dilated 3x3 ConvBn2d_D block.
    N, CIN, COUT, H, W = 2, 128, 128, 20, 20
    KSIZE, PAD, DIL = 3, 2, 2          # 'same' spatial size (Hout = H + 4 - 4)

    x = jax.random.normal(k_x, (N, CIN, H, W), jnp.float32)
    params = init_convbn_params(k_p, CIN, COUT, KSIZE)

    fwd = jax.jit(functools.partial(
        conv_bn_relu_forward, kernel_size=KSIZE, padding=PAD, dilation=DIL))
    y = fwd(x, params)
    jax.block_until_ready(y)

    assert y.shape == (N, COUT, H, W), y.shape
    assert bool(jnp.all(jnp.isfinite(y)))
    assert bool(jnp.all(y >= 0.0))     # output of ReLU

    y_ref = reference_forward(x, params, padding=PAD, dilation=DIL)
    err = float(jnp.max(jnp.abs(y - y_ref)))
    assert err < 0.15, f"max abs error vs f32 reference: {err}"

    print("KERNEL_OK")
</pallas_src>

<mosaic_0001>
module attributes {stable_mosaic.version = 11 : i64} {
  func.func @_bn_relu_kernel(%arg0: i32, %arg1: memref<1x20x20x128xbf16, #tpu.memory_space<vmem>>, %arg2: memref<1x128xf32, #tpu.memory_space<vmem>>, %arg3: memref<1x128xf32, #tpu.memory_space<vmem>>, %arg4: memref<1x20x20x128xf32, #tpu.memory_space<vmem>>) attributes {dimension_semantics = [#tpu.dimension_semantics<parallel>], iteration_bounds = array<i64: 2>, scalar_prefetch = 0 : i64, scratch_operands = 0 : i64, tpu.core_type = #tpu.core_type<tc>, window_params = [{transform_indices = @transform_0, window_bounds = array<i64: 1, 20, 20, 128>}, {pipeline_mode = #tpu.pipeline_mode<synchronous>, transform_indices = @transform_1, window_bounds = array<i64: 1, 128>}, {pipeline_mode = #tpu.pipeline_mode<synchronous>, transform_indices = @transform_2, window_bounds = array<i64: 1, 128>}, {transform_indices = @transform_3, window_bounds = array<i64: 1, 20, 20, 128>}]} {
    %c0 = arith.constant 0 : index
    %c0_0 = arith.constant 0 : index
    %c0_1 = arith.constant 0 : index
    %c0_2 = arith.constant 0 : index
    %0 = vector.load %arg1[%c0, %c0_0, %c0_1, %c0_2] : memref<1x20x20x128xbf16, #tpu.memory_space<vmem>>, vector<1x20x20x128xbf16>
    %1 = vector.shape_cast %0 : vector<1x20x20x128xbf16> to vector<20x20x128xbf16>
    %2 = arith.extf %1 : vector<20x20x128xbf16> to vector<20x20x128xf32>
    %c0_3 = arith.constant 0 : index
    %c0_4 = arith.constant 0 : index
    %3 = vector.load %arg2[%c0_3, %c0_4] : memref<1x128xf32, #tpu.memory_space<vmem>>, vector<1x128xf32>
    %4 = vector.shape_cast %3 : vector<1x128xf32> to vector<1x1x128xf32>
    %5 = vector.broadcast %4 : vector<1x1x128xf32> to vector<20x20x128xf32>
    %6 = arith.mulf %2, %5 : vector<20x20x128xf32>
    %c0_5 = arith.constant 0 : index
    %c0_6 = arith.constant 0 : index
    %7 = vector.load %arg3[%c0_5, %c0_6] : memref<1x128xf32, #tpu.memory_space<vmem>>, vector<1x128xf32>
    %8 = vector.shape_cast %7 : vector<1x128xf32> to vector<1x1x128xf32>
    %9 = vector.broadcast %8 : vector<1x1x128xf32> to vector<20x20x128xf32>
    %10 = arith.addf %6, %9 : vector<20x20x128xf32>
    %cst = arith.constant 0.000000e+00 : f32
    %11 = vector.broadcast %cst : f32 to vector<20x20x128xf32>
    %12 = arith.maximumf %10, %11 : vector<20x20x128xf32>
    %c0_7 = arith.constant 0 : index
    %c0_8 = arith.constant 0 : index
    %c0_9 = arith.constant 0 : index
    %c0_10 = arith.constant 0 : index
    %13 = vector.load %arg4[%c0_7, %c0_8, %c0_9, %c0_10] : memref<1x20x20x128xf32, #tpu.memory_space<vmem>>, vector<1x20x20x128xf32>
    %14 = vector.shape_cast %13 : vector<1x20x20x128xf32> to vector<20x20x128xf32>
    %15 = vector.shape_cast %12 : vector<20x20x128xf32> to vector<1x20x20x128xf32>
    tpu.vector_store %arg4[%c0_7, %c0_8, %c0_9, %c0_10], %15 {strides = array<i32>} : memref<1x20x20x128xf32, #tpu.memory_space<vmem>>, vector<1x20x20x128xf32>,
    return
  }
  func.func @transform_0(%arg0: i32) -> (i32, i32, i32, i32) {
    %c0_i32 = arith.constant 0 : i32
    %c0_i32_0 = arith.constant 0 : i32
    %c0_i32_1 = arith.constant 0 : i32
    %c0_i32_2 = arith.constant 0 : i32
    return %arg0, %c0_i32, %c0_i32_0, %c0_i32_1 : i32, i32, i32, i32
  }
  func.func @transform_1(%arg0: i32) -> (i32, i32) {
    %c0_i32 = arith.constant 0 : i32
    %c0_i32_0 = arith.constant 0 : i32
    %c0_i32_1 = arith.constant 0 : i32
    return %c0_i32, %c0_i32_0 : i32, i32
  }
  func.func @transform_2(%arg0: i32) -> (i32, i32) {
    %c0_i32 = arith.constant 0 : i32
    %c0_i32_0 = arith.constant 0 : i32
    %c0_i32_1 = arith.constant 0 : i32
    return %c0_i32, %c0_i32_0 : i32, i32
  }
  func.func @transform_3(%arg0: i32) -> (i32, i32, i32, i32) {
    %c0_i32 = arith.constant 0 : i32
    %c0_i32_0 = arith.constant 0 : i32
    %c0_i32_1 = arith.constant 0 : i32
    %c0_i32_2 = arith.constant 0 : i32
    return %arg0, %c0_i32, %c0_i32_0, %c0_i32_1 : i32, i32, i32, i32
  }
}

module attributes {stable_mosaic.version = 11 : i64} {
  func.func @_conv_stats_kernel(%arg0: i32, %arg1: memref<1x584x128xbf16, #tpu.memory_space<vmem>>, %arg2: memref<9x128x128xbf16, #tpu.memory_space<vmem>>, %arg3: memref<1x20x20x128xbf16, #tpu.memory_space<vmem>>, %arg4: memref<1x2x128xf32, #tpu.memory_space<vmem>>) attributes {dimension_semantics = [#tpu.dimension_semantics<parallel>], iteration_bounds = array<i64: 2>, scalar_prefetch = 0 : i64, scratch_operands = 0 : i64, tpu.core_type = #tpu.core_type<tc>, window_params = [{transform_indices = @transform_0, window_bounds = array<i64: 1, 584, 128>}, {pipeline_mode = #tpu.pipeline_mode<synchronous>, transform_indices = @transform_1, window_bounds = array<i64: 9, 128, 128>}, {transform_indices = @transform_2, window_bounds = array<i64: 1, 20, 20, 128>}, {transform_indices = @transform_3, window_bounds = array<i64: 1, 2, 128>}]} {
    %cst = arith.constant 0.000000e+00 : f32
    %0 = vector.broadcast %cst : f32 to vector<480x128xf32>
    %c0 = arith.constant 0 : index
    %c0_0 = arith.constant 0 : index
    %c0_1 = arith.constant 0 : index
    %1 = vector.load %arg1[%c0, %c0_0, %c0_1] : memref<1x584x128xbf16, #tpu.memory_space<vmem>>, vector<1x480x128xbf16>
    %2 = vector.shape_cast %1 : vector<1x480x128xbf16> to vector<480x128xbf16>
    %c0_2 = arith.constant 0 : index
    %c0_3 = arith.constant 0 : index
    %c0_4 = arith.constant 0 : index
    %3 = vector.load %arg2[%c0_2, %c0_3, %c0_4] : memref<9x128x128xbf16, #tpu.memory_space<vmem>>, vector<1x128x128xbf16>
    %4 = vector.shape_cast %3 : vector<1x128x128xbf16> to vector<128x128xbf16>
    %cst_5 = arith.constant dense<0.000000e+00> : vector<480x128xf32>
    %5 = tpu.matmul %2, %4, %cst_5 {dimension_numbers = #tpu.dot_dimension_numbers<[1], [0], [0], [1], [0, 0, 1, 1], [], []>} : vector<480x128xbf16>, vector<128x128xbf16>, vector<480x128xf32> -> vector<480x128xf32>
    %6 = arith.addf %0, %5 : vector<480x128xf32>
    %c0_6 = arith.constant 0 : index
    %c2 = arith.constant 2 : index
    %c0_7 = arith.constant 0 : index
    %7 = vector.load %arg1[%c0_6, %c2, %c0_7] : memref<1x584x128xbf16, #tpu.memory_space<vmem>>, vector<1x480x128xbf16>
    %8 = vector.shape_cast %7 : vector<1x480x128xbf16> to vector<480x128xbf16>
    %c1 = arith.constant 1 : index
    %c0_8 = arith.constant 0 : index
    %c0_9 = arith.constant 0 : index
    %9 = vector.load %arg2[%c1, %c0_8, %c0_9] : memref<9x128x128xbf16, #tpu.memory_space<vmem>>, vector<1x128x128xbf16>
    %10 = vector.shape_cast %9 : vector<1x128x128xbf16> to vector<128x128xbf16>
    %cst_10 = arith.constant dense<0.000000e+00> : vector<480x128xf32>
    %11 = tpu.matmul %8, %10, %cst_10 {dimension_numbers = #tpu.dot_dimension_numbers<[1], [0], [0], [1], [0, 0, 1, 1], [], []>} : vector<480x128xbf16>, vector<128x128xbf16>, vector<480x128xf32> -> vector<480x128xf32>
    %12 = arith.addf %6, %11 : vector<480x128xf32>
    %c0_11 = arith.constant 0 : index
    %c4 = arith.constant 4 : index
    %c0_12 = arith.constant 0 : index
    %13 = vector.load %arg1[%c0_11, %c4, %c0_12] : memref<1x584x128xbf16, #tpu.memory_space<vmem>>, vector<1x480x128xbf16>
    %14 = vector.shape_cast %13 : vector<1x480x128xbf16> to vector<480x128xbf16>
    %c2_13 = arith.constant 2 : index
    %c0_14 = arith.constant 0 : index
    %c0_15 = arith.constant 0 : index
    %15 = vector.load %arg2[%c2_13, %c0_14, %c0_15] : memref<9x128x128xbf16, #tpu.memory_space<vmem>>, vector<1x128x128xbf16>
    %16 = vector.shape_cast %15 : vector<1x128x128xbf16> to vector<128x128xbf16>
    %cst_16 = arith.constant dense<0.000000e+00> : vector<480x128xf32>
    %17 = tpu.matmul %14, %16, %cst_16 {dimension_numbers = #tpu.dot_dimension_numbers<[1], [0], [0], [1], [0, 0, 1, 1], [], []>} : vector<480x128xbf16>, vector<128x128xbf16>, vector<480x128xf32> -> vector<480x128xf32>
    %18 = arith.addf %12, %17 : vector<480x128xf32>
    %c0_17 = arith.constant 0 : index
    %c48 = arith.constant 48 : index
    %c0_18 = arith.constant 0 : index
    %19 = vector.load %arg1[%c0_17, %c48, %c0_18] : memref<1x584x128xbf16, #tpu.memory_space<vmem>>, vector<1x480x128xbf16>
    %20 = vector.shape_cast %19 : vector<1x480x128xbf16> to vector<480x128xbf16>
    %c3 = arith.constant 3 : index
    %c0_19 = arith.constant 0 : index
    %c0_20 = arith.constant 0 : index
    %21 = vector.load %arg2[%c3, %c0_19, %c0_20] : memref<9x128x128xbf16, #tpu.memory_space<vmem>>, vector<1x128x128xbf16>
    %22 = vector.shape_cast %21 : vector<1x128x128xbf16> to vector<128x128xbf16>
    %cst_21 = arith.constant dense<0.000000e+00> : vector<480x128xf32>
    %23 = tpu.matmul %20, %22, %cst_21 {dimension_numbers = #tpu.dot_dimension_numbers<[1], [0], [0], [1], [0, 0, 1, 1], [], []>} : vector<480x128xbf16>, vector<128x128xbf16>, vector<480x128xf32> -> vector<480x128xf32>
    %24 = arith.addf %18, %23 : vector<480x128xf32>
    %c0_22 = arith.constant 0 : index
    %c50 = arith.constant 50 : index
    %c0_23 = arith.constant 0 : index
    %25 = vector.load %arg1[%c0_22, %c50, %c0_23] : memref<1x584x128xbf16, #tpu.memory_space<vmem>>, vector<1x480x128xbf16>
    %26 = vector.shape_cast %25 : vector<1x480x128xbf16> to vector<480x128xbf16>
    %c4_24 = arith.constant 4 : index
    %c0_25 = arith.constant 0 : index
    %c0_26 = arith.constant 0 : index
    %27 = vector.load %arg2[%c4_24, %c0_25, %c0_26] : memref<9x128x128xbf16, #tpu.memory_space<vmem>>, vector<1x128x128xbf16>
    %28 = vector.shape_cast %27 : vector<1x128x128xbf16> to vector<128x128xbf16>
    %cst_27 = arith.constant dense<0.000000e+00> : vector<480x128xf32>
    %29 = tpu.matmul %26, %28, %cst_27 {dimension_numbers = #tpu.dot_dimension_numbers<[1], [0], [0], [1], [0, 0, 1, 1], [], []>} : vector<480x128xbf16>, vector<128x128xbf16>, vector<480x128xf32> -> vector<480x128xf32>
    %30 = arith.addf %24, %29 : vector<480x128xf32>
    %c0_28 = arith.constant 0 : index
    %c52 = arith.constant 52 : index
    %c0_29 = arith.constant 0 : index
    %31 = vector.load %arg1[%c0_28, %c52, %c0_29] : memref<1x584x128xbf16, #tpu.memory_space<vmem>>, vector<1x480x128xbf16>
    %32 = vector.shape_cast %31 : vector<1x480x128xbf16> to vector<480x128xbf16>
    %c5 = arith.constant 5 : index
    %c0_30 = arith.constant 0 : index
    %c0_31 = arith.constant 0 : index
    %33 = vector.load %arg2[%c5, %c0_30, %c0_31] : memref<9x128x128xbf16, #tpu.memory_space<vmem>>, vector<1x128x128xbf16>
    %34 = vector.shape_cast %33 : vector<1x128x128xbf16> to vector<128x128xbf16>
    %cst_32 = arith.constant dense<0.000000e+00> : vector<480x128xf32>
    %35 = tpu.matmul %32, %34, %cst_32 {dimension_numbers = #tpu.dot_dimension_numbers<[1], [0], [0], [1], [0, 0, 1, 1], [], []>} : vector<480x128xbf16>, vector<128x128xbf16>, vector<480x128xf32> -> vector<480x128xf32>
    %36 = arith.addf %30, %35 : vector<480x128xf32>
    %c0_33 = arith.constant 0 : index
    %c96 = arith.constant 96 : index
    %c0_34 = arith.constant 0 : index
    %37 = vector.load %arg1[%c0_33, %c96, %c0_34] : memref<1x584x128xbf16, #tpu.memory_space<vmem>>, vector<1x480x128xbf16>
    %38 = vector.shape_cast %37 : vector<1x480x128xbf16> to vector<480x128xbf16>
    %c6 = arith.constant 6 : index
    %c0_35 = arith.constant 0 : index
    %c0_36 = arith.constant 0 : index
    %39 = vector.load %arg2[%c6, %c0_35, %c0_36] : memref<9x128x128xbf16, #tpu.memory_space<vmem>>, vector<1x128x128xbf16>
    %40 = vector.shape_cast %39 : vector<1x128x128xbf16> to vector<128x128xbf16>
    %cst_37 = arith.constant dense<0.000000e+00> : vector<480x128xf32>
    %41 = tpu.matmul %38, %40, %cst_37 {dimension_numbers = #tpu.dot_dimension_numbers<[1], [0], [0], [1], [0, 0, 1, 1], [], []>} : vector<480x128xbf16>, vector<128x128xbf16>, vector<480x128xf32> -> vector<480x128xf32>
    %42 = arith.addf %36, %41 : vector<480x128xf32>
    %c0_38 = arith.constant 0 : index
    %c98 = arith.constant 98 : index
    %c0_39 = arith.constant 0 : index
    %43 = vector.load %arg1[%c0_38, %c98, %c0_39] : memref<1x584x128xbf16, #tpu.memory_space<vmem>>, vector<1x480x128xbf16>
    %44 = vector.shape_cast %43 : vector<1x480x128xbf16> to vector<480x128xbf16>
    %c7 = arith.constant 7 : index
    %c0_40 = arith.constant 0 : index
    %c0_41 = arith.constant 0 : index
    %45 = vector.load %arg2[%c7, %c0_40, %c0_41] : memref<9x128x128xbf16, #tpu.memory_space<vmem>>, vector<1x128x128xbf16>
    %46 = vector.shape_cast %45 : vector<1x128x128xbf16> to vector<128x128xbf16>
    %cst_42 = arith.constant dense<0.000000e+00> : vector<480x128xf32>
    %47 = tpu.matmul %44, %46, %cst_42 {dimension_numbers = #tpu.dot_dimension_numbers<[1], [0], [0], [1], [0, 0, 1, 1], [], []>} : vector<480x128xbf16>, vector<128x128xbf16>, vector<480x128xf32> -> vector<480x128xf32>
    %48 = arith.addf %42, %47 : vector<480x128xf32>
    %c0_43 = arith.constant 0 : index
    %c100 = arith.constant 100 : index
    %c0_44 = arith.constant 0 : index
    %49 = vector.load %arg1[%c0_43, %c100, %c0_44] : memref<1x584x128xbf16, #tpu.memory_space<vmem>>, vector<1x480x128xbf16>
    %50 = vector.shape_cast %49 : vector<1x480x128xbf16> to vector<480x128xbf16>
    %c8 = arith.constant 8 : index
    %c0_45 = arith.constant 0 : index
    %c0_46 = arith.constant 0 : index
    %51 = vector.load %arg2[%c8, %c0_45, %c0_46] : memref<9x128x128xbf16, #tpu.memory_space<vmem>>, vector<1x128x128xbf16>
    %52 = vector.shape_cast %51 : vector<1x128x128xbf16> to vector<128x128xbf16>
    %cst_47 = arith.constant dense<0.000000e+00> : vector<480x128xf32>
    %53 = tpu.matmul %50, %52, %cst_47 {dimension_numbers = #tpu.dot_dimension_numbers<[1], [0], [0], [1], [0, 0, 1, 1], [], []>} : vector<480x128xbf16>, vector<128x128xbf16>, vector<480x128xf32> -> vector<480x128xf32>
    %54 = arith.addf %48, %53 : vector<480x128xf32>
    %55 = tpu.iota {dimensions = array<i32: 1>} : vector<20x24x128xi32>
    %56 = vector.shape_cast %55 : vector<20x24x128xi32> to vector<480x128xi32>
    %c20_i32 = arith.constant 20 : i32
    %57 = vector.broadcast %c20_i32 : i32 to vector<480x128xi32>
    %58 = arith.cmpi slt, %56, %57 : vector<480x128xi32>
    %cst_48 = arith.constant 0.000000e+00 : f32
    %59 = vector.broadcast %cst_48 : f32 to vector<480x128xf32>
    %60 = arith.select %58, %54, %59 : vector<480x128xi1>, vector<480x128xf32>
    %cst_49 = arith.constant dense<0.000000e+00> : vector<128xf32>
    %61 = vector.multi_reduction <add>, %60, %cst_49 [0] : vector<480x128xf32> to vector<128xf32>
    %62 = vector.shape_cast %61 : vector<128xf32> to vector<1x128xf32>
    %c0_50 = arith.constant 0 : index
    %c0_51 = arith.constant 0 : index
    %c0_52 = arith.constant 0 : index
    %63 = vector.load %arg4[%c0_50, %c0_51, %c0_52] : memref<1x2x128xf32, #tpu.memory_space<vmem>>, vector<1x1x128xf32>
    %64 = vector.shape_cast %63 : vector<1x1x128xf32> to vector<1x128xf32>
    %65 = vector.shape_cast %62 : vector<1x128xf32> to vector<1x1x128xf32>
    tpu.vector_store %arg4[%c0_50, %c0_51, %c0_52], %65 {strides = array<i32>} : memref<1x2x128xf32, #tpu.memory_space<vmem>>, vector<1x1x128xf32>,
    %66 = arith.mulf %60, %60 : vector<480x128xf32>
    %cst_53 = arith.constant dense<0.000000e+00> : vector<128xf32>
    %67 = vector.multi_reduction <add>, %66, %cst_53 [0] : vector<480x128xf32> to vector<128xf32>
    %68 = vector.shape_cast %67 : vector<128xf32> to vector<1x128xf32>
    %c0_54 = arith.constant 0 : index
    %c1_55 = arith.constant 1 : index
    %c0_56 = arith.constant 0 : index
    %69 = vector.load %arg4[%c0_54, %c1_55, %c0_56] : memref<1x2x128xf32, #tpu.memory_space<vmem>>, vector<1x1x128xf32>
    %70 = vector.shape_cast %69 : vector<1x1x128xf32> to vector<1x128xf32>
    %71 = vector.shape_cast %68 : vector<1x128xf32> to vector<1x1x128xf32>
    tpu.vector_store %arg4[%c0_54, %c1_55, %c0_56], %71 {strides = array<i32>} : memref<1x2x128xf32, #tpu.memory_space<vmem>>, vector<1x1x128xf32>,
    %72 = vector.shape_cast %60 : vector<480x128xf32> to vector<20x24x128xf32>
    %73 = vector.extract_strided_slice %72 {offsets = [0, 0, 0], sizes = [20, 20, 128], strides = [1, 1, 1]} : vector<20x24x128xf32> to vector<20x20x128xf32>
    %74 = arith.truncf %73 : vector<20x20x128xf32> to vector<20x20x128xbf16>
    %c0_57 = arith.constant 0 : index
    %c0_58 = arith.constant 0 : index
    %c0_59 = arith.constant 0 : index
    %c0_60 = arith.constant 0 : index
    %75 = vector.load %arg3[%c0_57, %c0_58, %c0_59, %c0_60] : memref<1x20x20x128xbf16, #tpu.memory_space<vmem>>, vector<1x20x20x128xbf16>
    %76 = vector.shape_cast %75 : vector<1x20x20x128xbf16> to vector<20x20x128xbf16>
    %77 = vector.shape_cast %74 : vector<20x20x128xbf16> to vector<1x20x20x128xbf16>
    tpu.vector_store %arg3[%c0_57, %c0_58, %c0_59, %c0_60], %77 {strides = array<i32>} : memref<1x20x20x128xbf16, #tpu.memory_space<vmem>>, vector<1x20x20x128xbf16>,
    return
  }
  func.func @transform_0(%arg0: i32) -> (i32, i32, i32) {
    %c0_i32 = arith.constant 0 : i32
    %c0_i32_0 = arith.constant 0 : i32
    %c0_i32_1 = arith.constant 0 : i32
    return %arg0, %c0_i32, %c0_i32_0 : i32, i32, i32
  }
  func.func @transform_1(%arg0: i32) -> (i32, i32, i32) {
    %c0_i32 = arith.constant 0 : i32
    %c0_i32_0 = arith.constant 0 : i32
    %c0_i32_1 = arith.constant 0 : i32
    %c0_i32_2 = arith.constant 0 : i32
    return %c0_i32, %c0_i32_0, %c0_i32_1 : i32, i32, i32
  }
  func.func @transform_2(%arg0: i32) -> (i32, i32, i32, i32) {
    %c0_i32 = arith.constant 0 : i32
    %c0_i32_0 = arith.constant 0 : i32
    %c0_i32_1 = arith.constant 0 : i32
    %c0_i32_2 = arith.constant 0 : i32
    return %arg0, %c0_i32, %c0_i32_0, %c0_i32_1 : i32, i32, i32, i32
  }
  func.func @transform_3(%arg0: i32) -> (i32, i32, i32) {
    %c0_i32 = arith.constant 0 : i32
    %c0_i32_0 = arith.constant 0 : i32
    %c0_i32_1 = arith.constant 0 : i32
    return %arg0, %c0_i32, %c0_i32_0 : i32, i32, i32
  }
}

</mosaic_0001>

<bundles_post_ra>
// kernel: conv_bn_relu_forward.3
= control target key start
LH: loop header
LB: loop body
LE: loop exit
PB: predicated region body
PF: predicated region fallthrough
CT: control target
= control target key end

     0   :  { %s698_s12 = smov 0   ;;  %s961_s0 = inlined_call_operand.vmem [shape: bf16[2,20,20,128], index: 0, kind: input, shape index: {}]   ;;  %s962_s1 = inlined_call_operand.vmem [shape: f32[1,128], index: 1, kind: input, shape index: {}]   ;;  %s963_s2 = inlined_call_operand.vmem [shape: f32[1,128], index: 2, kind: input, shape index: {}]   ;;  %s964_s3 = inlined_call_operand.vmem [shape: f32[2,20,20,128], index: 3, kind: output, shape index: {}]  }
   0x1 LB: > { %s600_s13 = sadd.s32 4294967295, %s676_s12   ;;  %p604_p0 = scmp.ge.s32.totalorder %s676_s12, 1  ;;  %s676_s12 = sphi %s698_s12, %s13_s12  }
   0x2   : > { %p137_p1 = scmp.lt.s32.totalorder %s676_s12, 3 }
   0x4   : > { %p138_p2 = pnand %p604_p0, %p137_p1 }
   0x5   : > { %p161_p3 = scmp.lt.s32.totalorder (!%p138_p2), %s600_s13, 1  ;;  %v717_v0 = vld [vmem:[%s962_s1] ss:$0 sm:$0xff] (!%p138_p2) }
   0x6   : > { %141 = sbr.rel (%p138_p2) target bundleno = 83 (0x53), region = 32  ;;  %v728_v10 = vld [vmem:[%s963_s2] ss:$0 sm:$0xff] (!%p138_p2) }
   0xd   : > { %s966_s13 = smov (!%p161_p3, %s600_s13), 1 }
   0xe   : > { %s660_s14 = smul.u32 240, %s966_s13 }
   0xf   : > { %s661_s20 = smul.u32 480, %s966_s13 }
  0x10   : > { %s712_s17 = scalar_lea.vmem %s961_s0, %s660_s14 }
  0x11   : > { %v612_v1 = vld [vmem:[%s712_s17] sm:$0xff]   ;;  %v173_v2 = vld [vmem:[%s712_s17 + $0x8] sm:$0x3]  ;;  %v174_v3 = vld [vmem:[%s712_s17 + $0xc] sm:$0xff]   ;;  %s746_s25 = scalar_lea.vmem %s964_s3, %s661_s20 }
  0x12   : > { %v613_v4 = vunpack.c.l.bf16 %v612_v1  ;;  %v614_v5 = vunpack.c.h.bf16 %v612_v1  ;;  %v233_v6 = vunpack.c.l.bf16 %v173_v2  ;;  %v234_v7 = vunpack.c.l.bf16 %v174_v3  ;;  %v176_v8 = vld [vmem:[%s712_s17 + $0x14] sm:$0x3]  ;;  %v651_v9 = vld [vmem:[%s712_s17 + $0x18] sm:$0xff]   ;;  %v179_v27 = vld [vmem:[%s712_s17 + $0x20] sm:$0x3] }
  0x13   : > { %v235_v11 = vunpack.c.h.bf16 %v174_v3  ;;  %v236_v12 = vunpack.c.l.bf16 %v176_v8  ;;  %v617_v13 = vunpack.c.l.bf16 %v651_v9  ;;  %v618_v14 = vunpack.c.h.bf16 %v651_v9  ;;  %v180_v32 = vld [vmem:[%s712_s17 + $0x24] sm:$0xff]   ;;  %v182_v33 = vld [vmem:[%s712_s17 + $0x2c] sm:$0x3]  ;;  %v185_v34 = vld [vmem:[%s712_s17 + $0x38] sm:$0x3] }
  0x14   : > { %v298_v15 = vmul.f32 %v613_v4, %v717_v0  ;;  %v299_v16 = vmul.f32 %v614_v5, %v717_v0  ;;  %v300_v17 = vmul.f32 %v717_v0, %v233_v6  ;;  %v301_v18 = vmul.f32 %v717_v0, %v234_v7  ;;  %v652_v39 = vld [vmem:[%s712_s17 + $0x30] sm:$0xff]   ;;  %v757_v40 = vld [vmem:[%s712_s17 + $0x3c] sm:$0xff]   ;;  %v188_v2 = vld [vmem:[%s712_s17 + $0x44] sm:$0x3] }
  0x15   : > { %v302_v19 = vmul.f32 %v717_v0, %v235_v11  ;;  %v303_v20 = vmul.f32 %v717_v0, %v236_v12  ;;  %v304_v21 = vmul.f32 %v617_v13, %v717_v0  ;;  %v305_v22 = vmul.f32 %v618_v14, %v717_v0  ;;  %v653_v7 = vld [vmem:[%s712_s17 + $0x48] sm:$0xff]   ;;  %v191_v8 = vld [vmem:[%s712_s17 + $0x50] sm:$0x3]  ;;  %v192_v9 = vld [vmem:[%s712_s17 + $0x54] sm:$0xff]  }
  0x16   : > { %v365_v23 = vadd.f32 %v728_v10, %v298_v15  ;;  %v366_v24 = vadd.f32 %v728_v10, %v299_v16  ;;  %v367_v25 = vadd.f32 %v728_v10, %v300_v17  ;;  %v368_v26 = vadd.f32 %v728_v10, %v301_v18  ;;  %v194_v15 = vld [vmem:[%s712_s17 + $0x5c] sm:$0x3] }
  0x17   : > { %v369_v28 = vadd.f32 %v728_v10, %v302_v19  ;;  %v370_v29 = vadd.f32 %v728_v10, %v303_v20  ;;  %v371_v30 = vadd.f32 %v728_v10, %v304_v21  ;;  %v372_v31 = vadd.f32 %v728_v10, %v305_v22 }
  0x18   : > { %v425_v35 = vmax.f32 %v365_v23, 0.0  ;;  %v426_v36 = vmax.f32 %v366_v24, 0.0  ;;  %v427_v37 = vmax.f32 %v367_v25, 0.0  ;;  %v428_v38 = vmax.f32 %v368_v26, 0.0 }
  0x19   : > { %v429_v41 = vmax.f32 %v369_v28, 0.0  ;;  %v430_v42 = vmax.f32 %v370_v29, 0.0  ;;  %v431_v43 = vmax.f32 %v371_v30, 0.0  ;;  %v432_v44 = vmax.f32 %v372_v31, 0.0 }
  0x1a   : > { %485 = vst [vmem:[%s746_s25] sm:$0xff] %v425_v35  ;;  %486 = vst [vmem:[%s746_s25 + $0x8] sm:$0xff] %v426_v36  ;;  %v239_v45 = vunpack.c.l.bf16 %v179_v27  ;;  %v240_v46 = vunpack.c.l.bf16 %v180_v32  ;;  %v241_v47 = vunpack.c.h.bf16 %v180_v32  ;;  %v242_v48 = vunpack.c.l.bf16 %v182_v33 }
  0x1b   : > { %487 = vst [vmem:[%s746_s25 + $0x10] sm:$0xf] %v427_v37  ;;  %488 = vst [vmem:[%s746_s25 + $0x18] sm:$0xff] %v428_v38  ;;  %v621_v49 = vunpack.c.l.bf16 %v652_v39  ;;  %v622_v50 = vunpack.c.h.bf16 %v652_v39  ;;  %v245_v51 = vunpack.c.l.bf16 %v185_v34  ;;  %v246_v52 = vunpack.c.l.bf16 %v757_v40 }
  0x1c   : > { %489 = vst [vmem:[%s746_s25 + $0x20] sm:$0xff] %v429_v41  ;;  %490 = vst [vmem:[%s746_s25 + $0x28] sm:$0xf] %v430_v42  ;;  %v306_v53 = vmul.f32 %v717_v0, %v239_v45  ;;  %v307_v54 = vmul.f32 %v717_v0, %v240_v46  ;;  %v308_v55 = vmul.f32 %v717_v0, %v241_v47  ;;  %v247_v20 = vunpack.c.h.bf16 %v757_v40  ;;  %v654_v40 = vld [vmem:[%s712_s17 + $0x60] sm:$0xff]   ;;  %v197_v45 = vld [vmem:[%s712_s17 + $0x68] sm:$0x3] }
  0x1d   : > { %491 = vst [vmem:[%s746_s25 + $0x30] sm:$0xff] %v431_v43  ;;  %492 = vst [vmem:[%s746_s25 + $0x38] sm:$0xff] %v432_v44  ;;  %v309_v56 = vmul.f32 %v717_v0, %v242_v48  ;;  %v310_v57 = vmul.f32 %v621_v49, %v717_v0  ;;  %v311_v58 = vmul.f32 %v622_v50, %v717_v0  ;;  %v248_v21 = vunpack.c.l.bf16 %v188_v2  ;;  %v198_v46 = vld [vmem:[%s712_s17 + $0x6c] sm:$0xff]   ;;  %v200_v47 = vld [vmem:[%s712_s17 + $0x74] sm:$0x3] }
  0x1e   : > { %v312_v59 = vmul.f32 %v717_v0, %v245_v51  ;;  %v313_v60 = vmul.f32 %v717_v0, %v246_v52  ;;  %v373_v61 = vadd.f32 %v728_v10, %v306_v53  ;;  %v374_v62 = vadd.f32 %v728_v10, %v307_v54  ;;  %v655_v52 = vld [vmem:[%s712_s17 + $0x78] sm:$0xff]  }
  0x1f   : > { %v375_v63 = vadd.f32 %v728_v10, %v308_v55  ;;  %v376_v1 = vadd.f32 %v728_v10, %v309_v56  ;;  %v377_v3 = vadd.f32 %v728_v10, %v310_v57  ;;  %v378_v4 = vadd.f32 %v728_v10, %v311_v58 }
  0x20   : > { %v379_v5 = vadd.f32 %v728_v10, %v312_v59  ;;  %v380_v6 = vadd.f32 %v728_v10, %v313_v60  ;;  %v433_v11 = vmax.f32 %v373_v61, 0.0  ;;  %v434_v12 = vmax.f32 %v374_v62, 0.0 }
  0x21   : > { %v435_v13 = vmax.f32 %v375_v63, 0.0  ;;  %v436_v14 = vmax.f32 %v376_v1, 0.0  ;;  %v437_v16 = vmax.f32 %v377_v3, 0.0  ;;  %v438_v17 = vmax.f32 %v378_v4, 0.0 }
  0x22   : > { %v439_v18 = vmax.f32 %v379_v5, 0.0  ;;  %v440_v19 = vmax.f32 %v380_v6, 0.0  ;;  %493 = vst [vmem:[%s746_s25 + $0x40] sm:$0xf] %v433_v11  ;;  %494 = vst [vmem:[%s746_s25 + $0x48] sm:$0xff] %v434_v12  ;;  %v625_v22 = vunpack.c.l.bf16 %v653_v7  ;;  %v626_v23 = vunpack.c.h.bf16 %v653_v7 }
  0x23   : > { %495 = vst [vmem:[%s746_s25 + $0x50] sm:$0xff] %v435_v13  ;;  %496 = vst [vmem:[%s746_s25 + $0x58] sm:$0xf] %v436_v14  ;;  %v251_v24 = vunpack.c.l.bf16 %v191_v8  ;;  %v252_v25 = vunpack.c.l.bf16 %v192_v9  ;;  %v253_v26 = vunpack.c.h.bf16 %v192_v9  ;;  %v254_v27 = vunpack.c.l.bf16 %v194_v15  ;;  %v203_v15 = vld [vmem:[%s712_s17 + $0x80] sm:$0x3] }
  0x24   : > { %497 = vst [vmem:[%s746_s25 + $0x60] sm:$0xff] %v437_v16  ;;  %498 = vst [vmem:[%s746_s25 + $0x68] sm:$0xff] %v438_v17  ;;  %v314_v28 = vmul.f32 %v717_v0, %v247_v20  ;;  %v315_v29 = vmul.f32 %v717_v0, %v248_v21  ;;  %v316_v30 = vmul.f32 %v625_v22, %v717_v0  ;;  %v629_v57 = vunpack.c.l.bf16 %v654_v40  ;;  %v204_v20 = vld [vmem:[%s712_s17 + $0x84] sm:$0xff]   ;;  %v206_v21 = vld [vmem:[%s712_s17 + $0x8c] sm:$0x3] }
  0x25   : > { %499 = vst [vmem:[%s746_s25 + $0x70] sm:$0xf] %v439_v18  ;;  %500 = vst [vmem:[%s746_s25 + $0x78] sm:$0xff] %v440_v19  ;;  %v317_v31 = vmul.f32 %v626_v23, %v717_v0  ;;  %v318_v32 = vmul.f32 %v717_v0, %v251_v24  ;;  %v319_v33 = vmul.f32 %v717_v0, %v252_v25  ;;  %v630_v58 = vunpack.c.h.bf16 %v654_v40  ;;  %v209_v22 = vld [vmem:[%s712_s17 + $0x98] sm:$0x3] }
  0x26   : > { %v320_v34 = vmul.f32 %v717_v0, %v253_v26  ;;  %v321_v35 = vmul.f32 %v717_v0, %v254_v27  ;;  %v381_v36 = vadd.f32 %v728_v10, %v314_v28  ;;  %v382_v37 = vadd.f32 %v728_v10, %v315_v29  ;;  %v656_v27 = vld [vmem:[%s712_s17 + $0x90] sm:$0xff]   ;;  %v849_v28 = vld [vmem:[%s712_s17 + $0x9c] sm:$0xff]  }
  0x27   : > { %v383_v38 = vadd.f32 %v728_v10, %v316_v30  ;;  %v384_v39 = vadd.f32 %v728_v10, %v317_v31  ;;  %v385_v41 = vadd.f32 %v728_v10, %v318_v32  ;;  %v386_v42 = vadd.f32 %v728_v10, %v319_v33 }
  0x28   : > { %v387_v43 = vadd.f32 %v728_v10, %v320_v34  ;;  %v388_v44 = vadd.f32 %v728_v10, %v321_v35  ;;  %v441_v48 = vmax.f32 %v381_v36, 0.0  ;;  %v442_v49 = vmax.f32 %v382_v37, 0.0 }
  0x29   : > { %v443_v50 = vmax.f32 %v383_v38, 0.0  ;;  %v444_v51 = vmax.f32 %v384_v39, 0.0  ;;  %v445_v53 = vmax.f32 %v385_v41, 0.0  ;;  %v446_v54 = vmax.f32 %v386_v42, 0.0 }
  0x2a   : > { %v447_v55 = vmax.f32 %v387_v43, 0.0  ;;  %v448_v56 = vmax.f32 %v388_v44, 0.0  ;;  %501 = vst [vmem:[%s746_s25 + $0x80] sm:$0xff] %v441_v48  ;;  %502 = vst [vmem:[%s746_s25 + $0x88] sm:$0xf] %v442_v49  ;;  %v257_v59 = vunpack.c.l.bf16 %v197_v45  ;;  %v258_v60 = vunpack.c.l.bf16 %v198_v46 }
  0x2b   : > { %503 = vst [vmem:[%s746_s25 + $0x90] sm:$0xff] %v443_v50  ;;  %504 = vst [vmem:[%s746_s25 + $0x98] sm:$0xff] %v444_v51  ;;  %v259_v61 = vunpack.c.h.bf16 %v198_v46  ;;  %v260_v62 = vunpack.c.l.bf16 %v200_v47  ;;  %v633_v63 = vunpack.c.l.bf16 %v655_v52  ;;  %v634_v1 = vunpack.c.h.bf16 %v655_v52 }
  0x2c   : > { %505 = vst [vmem:[%s746_s25 + $0xa0] sm:$0xf] %v445_v53  ;;  %506 = vst [vmem:[%s746_s25 + $0xa8] sm:$0xff] %v446_v54  ;;  %v322_v2 = vmul.f32 %v629_v57, %v717_v0  ;;  %v323_v3 = vmul.f32 %v630_v58, %v717_v0  ;;  %v324_v4 = vmul.f32 %v717_v0, %v257_v59  ;;  %v263_v33 = vunpack.c.l.bf16 %v203_v15  ;;  %v212_v53 = vld [vmem:[%s712_s17 + $0xa4] sm:$0x3]  ;;  %v657_v58 = vld [vmem:[%s712_s17 + $0xa8] sm:$0xff]  }
  0x2d   : > { %507 = vst [vmem:[%s746_s25 + $0xb0] sm:$0xff] %v447_v55  ;;  %508 = vst [vmem:[%s746_s25 + $0xb8] sm:$0xf] %v448_v56  ;;  %v325_v5 = vmul.f32 %v717_v0, %v258_v60  ;;  %v326_v6 = vmul.f32 %v717_v0, %v259_v61  ;;  %v327_v7 = vmul.f32 %v717_v0, %v260_v62  ;;  %v264_v34 = vunpack.c.l.bf16 %v204_v20  ;;  %v215_v59 = vld [vmem:[%s712_s17 + $0xb0] sm:$0x3]  ;;  %v216_v60 = vld [vmem:[%s712_s17 + $0xb4] sm:$0xff]  }
  0x2e   : > { %v328_v8 = vmul.f32 %v633_v63, %v717_v0  ;;  %v329_v9 = vmul.f32 %v634_v1, %v717_v0  ;;  %v389_v11 = vadd.f32 %v728_v10, %v322_v2  ;;  %v390_v12 = vadd.f32 %v728_v10, %v323_v3  ;;  %v218_v2 = vld [vmem:[%s712_s17 + $0xbc] sm:$0x3] }
  0x2f   : > { %v391_v13 = vadd.f32 %v728_v10, %v324_v4  ;;  %v392_v14 = vadd.f32 %v728_v10, %v325_v5  ;;  %v393_v16 = vadd.f32 %v728_v10, %v326_v6  ;;  %v394_v17 = vadd.f32 %v728_v10, %v327_v7 }
  0x30   : > { %v395_v18 = vadd.f32 %v728_v10, %v328_v8  ;;  %v396_v19 = vadd.f32 %v728_v10, %v329_v9  ;;  %v449_v23 = vmax.f32 %v389_v11, 0.0  ;;  %v450_v24 = vmax.f32 %v390_v12, 0.0 }
  0x31   : > { %v451_v25 = vmax.f32 %v391_v13, 0.0  ;;  %v452_v26 = vmax.f32 %v392_v14, 0.0  ;;  %v453_v29 = vmax.f32 %v393_v16, 0.0  ;;  %v454_v30 = vmax.f32 %v394_v17, 0.0 }
  0x32   : > { %v455_v31 = vmax.f32 %v395_v18, 0.0  ;;  %v456_v32 = vmax.f32 %v396_v19, 0.0  ;;  %509 = vst [vmem:[%s746_s25 + $0xc0] sm:$0xff] %v449_v23  ;;  %510 = vst [vmem:[%s746_s25 + $0xc8] sm:$0xff] %v450_v24  ;;  %v265_v35 = vunpack.c.h.bf16 %v204_v20  ;;  %v266_v36 = vunpack.c.l.bf16 %v206_v21 }
  0x33   : > { %511 = vst [vmem:[%s746_s25 + $0xd0] sm:$0xf] %v451_v25  ;;  %512 = vst [vmem:[%s746_s25 + $0xd8] sm:$0xff] %v452_v26  ;;  %v637_v37 = vunpack.c.l.bf16 %v656_v27  ;;  %v638_v38 = vunpack.c.h.bf16 %v656_v27  ;;  %v269_v39 = vunpack.c.l.bf16 %v209_v22  ;;  %v270_v40 = vunpack.c.l.bf16 %v849_v28 }
  0x34   : > { %513 = vst [vmem:[%s746_s25 + $0xe0] sm:$0xff] %v453_v29  ;;  %514 = vst [vmem:[%s746_s25 + $0xe8] sm:$0xf] %v454_v30  ;;  %v330_v41 = vmul.f32 %v717_v0, %v263_v33  ;;  %v331_v42 = vmul.f32 %v717_v0, %v264_v34  ;;  %v332_v43 = vmul.f32 %v717_v0, %v265_v35  ;;  %v271_v7 = vunpack.c.h.bf16 %v849_v28  ;;  %v658_v28 = vld [vmem:[%s712_s17 + $0xc0] sm:$0xff]   ;;  %v221_v33 = vld [vmem:[%s712_s17 + $0xc8] sm:$0x3] }
  0x35   : > { %515 = vst [vmem:[%s746_s25 + $0xf0] sm:$0xff] %v455_v31  ;;  %516 = vst [vmem:[%s746_s25 + $0xf8] sm:$0xff] %v456_v32  ;;  %v333_v44 = vmul.f32 %v717_v0, %v266_v36  ;;  %v334_v45 = vmul.f32 %v637_v37, %v717_v0  ;;  %v335_v46 = vmul.f32 %v638_v38, %v717_v0  ;;  %v272_v8 = vunpack.c.l.bf16 %v212_v53  ;;  %v222_v34 = vld [vmem:[%s712_s17 + $0xcc] sm:$0xff]   ;;  %v224_v35 = vld [vmem:[%s712_s17 + $0xd4] sm:$0x3] }
  0x36   : > { %v336_v47 = vmul.f32 %v717_v0, %v269_v39  ;;  %v337_v48 = vmul.f32 %v717_v0, %v270_v40  ;;  %v397_v49 = vadd.f32 %v728_v10, %v330_v41  ;;  %v398_v50 = vadd.f32 %v728_v10, %v331_v42  ;;  %v659_v40 = vld [vmem:[%s712_s17 + $0xd8] sm:$0xff]  }
  0x37   : > { %v399_v51 = vadd.f32 %v728_v10, %v332_v43  ;;  %v400_v52 = vadd.f32 %v728_v10, %v333_v44  ;;  %v401_v54 = vadd.f32 %v728_v10, %v334_v45  ;;  %v402_v55 = vadd.f32 %v728_v10, %v335_v46 }
  0x38   : > { %v403_v56 = vadd.f32 %v728_v10, %v336_v47  ;;  %v404_v57 = vadd.f32 %v728_v10, %v337_v48  ;;  %v457_v61 = vmax.f32 %v397_v49, 0.0  ;;  %v458_v62 = vmax.f32 %v398_v50, 0.0 }
  0x39   : > { %v459_v63 = vmax.f32 %v399_v51, 0.0  ;;  %v460_v1 = vmax.f32 %v400_v52, 0.0  ;;  %v461_v3 = vmax.f32 %v401_v54, 0.0  ;;  %v462_v4 = vmax.f32 %v402_v55, 0.0 }
  0x3a   : > { %v463_v5 = vmax.f32 %v403_v56, 0.0  ;;  %v464_v6 = vmax.f32 %v404_v57, 0.0  ;;  %517 = vst [vmem:[%s746_s25 + $0x100] sm:$0xf] %v457_v61  ;;  %518 = vst [vmem:[%s746_s25 + $0x108] sm:$0xff] %v458_v62  ;;  %v641_v9 = vunpack.c.l.bf16 %v657_v58  ;;  %v642_v11 = vunpack.c.h.bf16 %v657_v58 }
  0x3b   : > { %519 = vst [vmem:[%s746_s25 + $0x110] sm:$0xff] %v459_v63  ;;  %520 = vst [vmem:[%s746_s25 + $0x118] sm:$0xf] %v460_v1  ;;  %v275_v12 = vunpack.c.l.bf16 %v215_v59  ;;  %v276_v13 = vunpack.c.l.bf16 %v216_v60  ;;  %v277_v14 = vunpack.c.h.bf16 %v216_v60  ;;  %v278_v15 = vunpack.c.l.bf16 %v218_v2 }
  0x3c   : > { %521 = vst [vmem:[%s746_s25 + $0x120] sm:$0xff] %v461_v3  ;;  %522 = vst [vmem:[%s746_s25 + $0x128] sm:$0xff] %v462_v4  ;;  %v338_v16 = vmul.f32 %v717_v0, %v271_v7  ;;  %v339_v17 = vmul.f32 %v717_v0, %v272_v8  ;;  %v340_v18 = vmul.f32 %v641_v9, %v717_v0  ;;  %v645_v45 = vunpack.c.l.bf16 %v658_v28  ;;  %v228_v7 = vld [vmem:[%s712_s17 + $0xe4] sm:$0xff]   ;;  %v230_v8 = vld [vmem:[%s712_s17 + $0xec] sm:$0x3] }
  0x3d   : > { %523 = vst [vmem:[%s746_s25 + $0x130] sm:$0xf] %v463_v5  ;;  %524 = vst [vmem:[%s746_s25 + $0x138] sm:$0xff] %v464_v6  ;;  %v341_v19 = vmul.f32 %v642_v11, %v717_v0  ;;  %v342_v20 = vmul.f32 %v717_v0, %v275_v12  ;;  %v343_v21 = vmul.f32 %v717_v0, %v276_v13  ;;  %v646_v46 = vunpack.c.h.bf16 %v658_v28  ;;  %v227_v6 = vld [vmem:[%s712_s17 + $0xe0] sm:$0x3] }
  0x3e   : > { %v344_v22 = vmul.f32 %v717_v0, %v277_v14  ;;  %v345_v23 = vmul.f32 %v717_v0, %v278_v15  ;;  %v405_v24 = vadd.f32 %v728_v10, %v338_v16  ;;  %v406_v25 = vadd.f32 %v728_v10, %v339_v17 }
  0x3f   : > { %v407_v26 = vadd.f32 %v728_v10, %v340_v18  ;;  %v408_v27 = vadd.f32 %v728_v10, %v341_v19  ;;  %v409_v29 = vadd.f32 %v728_v10, %v342_v20  ;;  %v410_v30 = vadd.f32 %v728_v10, %v343_v21 }
  0x40   : > { %v411_v31 = vadd.f32 %v728_v10, %v344_v22  ;;  %v412_v32 = vadd.f32 %v728_v10, %v345_v23  ;;  %v465_v36 = vmax.f32 %v405_v24, 0.0  ;;  %v466_v37 = vmax.f32 %v406_v25, 0.0 }
  0x41   : > { %v467_v38 = vmax.f32 %v407_v26, 0.0  ;;  %v468_v39 = vmax.f32 %v408_v27, 0.0  ;;  %v469_v41 = vmax.f32 %v409_v29, 0.0  ;;  %v470_v42 = vmax.f32 %v410_v30, 0.0 }
  0x42   : > { %v471_v43 = vmax.f32 %v411_v31, 0.0  ;;  %v472_v44 = vmax.f32 %v412_v32, 0.0  ;;  %525 = vst [vmem:[%s746_s25 + $0x140] sm:$0xff] %v465_v36  ;;  %526 = vst [vmem:[%s746_s25 + $0x148] sm:$0xf] %v466_v37  ;;  %v281_v47 = vunpack.c.l.bf16 %v221_v33  ;;  %v282_v48 = vunpack.c.l.bf16 %v222_v34 }
  0x43   : > { %527 = vst [vmem:[%s746_s25 + $0x150] sm:$0xff] %v467_v38  ;;  %528 = vst [vmem:[%s746_s25 + $0x158] sm:$0xff] %v468_v39  ;;  %v283_v49 = vunpack.c.h.bf16 %v222_v34  ;;  %v284_v50 = vunpack.c.l.bf16 %v224_v35  ;;  %v649_v51 = vunpack.c.l.bf16 %v659_v40  ;;  %v650_v52 = vunpack.c.h.bf16 %v659_v40 }
  0x44   : > { %529 = vst [vmem:[%s746_s25 + $0x160] sm:$0xf] %v469_v41  ;;  %530 = vst [vmem:[%s746_s25 + $0x168] sm:$0xff] %v470_v42  ;;  %v346_v53 = vmul.f32 %v645_v45, %v717_v0  ;;  %v347_v54 = vmul.f32 %v646_v46, %v717_v0  ;;  %v348_v55 = vmul.f32 %v717_v0, %v281_v47  ;;  %v287_v18 = vunpack.c.l.bf16 %v227_v6 }
  0x45   : > { %531 = vst [vmem:[%s746_s25 + $0x170] sm:$0xff] %v471_v43  ;;  %532 = vst [vmem:[%s746_s25 + $0x178] sm:$0xf] %v472_v44  ;;  %v349_v56 = vmul.f32 %v717_v0, %v282_v48  ;;  %v350_v57 = vmul.f32 %v717_v0, %v283_v49  ;;  %v351_v58 = vmul.f32 %v717_v0, %v284_v50  ;;  %v288_v19 = vunpack.c.l.bf16 %v228_v7 }
  0x46   : > { %v352_v59 = vmul.f32 %v649_v51, %v717_v0  ;;  %v353_v60 = vmul.f32 %v650_v52, %v717_v0  ;;  %v413_v61 = vadd.f32 %v728_v10, %v346_v53  ;;  %v414_v62 = vadd.f32 %v728_v10, %v347_v54 }
  0x47   : > { %v415_v63 = vadd.f32 %v728_v10, %v348_v55  ;;  %v416_v1 = vadd.f32 %v728_v10, %v349_v56  ;;  %v417_v2 = vadd.f32 %v728_v10, %v350_v57  ;;  %v418_v3 = vadd.f32 %v728_v10, %v351_v58 }
  0x48   : > { %v419_v4 = vadd.f32 %v728_v10, %v352_v59  ;;  %v420_v5 = vadd.f32 %v728_v10, %v353_v60  ;;  %v473_v9 = vmax.f32 %v413_v61, 0.0  ;;  %v474_v11 = vmax.f32 %v414_v62, 0.0 }
  0x49   : > { %v475_v12 = vmax.f32 %v415_v63, 0.0  ;;  %v476_v13 = vmax.f32 %v416_v1, 0.0  ;;  %v477_v14 = vmax.f32 %v417_v2, 0.0  ;;  %v478_v15 = vmax.f32 %v418_v3, 0.0 }
  0x4a   : > { %v479_v16 = vmax.f32 %v419_v4, 0.0  ;;  %v480_v17 = vmax.f32 %v420_v5, 0.0  ;;  %533 = vst [vmem:[%s746_s25 + $0x180] sm:$0xff] %v473_v9  ;;  %534 = vst [vmem:[%s746_s25 + $0x188] sm:$0xff] %v474_v11  ;;  %v289_v20 = vunpack.c.h.bf16 %v228_v7  ;;  %v290_v21 = vunpack.c.l.bf16 %v230_v8 }
  0x4b   : > { %535 = vst [vmem:[%s746_s25 + $0x190] sm:$0xf] %v475_v12  ;;  %536 = vst [vmem:[%s746_s25 + $0x198] sm:$0xff] %v476_v13  ;;  %v354_v22 = vmul.f32 %v717_v0, %v287_v18  ;;  %v355_v23 = vmul.f32 %v717_v0, %v288_v19 }
  0x4c   : > { %537 = vst [vmem:[%s746_s25 + $0x1a0] sm:$0xff] %v477_v14  ;;  %538 = vst [vmem:[%s746_s25 + $0x1a8] sm:$0xf] %v478_v15  ;;  %v356_v24 = vmul.f32 %v717_v0, %v289_v20  ;;  %v357_v25 = vmul.f32 %v717_v0, %v290_v21 }
  0x4d   : > { %539 = vst [vmem:[%s746_s25 + $0x1b0] sm:$0xff] %v479_v16  ;;  %540 = vst [vmem:[%s746_s25 + $0x1b8] sm:$0xff] %v480_v17  ;;  %v421_v26 = vadd.f32 %v728_v10, %v354_v22  ;;  %v422_v27 = vadd.f32 %v728_v10, %v355_v23 }
  0x4e   : > { %v423_v28 = vadd.f32 %v728_v10, %v356_v24  ;;  %v424_v29 = vadd.f32 %v728_v10, %v357_v25 }
  0x4f   : > { %v481_v30 = vmax.f32 %v421_v26, 0.0  ;;  %v482_v31 = vmax.f32 %v422_v27, 0.0 }
  0x50   : > { %v483_v32 = vmax.f32 %v423_v28, 0.0  ;;  %v484_v33 = vmax.f32 %v424_v29, 0.0 }
  0x51   : > { %541 = vst [vmem:[%s746_s25 + $0x1c0] sm:$0xf] %v481_v30  ;;  %542 = vst [vmem:[%s746_s25 + $0x1c8] sm:$0xff] %v482_v31 }
  0x52   : > { %543 = vst [vmem:[%s746_s25 + $0x1d0] sm:$0xff] %v483_v32  ;;  %544 = vst [vmem:[%s746_s25 + $0x1d8] sm:$0xf] %v484_v33 }
  0x53 PF: > { %s13_s12 = sadd.s32 1, %s676_s12  }
  0x54   : > { %p10_p4 = scmp.ge.s32.totalorder %s13_s12, 4  }
  0x56   :  { %12 = sbr.rel (!%p10_p4) target bundleno = 1 (0x1), region = 62 }

// kernel: conv_bn_relu_forward.2
= control target key start
LH: loop header
LB: loop body
LE: loop exit
PB: predicated region body
PF: predicated region fallthrough
CT: control target
= control target key end

     0   :  { %s8429_s12 = smov 0   ;;  %s9591_s0 = inlined_call_operand.vmem [shape: bf16[2,584,128], index: 0, kind: input, shape index: {}]   ;;  %s9592_s1 = inlined_call_operand.vmem [shape: bf16[9,128,128], index: 1, kind: input, shape index: {}]   ;;  %s9593_s2 = inlined_call_operand.vmem [shape: bf16[2,20,20,128], index: 2, kind: output, shape index: {0}]   ;;  %s9594_s3 = inlined_call_operand.vmem [shape: f32[2,2,128], index: 3, kind: output, shape index: {1}]  }
   0x1 LB: > { %s6037_s13 = sadd.s32 4294967295, %s8407_s12   ;;  %p6041_p0 = scmp.ge.s32.totalorder %s8407_s12, 1  ;;  %s8407_s12 = sphi %s8429_s12, %s14_s12  }
   0x2   : > { %p140_p1 = scmp.lt.s32.totalorder %s8407_s12, 3 }
   0x4   : > { %p141_p2 = pnand %p6041_p0, %p140_p1 }
   0x5   : > { %v8118_v0 = vld [vmem:[%s9592_s1 + $0x40] sm:$0xff] (!%p141_p2)   ;;  %p168_p3 = scmp.lt.s32.totalorder (!%p141_p2), %s6037_s13, 1  ;;  %v8120_v2 = vld [vmem:[%s9592_s1 + $0x48] sm:$0xff] (!%p141_p2)   ;;  %v8122_v4 = vld [vmem:[%s9592_s1 + $0x50] sm:$0xff] (!%p141_p2)   ;;  %vm431_vm0 = vcmask (!%p141_p2), 1046528   ;;  %vm1223_vm1 = vcmask (!%p141_p2), 1045504  }
   0x6   : > { %144 = sbr.rel (%p141_p2) target bundleno = 815 (0x32f), region = 28  ;;  %v8119_v1 = vld [vmem:[%s9592_s1 + $0x100] sm:$0xff] (!%p141_p2)   ;;  %6928 = vmatprep.subr.bf16.mxu1 (!%p141_p2), %v8118_v0  ;;  %v8121_v3 = vld [vmem:[%s9592_s1 + $0x108] sm:$0xff] (!%p141_p2)   ;;  %v8123_v5 = vld [vmem:[%s9592_s1 + $0x110] sm:$0xff] (!%p141_p2)  }
   0x7   : > { %7232 = vmatprep.subr.bf16.mxu0 (!%p141_p2), %v8119_v1  ;;  %6929 = vmatpush3.bf16.msra.mxu1 (!%p141_p2), %v8118_v0  ;;  %v8124_v6 = vld [vmem:[%s9592_s1 + $0x58] sm:$0xff] (!%p141_p2)   ;;  %v8126_v8 = vld [vmem:[%s9592_s1 + $0x60] sm:$0xff] (!%p141_p2)   ;;  %v8128_v10 = vld [vmem:[%s9592_s1 + $0x68] sm:$0xff] (!%p141_p2)  }
   0x8   : > { %7233 = vmatpush3.bf16.msra.mxu0 (!%p141_p2), %v8119_v1  ;;  %6930 = vmatprep.subr.bf16.mxu1 (!%p141_p2), %v8120_v2  ;;  %v8125_v7 = vld [vmem:[%s9592_s1 + $0x118] sm:$0xff] (!%p141_p2)   ;;  %v8127_v9 = vld [vmem:[%s9592_s1 + $0x120] sm:$0xff] (!%p141_p2)   ;;  %v8129_v11 = vld [vmem:[%s9592_s1 + $0x128] sm:$0xff] (!%p141_p2)  }
   0x9   : > { %7234 = vmatprep.subr.bf16.mxu0 (!%p141_p2), %v8121_v3  ;;  %v8130_v21 = vld [vmem:[%s9592_s1 + $0x70] sm:$0xff] (!%p141_p2)   ;;  %v8132_v27 = vld [vmem:[%s9592_s1 + $0x78] sm:$0xff] (!%p141_p2)   ;;  %v8140_v36 = vld [vmem:[%s9592_s1 + $0x140] sm:$0xff] (!%p141_p2)  }
   0xa   : > { %v8131_v23 = vld [vmem:[%s9592_s1 + $0x130] sm:$0xff] (!%p141_p2)   ;;  %v8133_v30 = vld [vmem:[%s9592_s1 + $0x138] sm:$0xff] (!%p141_p2)   ;;  %v8144_v39 = vld [vmem:[%s9592_s1] sm:$0xff] (!%p141_p2)  }
   0xb   : > { %6931 = vmatpush3.bf16.msra.mxu1 (!%p141_p2), %v8120_v2  ;;  %v8146_v51 = vld [vmem:[%s9592_s1 + $0x148] sm:$0xff] (!%p141_p2)   ;;  %v8151_v59 = vld [vmem:[%s9592_s1 + $0x150] sm:$0xff] (!%p141_p2)  }
   0xc   : > { %7235 = vmatpush3.bf16.msra.mxu0 (!%p141_p2), %v8121_v3  ;;  %6932 = vmatprep.subr.bf16.mxu1 (!%p141_p2), %v8122_v4  ;;  %v8153_v54 = vld [vmem:[%s9592_s1 + $0x8] sm:$0xff] (!%p141_p2)  }
   0xd   : > { %s9596_s13 = smov (!%p168_p3, %s6037_s13), 1  ;;  %7236 = vmatprep.subr.bf16.mxu0 %v8123_v5 }
   0xe   : > { %s8108_s30 = smul.u32 292, %s9596_s13  ;;  %s6044_s9 = sshll.u32 %s9596_s13, 1 }
   0xf   : > { %6933 = vmatpush3.bf16.msra.mxu1 %v8122_v4  ;;  %s181_s15 = scalar_lea.vmem %s9594_s3, %s6044_s9 }
  0x10   : > { %7237 = vmatpush3.bf16.msra.mxu0 %v8123_v5  ;;  %6934 = vmatprep.subr.bf16.mxu1 %v8124_v6  ;;  %s8473_s10 = scalar_lea.vmem %s9591_s0, %s8108_s30 }
  0x11   : > { %7238 = vmatprep.subr.bf16.mxu0 %v8125_v7  ;;  %v184_v12 = vld [vmem:[%s8473_s10 + $0x4] sm:$0xf]  ;;  %v259_v13 = vld [vmem:[%s8473_s10] sm:$0xe]  ;;  %v8135_v14 = vld [vmem:[%s8473_s10 + $0x8] sm:$0xff]  }
  0x12   : > { %v2334_v15 = vld [vmem:[%s8473_s10 + $0x18] sm:$0xe]  ;;  %v6061_v16 = vcombine.low %v259_v13, %v184_v12  ;;  %v8486_v17 = vld [vmem:[%s8473_s10 + $0x1c] sm:$0xf]  ;;  %v433_v18 = vrot.slane %v8135_v14, 1  ;;  %v8490_v20 = vld [vmem:[%s8473_s10 + $0x20] sm:$0xff]  }
  0x13   : > { %6935 = vmatpush3.bf16.msra.mxu1 %v8124_v6  ;;  %v6205_v19 = vcombine.low %v2334_v15, %v8486_v17  ;;  %v2566_v25 = vrot.slane %v8490_v20, 1  ;;  %v8138_v26 = vld [vmem:[%s8473_s10 + $0x10] sm:$0xff]   ;;  %v8139_v29 = vld [vmem:[%s8473_s10 + $0x28] sm:$0xff]   ;;  %v8141_v32 = vld [vmem:[%s8473_s10 + $0x18] sm:$0xff]   ;;  %v3063_v41 = vrot.slane %v8490_v20, 2 }
  0x14   : > { %7239 = vmatpush3.bf16.msra.mxu0 %v8125_v7  ;;  %6936 = vmatprep.subr.bf16.mxu1 %v8126_v8  ;;  %v432_v22 = vrot.slane %v6061_v16, 1  ;;  %v8142_v33 = vld [vmem:[%s8473_s10 + $0x30] sm:$0xff]   ;;  %v435_v34 = vrot.slane %v8138_v26, 1  ;;  %v2568_v35 = vrot.slane %v8139_v29, 1  ;;  %v437_v37 = vrot.slane %v8141_v32, 1  ;;  %v8143_v38 = vld [vmem:[%s8473_s10 + $0x20] sm:$0xff]  }
  0x15   : > { %7240 = vmatprep.subr.bf16.mxu0 %v8127_v9  ;;  %v2565_v24 = vrot.slane %v6205_v19, 1  ;;  %v2570_v40 = vrot.slane %v8142_v33, 1  ;;  %v8145_v42 = vld [vmem:[%s8473_s10 + $0x38] sm:$0xff]   ;;  %v3065_v43 = vrot.slane %v8139_v29, 2  ;;  %v8147_v45 = vld [vmem:[%s8473_s10 + $0x28] sm:$0xff]   ;;  %v8148_v48 = vld [vmem:[%s8473_s10 + $0x40] sm:$0xff]  }
  0x16   : > { %v434_v28 = vsel %vm431_vm0, %v432_v22, %v433_v18  ;;  %v436_v44 = vsel %vm431_vm0, %v433_v18, %v435_v34  ;;  %v2569_v46 = vsel %vm431_vm0, %v2566_v25, %v2568_v35  ;;  %v438_v47 = vsel %vm431_vm0, %v435_v34, %v437_v37  ;;  %v8149_v58 = vld [vmem:[%s8473_s10 + $0x30] sm:$0xff]   ;;  %v8150_v62 = vld [vmem:[%s8473_s10 + $0x48] sm:$0xff]   ;;  %v8152_v0 = vld [vmem:[%s8473_s10 + $0x38] sm:$0xff]  }
  0x17   : > { %6937 = vmatpush3.bf16.msra.mxu1 %v8126_v8  ;;  %6944 = vmatprep.mubr.bf16.mxu1 %v434_v28  ;;  %v2567_v31 = vsel %vm431_vm0, %v2565_v24, %v2566_v25  ;;  %v8528_v49 = vsel %vm1223_vm1, %v3063_v41, %v3065_v43  ;;  %v2571_v50 = vsel %vm431_vm0, %v2568_v35, %v2570_v40  ;;  %v439_v52 = vrot.slane %v8143_v38, 1  ;;  %v8154_v4 = vld [vmem:[%s8473_s10 + $0x50] sm:$0xff]   ;;  %v8157_v6 = vld [vmem:[%s9592_s1 + $0x158] sm:$0xff]   ;;  %v8162_v12 = vld [vmem:[%s9592_s1 + $0x160] sm:$0xff]  }
  0x18   : > { %7241 = vmatpush3.bf16.msra.mxu0 %v8127_v9  ;;  %6938 = vmatprep.subr.bf16.mxu1 %v8128_v10  ;;  %v2572_v53 = vrot.slane %v8145_v42, 1  ;;  %v3067_v55 = vrot.slane %v8142_v33, 2  ;;  %v441_v56 = vrot.slane %v8147_v45, 1  ;;  %v2574_v57 = vrot.slane %v8148_v48, 1  ;;  %v8163_v14 = vld [vmem:[%s9592_s1 + $0x10] sm:$0xff]   ;;  %v8155_v15 = vld [vmem:[%s8473_s10 + $0x40] sm:$0xff]  }
  0x19   : > { %7242 = vmatprep.subr.bf16.mxu0 %v8129_v11  ;;  %7248 = vmatprep.mubr.bf16.mxu0 %v2567_v31  ;;  %v3069_v61 = vrot.slane %v8145_v42, 2  ;;  %v440_v63 = vsel %vm431_vm0, %v437_v37, %v439_v52  ;;  %v3071_v7 = vrot.slane %v8148_v48, 2  ;;  %v443_v8 = vrot.slane %v8149_v58, 1  ;;  %v8156_v19 = vld [vmem:[%s8473_s10 + $0x58] sm:$0xff]   ;;  %v8158_v24 = vld [vmem:[%s8473_s10 + $0x48] sm:$0xff]   ;;  %v8160_v35 = vld [vmem:[%s8473_s10 + $0x50] sm:$0xff]  }
  0x1a   : > { %v8542_v60 = vsel %vm1223_vm1, %v3065_v43, %v3067_v55  ;;  %v2573_v2 = vsel %vm431_vm0, %v2570_v40, %v2572_v53  ;;  %v442_v3 = vsel %vm431_vm0, %v439_v52, %v441_v56  ;;  %v2575_v5 = vsel %vm431_vm0, %v2572_v53, %v2574_v57  ;;  %v8168_v29 = vld [vmem:[%s9592_s1 + $0x168] sm:$0xff]   ;;  %v8586_v37 = vld [vmem:[%s8473_s10 + $0x58] sm:$0xff]   ;;  %v8173_v40 = vld [vmem:[%s9592_s1 + $0x170] sm:$0xff]  }
  0x1b   : > { %6939 = vmatpush3.bf16.msra.mxu1 %v8128_v10  ;;  %v8548_v1 = vsel %vm1223_vm1, %v3067_v55, %v3069_v61  ;;  %v2576_v9 = vrot.slane %v8150_v62, 1  ;;  %v8558_v10 = vsel %vm1223_vm1, %v3069_v61, %v3071_v7  ;;  %v2578_v13 = vrot.slane %v8154_v4, 1  ;;  %v8167_v58 = vld [vmem:[%s8473_s10 + $0x78] sm:$0xff]   ;;  %v8190_v20 = vld [vmem:[%s9592_s1 + $0x28] sm:$0xff]  }
  0x1c   : > { %7243 = vmatpush3.bf16.msra.mxu0 %v8129_v11  ;;  %6940 = vmatprep.subr.bf16.mxu1 %v8130_v21  ;;  %v445_v11 = vrot.slane %v8152_v0, 1  ;;  %v3073_v16 = vrot.slane %v8150_v62, 2  ;;  %v444_v18 = vsel %vm431_vm0, %v441_v56, %v443_v8  ;;  %v2580_v31 = vrot.slane %v8156_v19, 1  ;;  %v8169_v62 = vld [vmem:[%s8473_s10 + $0x68] sm:$0xff]  }
  0x1d   : > { %7244 = vmatprep.subr.bf16.mxu0 %v8131_v23  ;;  %v2577_v22 = vsel %vm431_vm0, %v2574_v57, %v2576_v9  ;;  %v2579_v26 = vsel %vm431_vm0, %v2576_v9, %v2578_v13  ;;  %v449_v32 = vrot.slane %v8158_v24, 1  ;;  %v3077_v33 = vrot.slane %v8156_v19, 2  ;;  %v8179_v57 = vld [vmem:[%s9592_s1 + $0x178] sm:$0xff]  }
  0x1e   : > { %v8573_v25 = vsel %vm1223_vm1, %v3071_v7, %v3073_v16  ;;  %v2581_v42 = vsel %vm431_vm0, %v2578_v13, %v2580_v31  ;;  %v453_v53 = vrot.slane %v8586_v37, 1  ;;  %v8170_v7 = vld [vmem:[%s8473_s10 + $0x80] sm:$0xff]   ;;  %v8175_v19 = vld [vmem:[%s8473_s10 + $0x78] sm:$0xff]  }
  0x1f   : > { %6941 = vmatpush3.bf16.msra.mxu1 %v8130_v21  ;;  %v3075_v21 = vrot.slane %v8154_v4, 2  ;;  %v8623_v4 = vld [vmem:[%s9592_s1 + $0x180] sm:$0xff]  }
  0x20   : > { %7245 = vmatpush3.bf16.msra.mxu0 %v8131_v23  ;;  %6942 = vmatprep.subr.bf16.mxu1 %v8132_v27  ;;  %v446_v23 = vsel %vm431_vm0, %v443_v8, %v445_v11 }
  0x21   : > { %7246 = vmatprep.subr.bf16.mxu0 %v8133_v30  ;;  %v8578_v28 = vsel %vm1223_vm1, %v3073_v16, %v3075_v21  ;;  %v8589_v38 = vsel %vm1223_vm1, %v3075_v21, %v3077_v33  ;;  %v2590_v16 = vrot.slane %v8170_v7, 1 }
  0x23   : > { %6943 = vmatpush3.bf16.msra.mxu1 %v8132_v27  ;;  %v8159_v27 = vld [vmem:[%s8473_s10 + $0x60] sm:$0xff]  }
  0x24   : > { %7247 = vmatpush3.bf16.msra.mxu0 %v8133_v30  ;;  %7004 = vmatprep.subr.bf16.mxu1 %v8144_v39  ;;  %v447_v30 = vrot.slane %v8155_v15, 1  ;;  %v2582_v34 = vrot.slane %v8159_v27, 1  ;;  %v3085_v15 = vrot.slane %v8167_v58, 2 }
  0x25   : > { %7308 = vmatprep.subr.bf16.mxu0 %v8140_v36 }
  0x26   : > { %6945 = vmatmul.mubr.bf16.vlgmr.msra.gmra.mrb[0].mxu1 %v436_v44  ;;  %v450_v43 = vsel %vm431_vm0, %v447_v30, %v449_v32  ;;  %v8174_v44 = vld [vmem:[%s9592_s1 + $0x18] sm:$0xff]   ;;  %v2583_v45 = vsel %vm431_vm0, %v2580_v31, %v2582_v34 }
  0x27   : > { %7249 = vmatmul.mubr.bf16.vlgmr.msra.gmra.mrb[0].mxu0 %v2569_v46  ;;  %6948 = vmatprep.mubr.bf16.mxu1 %v438_v47  ;;  %v8165_v46 = vld [vmem:[%s8473_s10 + $0x70] sm:$0xff]   ;;  %v3079_v47 = vrot.slane %v8159_v27, 2 }
  0x28   : > { %7309 = vmatpush3.bf16.msra.mxu0 %v8140_v36  ;;  %7252 = vmatprep.mubr.bf16.mxu0 %v2571_v50  ;;  %v8161_v36 = vld [vmem:[%s8473_s10 + $0x68] sm:$0xff]   ;;  %v451_v50 = vrot.slane %v8160_v35, 1  ;;  %v2586_v56 = vrot.slane %v8165_v46, 1  ;;  %v3083_v0 = vrot.slane %v8165_v46, 2  ;;  %v8176_v27 = vld [vmem:[%s8473_s10 + $0x90] sm:$0xff]   ;;  %v8660_v35 = vld [vmem:[%s8473_s10 + $0x98] sm:$0xff]  }
  0x29   : > { %7310 = vmatprep.subr.bf16.mxu0 %v8146_v51  ;;  %7005 = vmatpush3.bf16.msra.mxu1 %v8144_v39  ;;  %v448_v39 = vsel %vm431_vm0, %v445_v11, %v447_v30  ;;  %v3081_v48 = vrot.slane %v8161_v36, 2  ;;  %v8603_v52 = vsel %vm1223_vm1, %v3077_v33, %v3079_v47  ;;  %v2588_v11 = vrot.slane %v8167_v58, 1 }
  0x2a   : > { %7006 = vmatprep.subr.bf16.mxu1 %v8153_v54  ;;  %v452_v61 = vsel %vm431_vm0, %v449_v32, %v451_v50  ;;  %v8643_v21 = vsel %vm1223_vm1, %v3083_v0, %v3085_v15  ;;  %v461_v33 = vrot.slane %v8175_v19, 1  ;;  %v2594_v37 = vrot.slane %v8176_v27, 1 }
  0x2b   : > { %v8608_v55 = vsel %vm1223_vm1, %v3079_v47, %v3081_v48  ;;  %v8631_v9 = vsel %vm1223_vm1, %v3081_v48, %v3083_v0  ;;  %v8676_v47 = vld [vmem:[%s8473_s10 + $0x88] sm:$0xff]  }
  0x2c   : > { %7311 = vmatpush3.bf16.msra.mxu0 %v8146_v51  ;;  %v2584_v51 = vrot.slane %v8161_v36, 1  ;;  %v3091_v36 = vrot.slane %v8176_v27, 2 }
  0x2d   : > { %7312 = vmatprep.subr.bf16.mxu0 %v8151_v59  ;;  %7007 = vmatpush3.bf16.msra.mxu1 %v8153_v54  ;;  %v8166_v54 = vld [vmem:[%s8473_s10 + $0x60] sm:$0xff]  }
  0x2e   : > { %6949 = vmatmul.mubr.bf16.gmra.mrb[4].mxu1 %v440_v63  ;;  %7008 = vmatprep.subr.bf16.mxu1 %v8163_v14 }
  0x2f   : > { %7253 = vmatmul.mubr.bf16.gmra.mrb[4].mxu0 %v2573_v2  ;;  %6952 = vmatprep.mubr.bf16.mxu1 %v442_v3  ;;  %v2585_v2 = vsel %vm431_vm0, %v2582_v34, %v2584_v51  ;;  %v454_v3 = vsel %vm431_vm0, %v451_v50, %v453_v53 }
  0x30   : > { %7256 = vmatprep.mubr.bf16.mxu0 %v2575_v5  ;;  %7313 = vmatpush3.bf16.msra.mxu0 %v8151_v59  ;;  %v3037_v59 = vld [vmem:[%s8473_s10 + $0x18] sm:$0xc]  ;;  %v2587_v5 = vsel %vm431_vm0, %v2584_v51, %v2586_v56 }
  0x31   : > { %7314 = vmatprep.subr.bf16.mxu0 %v8157_v6  ;;  %7009 = vmatpush3.bf16.msra.mxu1 %v8163_v14  ;;  %v6260_v63 = vcombine.low %v3037_v59, %v8486_v17  ;;  %v8184_v17 = vld [vmem:[%s9592_s1 + $0x20] sm:$0xff]   ;;  %v8171_v14 = vld [vmem:[%s8473_s10 + $0x70] sm:$0xff]   ;;  %v8202_v51 = vld [vmem:[%s9592_s1 + $0x38] sm:$0xff]  }
  0x32   : > { %7010 = vmatprep.subr.bf16.mxu1 %v8174_v44  ;;  %v459_v31 = vrot.slane %v8171_v14, 1  ;;  %v8697_v59 = vld [vmem:[%s8473_s10 + $0x90] sm:$0xff]  }
  0x33   : > { %v3062_v8 = vrot.slane %v6260_v63, 2  ;;  %v8704_v63 = vld [vmem:[%s8473_s10 + $0x98] sm:$0xff]   ;;  %v467_v0 = vrot.slane %v8697_v59, 1 }
  0x34   : > { %7315 = vmatpush3.bf16.msra.mxu0 %v8157_v6  ;;  %v455_v6 = vrot.slane %v8166_v54, 1  ;;  %v462_v46 = vsel %vm431_vm0, %v459_v31, %v461_v33  ;;  %v2596_v54 = vrot.slane %v8660_v35, 1 }
  0x35   : > { %7316 = vmatprep.subr.bf16.mxu0 %v8162_v12  ;;  %7011 = vmatpush3.bf16.msra.mxu1 %v8174_v44  ;;  %v8637_v13 = vsel %vm1223_vm1, %v3062_v8, %v3063_v41  ;;  %v3087_v41 = vrot.slane %v8170_v7, 2  ;;  %v3093_v44 = vrot.slane %v8660_v35, 2  ;;  %v8716_v7 = vld [vmem:[%s8473_s10 + $0xa8] sm:$0xff]  }
  0x36   : > { %6953 = vmatmul.mubr.bf16.gmra.mrb[8].mxu1 %v444_v18  ;;  %7012 = vmatprep.subr.bf16.mxu1 %v8184_v17  ;;  %v8172_v18 = vld [vmem:[%s8473_s10 + $0x88] sm:$0xff]  }
  0x37   : > { %7257 = vmatmul.mubr.bf16.gmra.mrb[8].mxu0 %v2577_v22  ;;  %6956 = vmatprep.mubr.bf16.mxu1 %v446_v23  ;;  %v456_v22 = vsel %vm431_vm0, %v453_v53, %v455_v6  ;;  %v2589_v23 = vsel %vm431_vm0, %v2586_v56, %v2588_v11  ;;  %v3089_v30 = vrot.slane %v8172_v18, 2  ;;  %v2592_v32 = vrot.slane %v8172_v18, 1  ;;  %v8188_v8 = vld [vmem:[%s9592_s1 + $0x188] sm:$0xff]   ;;  %v8204_v18 = vld [vmem:[%s9592_s1 + $0x1a0] sm:$0xff]  }
  0x38   : > { %7260 = vmatprep.mubr.bf16.mxu0 %v2579_v26  ;;  %7317 = vmatpush3.bf16.msra.mxu0 %v8162_v12  ;;  %v457_v12 = vrot.slane %v8169_v62, 1  ;;  %v2591_v26 = vsel %vm431_vm0, %v2588_v11, %v2590_v16  ;;  %v8682_v50 = vsel %vm1223_vm1, %v3091_v36, %v3093_v44  ;;  %v465_v56 = vrot.slane %v8676_v47, 1 }
  0x39   : > { %7318 = vmatprep.subr.bf16.mxu0 %v8168_v29  ;;  %7013 = vmatpush3.bf16.msra.mxu1 %v8184_v17  ;;  %v8657_v34 = vsel %vm1223_vm1, %v3087_v41, %v3089_v30  ;;  %v2595_v48 = vsel %vm431_vm0, %v2592_v32, %v2594_v37  ;;  %v473_v11 = vrot.slane %v8716_v7, 1 }
  0x3a   : > { %v458_v24 = vsel %vm431_vm0, %v455_v6, %v457_v12  ;;  %7014 = vmatprep.subr.bf16.mxu1 %v8190_v20 }
  0x3c   : > { %7319 = vmatpush3.bf16.msra.mxu0 %v8168_v29  ;;  %v8654_v29 = vsel %vm1223_vm1, %v3085_v15, %v3087_v41 }
  0x3d   : > { %7320 = vmatprep.subr.bf16.mxu0 %v8173_v40  ;;  %7015 = vmatpush3.bf16.msra.mxu1 %v8190_v20  ;;  %v8753_v20 = vld [vmem:[%s8473_s10 + $0xc8] sm:$0xff]  }
  0x3e   : > { %6957 = vmatmul.mubr.bf16.gmra.mrb[12].mxu1 %v448_v39  ;;  %v8196_v39 = vld [vmem:[%s9592_s1 + $0x30] sm:$0xff]  }
  0x3f   : > { %7261 = vmatmul.mubr.bf16.gmra.mrb[12].mxu0 %v2581_v42  ;;  %6960 = vmatprep.mubr.bf16.mxu1 %v450_v43  ;;  %v460_v42 = vsel %vm431_vm0, %v457_v12, %v459_v31  ;;  %v8670_v43 = vld [vmem:[%s8473_s10 + $0x80] sm:$0xff]   ;;  %v8193_v12 = vld [vmem:[%s9592_s1 + $0x190] sm:$0xff]  }
  0x40   : > { %7264 = vmatprep.mubr.bf16.mxu0 %v2583_v45  ;;  %7321 = vmatpush3.bf16.msra.mxu0 %v8173_v40  ;;  %v8666_v40 = vsel %vm1223_vm1, %v3089_v30, %v3091_v36  ;;  %v2593_v45 = vsel %vm431_vm0, %v2590_v16, %v2592_v32  ;;  %v463_v53 = vrot.slane %v8670_v43, 1  ;;  %v8786_v36 = vld [vmem:[%s8473_s10 + $0xe0] sm:$0xff]  }
  0x41   : > { %7322 = vmatprep.subr.bf16.mxu0 %v8179_v57  ;;  %7016 = vmatprep.subr.bf16.mxu1 %v8196_v39 }
  0x42   : > { %7017 = vmatpush3.bf16.msra.mxu1 %v8196_v39  ;;  %v464_v58 = vsel %vm431_vm0, %v461_v33, %v463_v53  ;;  %v466_v62 = vsel %vm431_vm0, %v463_v53, %v465_v56  ;;  %v8782_v33 = vld [vmem:[%s9592_s1 + $0x1c0] sm:$0xff]  }
  0x43   : > { %7018 = vmatprep.subr.bf16.mxu1 %v8202_v51  ;;  %v8205_v53 = vld [vmem:[%s8473_s10 + $0xa0] sm:$0xff]  }
  0x44   : > { %7323 = vmatpush3.bf16.msra.mxu0 %v8179_v57  ;;  %v8693_v57 = vld [vmem:[%s9592_s1 + $0x80] sm:$0xff]  }
  0x45   : > { %7384 = vmatprep.subr.bf16.mxu0 %v8623_v4 }
  0x46   : > { %6961 = vmatmul.mubr.bf16.gmra.mrb[16].mxu1 %v452_v61  ;;  %v2597_v61 = vsel %vm431_vm0, %v2594_v37, %v2596_v54  ;;  %v8789_v37 = vld [vmem:[%s8473_s10 + $0xe8] sm:$0xff]  }
  0x47   : > { %7265 = vmatmul.mubr.bf16.gmra.mrb[16].mxu0 %v2585_v2  ;;  %6964 = vmatprep.mubr.bf16.mxu1 %v454_v3  ;;  %v469_v2 = vrot.slane %v8704_v63, 1  ;;  %v468_v3 = vsel %vm431_vm0, %v465_v56, %v467_v0  ;;  %v8807_v56 = vld [vmem:[%s8473_s10 + $0x4] sm:$0xf] }
  0x48   : > { %7268 = vmatprep.mubr.bf16.mxu0 %v2587_v5  ;;  %7019 = vmatpush3.bf16.msra.mxu1 %v8202_v51  ;;  %v8712_v5 = vld [vmem:[%s8473_s10 + $0xa0] sm:$0xff]  }
  0x49   : > { %7080 = vmatprep.subr.bf16.mxu1 %v8693_v57  ;;  %v470_v6 = vsel %vm431_vm0, %v467_v0, %v469_v2  ;;  %v471_v17 = vrot.slane %v8712_v5, 1  ;;  %v183_v51 = vld [vmem:[%s8473_s10] sm:$0xf]  ;;  %v8211_v0 = vld [vmem:[%s9592_s1 + $0x88] sm:$0xff]  }
  0x4b   : > { %v472_v14 = vsel %vm431_vm0, %v469_v2, %v471_v17  ;;  %v474_v15 = vsel %vm431_vm0, %v471_v17, %v473_v11  ;;  %v8821_v2 = vld [vmem:[%s8473_s10 + $0x8] sm:$0xff]  }
  0x4e   : > { %6965 = vmatmul.mubr.bf16.gmra.mrb[20].mxu1 %v456_v22  ;;  %v8749_v22 = vld [vmem:[%s8473_s10 + $0xc0] sm:$0xff]  }
  0x4f   : > { %7269 = vmatmul.mubr.bf16.gmra.mrb[20].mxu0 %v2589_v23  ;;  %6968 = vmatprep.mubr.bf16.mxu1 %v458_v24  ;;  %v479_v41 = vrot.slane %v8749_v22, 1  ;;  %v481_v23 = vrot.slane %v8753_v20, 1  ;;  %v8216_v24 = vld [vmem:[%s9592_s1 + $0x1b0] sm:$0xff]  }
  0x50   : > { %7272 = vmatprep.mubr.bf16.mxu0 %v2591_v26  ;;  %v8766_v26 = vld [vmem:[%s8473_s10 + $0xd0] sm:$0xff]  }
  0x51   : > { %v482_v30 = vsel %vm431_vm0, %v479_v41, %v481_v23  ;;  %v483_v31 = vrot.slane %v8766_v26, 1 }
  0x56   : > { %6969 = vmatmul.mubr.bf16.gmra.mrb[24].mxu1 %v460_v42  ;;  %v489_v42 = vrot.slane %v8789_v37, 1 }
  0x57   : > { %7273 = vmatmul.mubr.bf16.gmra.mrb[24].mxu0 %v2593_v45  ;;  %6972 = vmatprep.mubr.bf16.mxu1 %v462_v46  ;;  %v8201_v45 = vld [vmem:[%s8473_s10 + $0xf0] ss:$0 sps:$4 sm:$0x11]  }
  0x58   : > { %7276 = vmatprep.mubr.bf16.mxu0 %v2595_v48 }
  0x5e   : > { %6973 = vmatmul.mubr.bf16.gmra.mrb[28].mxu1 %v464_v58  ;;  %v6100_v58 = vcombine.low %v183_v51, %v8807_v56 }
  0x5f   : > { %7277 = vmatmul.mubr.bf16.gmra.mrb[28].mxu0 %v2597_v61  ;;  %6976 = vmatprep.mubr.bf16.mxu1 %v466_v62  ;;  %v8207_v61 = vld [vmem:[%s8473_s10 + $0xa8] sm:$0xff]  }
  0x60   : > { %7324 = vmatprep.mubr.bf16.mxu0 %v8637_v13  ;;  %v8730_v13 = vld [vmem:[%s8473_s10 + $0xb0] sm:$0xff]  }
  0x66   : > { %6977 = vmatmul.mubr.bf16.gmra.mrb[32].mxu1 %v468_v3  ;;  %v8217_v3 = vld [vmem:[%s9592_s1 + $0x90] sm:$0xff]  }
  0x67   : > { %7325 = vmatmul.mubr.bf16.vlgmr.msra.gmra.mrb[0].mxu0 %v8528_v49  ;;  %6980 = vmatprep.mubr.bf16.mxu1 %v470_v6  ;;  %v8734_v49 = vld [vmem:[%s8473_s10 + $0xb8] sm:$0xff]  }
  0x68   : > { %7385 = vmatpush3.bf16.msra.mxu0 %v8623_v4  ;;  %7328 = vmatprep.mubr.bf16.mxu0 %v8542_v60  ;;  %v8199_v60 = vld [vmem:[%s9592_s1 + $0x198] sm:$0xff]   ;;  %v475_v4 = vrot.slane %v8730_v13, 1  ;;  %v477_v16 = vrot.slane %v8734_v49, 1 }
  0x69   : > { %7386 = vmatprep.subr.bf16.mxu0 %v8188_v8  ;;  %v8209_v6 = vld [vmem:[%s8473_s10 + $0xb8] sm:$0xff]  }
  0x6a   : > { %v476_v19 = vsel %vm431_vm0, %v473_v11, %v475_v4  ;;  %v480_v27 = vsel %vm431_vm0, %v477_v16, %v479_v41  ;;  %v8841_v11 = vld [vmem:[%s8473_s10 + $0x18] sm:$0xff]   ;;  %v8863_v41 = vld [vmem:[%s8473_s10 + $0x30] sm:$0xff]  }
  0x6c   : > { %7387 = vmatpush3.bf16.msra.mxu0 %v8188_v8  ;;  %v8212_v8 = vld [vmem:[%s8473_s10 + $0xc0] sm:$0xff]  }
  0x6d   : > { %7388 = vmatprep.subr.bf16.mxu0 %v8193_v12 }
  0x6e   : > { %6981 = vmatmul.mubr.bf16.gmra.mrb[36].mxu1 %v472_v14  ;;  %v3101_v14 = vrot.slane %v8209_v6, 2 }
  0x6f   : > { %7329 = vmatmul.mubr.bf16.gmra.mrb[4].mxu0 %v8548_v1  ;;  %6984 = vmatprep.mubr.bf16.mxu1 %v474_v15  ;;  %v478_v1 = vsel %vm431_vm0, %v475_v4, %v477_v16  ;;  %v3103_v15 = vrot.slane %v8212_v8, 2  ;;  %v8213_v4 = vld [vmem:[%s8473_s10 + $0xc8] sm:$0xff]   ;;  %v8214_v16 = vld [vmem:[%s8473_s10 + $0xd0] sm:$0xff]  }
  0x70   : > { %7332 = vmatprep.mubr.bf16.mxu0 %v8558_v10  ;;  %7389 = vmatpush3.bf16.msra.mxu0 %v8193_v12  ;;  %v8210_v10 = vld [vmem:[%s9592_s1 + $0x1a8] sm:$0xff]   ;;  %v8845_v12 = vld [vmem:[%s8473_s10 + $0x20] sm:$0xff]  }
  0x71   : > { %7390 = vmatprep.subr.bf16.mxu0 %v8199_v60 }
  0x74   : > { %7391 = vmatpush3.bf16.msra.mxu0 %v8199_v60  ;;  %v8229_v60 = vld [vmem:[%s9592_s1 + $0xa0] sm:$0xff]  }
  0x75   : > { %7392 = vmatprep.subr.bf16.mxu0 %v8204_v18 }
  0x76   : > { %6985 = vmatmul.mubr.bf16.gmra.mrb[40].mxu1 %v476_v19  ;;  %v3104_v19 = vsel %vm1223_vm1, %v3101_v14, %v3103_v15 }
  0x77   : > { %7333 = vmatmul.mubr.bf16.gmra.mrb[8].mxu0 %v8573_v25  ;;  %6988 = vmatprep.mubr.bf16.mxu1 %v478_v1  ;;  %v8770_v25 = vld [vmem:[%s8473_s10 + $0xd8] sm:$0xff]   ;;  %v8235_v1 = vld [vmem:[%s9592_s1 + $0xa8] sm:$0xff]  }
  0x78   : > { %7336 = vmatprep.mubr.bf16.mxu0 %v8578_v28  ;;  %7393 = vmatpush3.bf16.msra.mxu0 %v8204_v18  ;;  %v8222_v28 = vld [vmem:[%s9592_s1 + $0x1b8] sm:$0xff]   ;;  %v485_v32 = vrot.slane %v8770_v25, 1 }
  0x79   : > { %7394 = vmatprep.subr.bf16.mxu0 %v8210_v10 }
  0x7a   : > { %v486_v39 = vsel %vm431_vm0, %v483_v31, %v485_v32 }
  0x7c   : > { %7395 = vmatpush3.bf16.msra.mxu0 %v8210_v10  ;;  %v8859_v10 = vld [vmem:[%s8473_s10 + $0x28] sm:$0xff]  }
  0x7d   : > { %7396 = vmatprep.subr.bf16.mxu0 %v8216_v24 }
  0x7e   : > { %6989 = vmatmul.mubr.bf16.gmra.mrb[44].mxu1 %v480_v27  ;;  %v8241_v27 = vld [vmem:[%s9592_s1 + $0xb0] sm:$0xff]  }
  0x7f   : > { %7337 = vmatmul.mubr.bf16.gmra.mrb[12].mxu0 %v8589_v38  ;;  %6992 = vmatprep.mubr.bf16.mxu1 %v482_v30  ;;  %v484_v38 = vsel %vm431_vm0, %v481_v23, %v483_v31  ;;  %v3105_v23 = vrot.slane %v8213_v4, 2  ;;  %v8215_v30 = vld [vmem:[%s8473_s10 + $0xd8] sm:$0xff]  }
  0x80   : > { %7340 = vmatprep.mubr.bf16.mxu0 %v8603_v52  ;;  %7397 = vmatpush3.bf16.msra.mxu0 %v8216_v24  ;;  %v487_v52 = vrot.slane %v8786_v36, 1  ;;  %v3107_v24 = vrot.slane %v8214_v16, 2  ;;  %v8226_v16 = vld [vmem:[%s8473_s10 + $0x30] sm:$0xff]  }
  0x81   : > { %7398 = vmatprep.subr.bf16.mxu0 %v8222_v28  ;;  %v3106_v31 = vsel %vm1223_vm1, %v3103_v15, %v3105_v23  ;;  %v8922_v15 = vld [vmem:[%s8473_s10 + $0x70] sm:$0xff]  }
  0x82   : > { %v488_v46 = vsel %vm431_vm0, %v485_v32, %v487_v52  ;;  %v490_v48 = vsel %vm431_vm0, %v487_v52, %v489_v42  ;;  %v3108_v32 = vsel %vm1223_vm1, %v3105_v23, %v3107_v24  ;;  %v8881_v52 = vld [vmem:[%s8473_s10 + $0x40] sm:$0xff]   ;;  %v8233_v23 = vld [vmem:[%s9592_s1 + $0x1c8] sm:$0xff]  }
  0x84   : > { %7399 = vmatpush3.bf16.msra.mxu0 %v8222_v28  ;;  %v8218_v28 = vld [vmem:[%s8473_s10 + $0xe0] sm:$0xff]  }
  0x85   : > { %7460 = vmatprep.subr.bf16.mxu0 %v8782_v33 }
  0x86   : > { %6993 = vmatmul.mubr.bf16.gmra.mrb[48].mxu1 %v484_v38  ;;  %v8247_v38 = vld [vmem:[%s9592_s1 + $0xb8] sm:$0xff]  }
  0x87   : > { %7341 = vmatmul.mubr.bf16.gmra.mrb[16].mxu0 %v8608_v55  ;;  %6996 = vmatprep.mubr.bf16.mxu1 %v486_v39  ;;  %v491_v55 = vrot.slane %v8201_v45, 1  ;;  %v8877_v39 = vld [vmem:[%s8473_s10 + $0x38] sm:$0xff]   ;;  %v3111_v45 = vrot.slane %v8218_v28, 2  ;;  %v8237_v28 = vld [vmem:[%s8473_s10 + $0x68] sm:$0xff]  }
  0x88   : > { %7344 = vmatprep.mubr.bf16.mxu0 %v8631_v9 }
  0x89   : > { %v492_v9 = vsel %vm431_vm0, %v489_v42, %v491_v55  ;;  %v3109_v42 = vrot.slane %v8215_v30, 2  ;;  %v8220_v55 = vld [vmem:[%s8473_s10 + $0xf0] sm:$0xff]   ;;  %v8236_v30 = vld [vmem:[%s8473_s10 + $0x60] sm:$0xff]  }
  0x8b   : > { %v3110_v51 = vsel %vm1223_vm1, %v3107_v24, %v3109_v42  ;;  %v8231_v24 = vld [vmem:[%s8473_s10 + $0x48] sm:$0xff]  }
  0x8e   : > { %6997 = vmatmul.mubr.bf16.gmra.mrb[52].mxu1 %v488_v46  ;;  %v8887_v46 = vld [vmem:[%s9592_s1 + $0xc0] sm:$0xff]  }
  0x8f   : > { %7345 = vmatmul.mubr.bf16.gmra.mrb[20].mxu0 %v8643_v21  ;;  %7000 = vmatprep.mubr.bf16.mxu1 %v490_v48  ;;  %v3095_v21 = vrot.slane %v8205_v53, 2  ;;  %v8219_v48 = vld [vmem:[%s8473_s10 + $0xe8] sm:$0xff]   ;;  %v3112_v53 = vsel %vm1223_vm1, %v3109_v42, %v3111_v45  ;;  %v8245_v42 = vld [vmem:[%s8473_s10 + $0x90] sm:$0xff]  }
  0x90   : > { %7348 = vmatprep.mubr.bf16.mxu0 %v8654_v29  ;;  %v8208_v29 = vld [vmem:[%s8473_s10 + $0xb0] sm:$0xff]  }
  0x91   : > { %v3096_v62 = vsel %vm1223_vm1, %v3093_v44, %v3095_v21  ;;  %v3099_v44 = vrot.slane %v8208_v29, 2  ;;  %v8221_v29 = vld [vmem:[%s8473_s10 + $0xf8] sm:$0xff]  }
  0x92   : > { %v3117_v6 = vrot.slane %v8221_v29, 2 }
  0x93   : > { %v3102_v18 = vsel %vm1223_vm1, %v3099_v44, %v3101_v14  ;;  %v8918_v14 = vld [vmem:[%s8473_s10 + $0x68] sm:$0xff]  }
  0x96   : > { %7001 = vmatmul.mubr.bf16.gmra.mrb[56].mxu1 %v492_v9  ;;  %v8895_v9 = vld [vmem:[%s8473_s10 + $0x48] sm:$0xff]  }
  0x97   : > { %7349 = vmatmul.mubr.bf16.gmra.mrb[24].mxu0 %v8657_v34  ;;  %7020 = vmatprep.mubr.bf16.mxu1 %v6100_v58  ;;  %v8826_v34 = vld [vmem:[%s8473_s10 + $0x10] sm:$0xff]  }
  0x98   : > { %7352 = vmatprep.mubr.bf16.mxu0 %v8666_v40  ;;  %v3097_v40 = vrot.slane %v8207_v61, 2  ;;  %v8899_v58 = vld [vmem:[%s8473_s10 + $0x50] sm:$0xff]   ;;  %v3115_v61 = vrot.slane %v8220_v55, 2  ;;  %v8246_v55 = vld [vmem:[%s8473_s10 + $0x98] sm:$0xff]  }
  0x9a   : > { %v3100_v17 = vsel %vm1223_vm1, %v3097_v40, %v3099_v44  ;;  %v8907_v44 = vld [vmem:[%s8473_s10 + $0x58] sm:$0xff]  }
  0x9e   : > { %7021 = vmatmul.mubr.bf16.vlgmr.msra.gmra.mrb[0].mxu1 %v8821_v2 }
  0x9f   : > { %7353 = vmatmul.mubr.bf16.gmra.mrb[28].mxu0 %v8682_v50  ;;  %7024 = vmatprep.mubr.bf16.mxu1 %v8826_v34  ;;  %v3098_v50 = vsel %vm1223_vm1, %v3095_v21, %v3097_v40  ;;  %v3113_v21 = vrot.slane %v8219_v48, 2 }
  0xa0   : > { %7356 = vmatprep.mubr.bf16.mxu0 %v3096_v62  ;;  %7081 = vmatpush3.bf16.msra.mxu1 %v8693_v57  ;;  %v8223_v57 = vld [vmem:[%s9592_s1 + $0x98] sm:$0xff]   ;;  %v8224_v62 = vld [vmem:[%s8473_s10 + $0x100] sm:$0xff]  }
  0xa1   : > { %7082 = vmatprep.subr.bf16.mxu1 %v8211_v0  ;;  %v3116_v40 = vsel %vm1223_vm1, %v3113_v21, %v3115_v61  ;;  %v3119_v8 = vrot.slane %v8224_v62, 2  ;;  %v8254_v62 = vld [vmem:[%s8473_s10 + $0xb8] sm:$0xff]  }
  0xa4   : > { %7083 = vmatpush3.bf16.msra.mxu1 %v8211_v0  ;;  %v3114_v0 = vsel %vm1223_vm1, %v3111_v45, %v3113_v21  ;;  %v8252_v21 = vld [vmem:[%s8473_s10 + $0xb0] sm:$0xff]  }
  0xa5   : > { %7084 = vmatprep.subr.bf16.mxu1 %v8217_v3 }
  0xa6   : > { %7025 = vmatmul.mubr.bf16.gmra.mrb[4].mxu1 %v8841_v11 }
  0xa7   : > { %7357 = vmatmul.mubr.bf16.gmra.mrb[32].mxu0 %v3098_v50  ;;  %7028 = vmatprep.mubr.bf16.mxu1 %v8845_v12  ;;  %v8225_v50 = vld [vmem:[%s8473_s10 + $0x108] ss:$0 sps:$4 sm:$0x33]  }
  0xa8   : > { %7360 = vmatprep.mubr.bf16.mxu0 %v3100_v17  ;;  %7085 = vmatpush3.bf16.msra.mxu1 %v8217_v3  ;;  %v8911_v3 = vld [vmem:[%s8473_s10 + $0x60] sm:$0xff]   ;;  %v3118_v17 = vsel %vm1223_vm1, %v3115_v61, %v3117_v6  ;;  %v8258_v61 = vld [vmem:[%s9592_s1 + $0xc8] sm:$0xff]  }
  0xa9   : > { %7086 = vmatprep.subr.bf16.mxu1 %v8223_v57 }
  0xac   : > { %7087 = vmatpush3.bf16.msra.mxu1 %v8223_v57  ;;  %v3120_v57 = vsel %vm1223_vm1, %v3117_v6, %v3119_v8  ;;  %v8277_v6 = vld [vmem:[%s9592_s1 + $0xe0] sm:$0xff]  }
  0xad   : > { %7088 = vmatprep.subr.bf16.mxu1 %v8229_v60 }
  0xae   : > { %7029 = vmatmul.mubr.bf16.gmra.mrb[8].mxu1 %v8859_v10 }
  0xaf   : > { %7361 = vmatmul.mubr.bf16.gmra.mrb[36].mxu0 %v3102_v18  ;;  %7032 = vmatprep.mubr.bf16.mxu1 %v8863_v41  ;;  %v8928_v18 = vld [vmem:[%s8473_s10 + $0x78] sm:$0xff]  }
  0xb0   : > { %7364 = vmatprep.mubr.bf16.mxu0 %v3104_v19  ;;  %7089 = vmatpush3.bf16.msra.mxu1 %v8229_v60  ;;  %v3121_v60 = vrot.slane %v8225_v50, 2  ;;  %v8227_v19 = vld [vmem:[%s8473_s10 + $0x38] sm:$0xff]   ;;  %v8256_v50 = vld [vmem:[%s8473_s10 + $0xc8] sm:$0xff]  }
  0xb1   : > { %7090 = vmatprep.subr.bf16.mxu1 %v8235_v1 }
  0xb2   : > { %v3122_v4 = vsel %vm1223_vm1, %v3119_v8, %v3121_v60  ;;  %v1241_v60 = vrot.slane %v8895_v9, 2 }
  0xb4   : > { %7091 = vmatpush3.bf16.msra.mxu1 %v8235_v1  ;;  %v8230_v1 = vld [vmem:[%s8473_s10 + $0x40] sm:$0xff]  }
  0xb5   : > { %7092 = vmatprep.subr.bf16.mxu1 %v8241_v27 }
  0xb6   : > { %7033 = vmatmul.mubr.bf16.gmra.mrb[12].mxu1 %v8877_v39 }
  0xb7   : > { %7365 = vmatmul.mubr.bf16.gmra.mrb[40].mxu0 %v3106_v31  ;;  %7036 = vmatprep.mubr.bf16.mxu1 %v8881_v52  ;;  %v8239_v31 = vld [vmem:[%s8473_s10 + $0x70] sm:$0xff]  }
  0xb8   : > { %7368 = vmatprep.mubr.bf16.mxu0 %v3108_v32  ;;  %7093 = vmatpush3.bf16.msra.mxu1 %v8241_v27  ;;  %v8232_v27 = vld [vmem:[%s8473_s10 + $0x50] sm:$0xff]   ;;  %v8240_v32 = vld [vmem:[%s8473_s10 + $0x78] sm:$0xff]  }
  0xb9   : > { %7094 = vmatprep.subr.bf16.mxu1 %v8247_v38 }
  0xbc   : > { %7095 = vmatpush3.bf16.msra.mxu1 %v8247_v38  ;;  %v8242_v38 = vld [vmem:[%s8473_s10 + $0x80] sm:$0xff]  }
  0xbd   : > { %7156 = vmatprep.subr.bf16.mxu1 %v8887_v46 }
  0xbe   : > { %7037 = vmatmul.mubr.bf16.gmra.mrb[16].mxu1 %v8895_v9  ;;  %v1243_v9 = vrot.slane %v8899_v58, 2 }
  0xbf   : > { %7369 = vmatmul.mubr.bf16.gmra.mrb[44].mxu0 %v3110_v51  ;;  %7040 = vmatprep.mubr.bf16.mxu1 %v8899_v58  ;;  %v8249_v51 = vld [vmem:[%s8473_s10 + $0xa0] sm:$0xff]   ;;  %v1247_v58 = vrot.slane %v8911_v3, 2 }
  0xc0   : > { %7372 = vmatprep.mubr.bf16.mxu0 %v3112_v53  ;;  %v8250_v53 = vld [vmem:[%s8473_s10 + $0xa8] sm:$0xff]  }
  0xc6   : > { %7041 = vmatmul.mubr.bf16.gmra.mrb[20].mxu1 %v8907_v44 }
  0xc7   : > { %7373 = vmatmul.mubr.bf16.gmra.mrb[48].mxu0 %v3114_v0  ;;  %7044 = vmatprep.mubr.bf16.mxu1 %v8911_v3  ;;  %v1253_v3 = vrot.slane %v8928_v18, 2 }
  0xc8   : > { %7376 = vmatprep.mubr.bf16.mxu0 %v3116_v40  ;;  %v8255_v40 = vld [vmem:[%s8473_s10 + $0xc0] sm:$0xff]  }
  0xce   : > { %7045 = vmatmul.mubr.bf16.gmra.mrb[24].mxu1 %v8918_v14 }
  0xcf   : > { %7377 = vmatmul.mubr.bf16.gmra.mrb[52].mxu0 %v3118_v17  ;;  %7048 = vmatprep.mubr.bf16.mxu1 %v8922_v15 }
  0xd0   : > { %7380 = vmatprep.mubr.bf16.mxu0 %v3120_v57  ;;  %v8259_v57 = vld [vmem:[%s8473_s10 + $0xd0] sm:$0xff]  }
  0xd6   : > { %7049 = vmatmul.mubr.bf16.gmra.mrb[28].mxu1 %v8928_v18 }
  0xd7   : > { %7381 = vmatmul.mubr.bf16.gmra.mrb[56].mxu0 %v3122_v4  ;;  %7052 = vmatprep.mubr.bf16.mxu1 %v8670_v43  ;;  %v8238_v43 = vld [vmem:[%s9592_s1 + $0x1d0] sm:$0xff]  }
  0xd8   : > { %7400 = vmatprep.mubr.bf16.mxu0 %v8226_v16  ;;  %v8289_v4 = vld [vmem:[%s9592_s1 + $0xf0] sm:$0xff]  }
  0xde   : > { %7053 = vmatmul.mubr.bf16.gmra.mrb[32].mxu1 %v8676_v47  ;;  %v8244_v47 = vld [vmem:[%s9592_s1 + $0x1d8] sm:$0xff]  }
  0xdf   : > { %7401 = vmatmul.mubr.bf16.vlgmr.msra.gmra.mrb[0].mxu0 %v8227_v19  ;;  %7056 = vmatprep.mubr.bf16.mxu1 %v8697_v59  ;;  %v8251_v59 = vld [vmem:[%s9592_s1 + $0x1e0] sm:$0xff]   ;;  %v8260_v19 = vld [vmem:[%s8473_s10 + $0xd8] sm:$0xff]  }
  0xe0   : > { %7461 = vmatpush3.bf16.msra.mxu0 %v8782_v33  ;;  %7404 = vmatprep.mubr.bf16.mxu0 %v8230_v1  ;;  %v8234_v33 = vld [vmem:[%s8473_s10 + $0x58] sm:$0xff]  }
  0xe1   : > { %7462 = vmatprep.subr.bf16.mxu0 %v8233_v23 }
  0xe4   : > { %7463 = vmatpush3.bf16.msra.mxu0 %v8233_v23  ;;  %v8261_v23 = vld [vmem:[%s8473_s10 + $0xe0] sm:$0xff]  }
  0xe5   : > { %7464 = vmatprep.subr.bf16.mxu0 %v8238_v43 }
  0xe6   : > { %7057 = vmatmul.mubr.bf16.gmra.mrb[36].mxu1 %v8704_v63  ;;  %v8257_v63 = vld [vmem:[%s9592_s1 + $0x1e8] sm:$0xff]  }
  0xe7   : > { %7405 = vmatmul.mubr.bf16.gmra.mrb[4].mxu0 %v8231_v24  ;;  %7060 = vmatprep.mubr.bf16.mxu1 %v8712_v5  ;;  %v8263_v5 = vld [vmem:[%s9592_s1 + $0x1f0] sm:$0xff]   ;;  %v1244_v24 = vsel %vm1223_vm1, %v1241_v60, %v1243_v9 }
  0xe8   : > { %7408 = vmatprep.mubr.bf16.mxu0 %v8232_v27  ;;  %7465 = vmatpush3.bf16.msra.mxu0 %v8238_v43  ;;  %v1245_v43 = vrot.slane %v8907_v44, 2  ;;  %v8262_v27 = vld [vmem:[%s8473_s10 + $0xe8] sm:$0xff]   ;;  %v1249_v44 = vrot.slane %v8918_v14, 2  ;;  %v9059_v14 = vld [vmem:[%s8473_s10 + $0x34] sm:$0xf] }
  0xe9   : > { %7466 = vmatprep.subr.bf16.mxu0 %v8244_v47 }
  0xec   : > { %7467 = vmatpush3.bf16.msra.mxu0 %v8244_v47  ;;  %v1246_v47 = vsel %vm1223_vm1, %v1243_v9, %v1245_v43  ;;  %v8373_v9 = vld [vmem:[%s8473_s10 + $0xb0] sm:$0xff]  }
  0xed   : > { %7468 = vmatprep.subr.bf16.mxu0 %v8251_v59 }
  0xee   : > { %7061 = vmatmul.mubr.bf16.gmra.mrb[40].mxu1 %v8716_v7  ;;  %v8269_v7 = vld [vmem:[%s9592_s1 + $0x1f8] sm:$0xff]  }
  0xef   : > { %7409 = vmatmul.mubr.bf16.gmra.mrb[8].mxu0 %v8234_v33  ;;  %7064 = vmatprep.mubr.bf16.mxu1 %v8730_v13  ;;  %v8973_v13 = vld [vmem:[%s9592_s1 + $0x200] sm:$0xff]  }
  0xf0   : > { %7412 = vmatprep.mubr.bf16.mxu0 %v8236_v30  ;;  %7469 = vmatpush3.bf16.msra.mxu0 %v8251_v59  ;;  %v8265_v59 = vld [vmem:[%s8473_s10 + $0xf0] sm:$0xff]   ;;  %v9046_v33 = vld [vmem:[%s9592_s1 + $0x100] sm:$0xff]   ;;  %v1248_v30 = vsel %vm1223_vm1, %v1245_v43, %v1247_v58  ;;  %v1267_v43 = vrot.slane %v8373_v9, 2 }
  0xf1   : > { %7470 = vmatprep.subr.bf16.mxu0 %v8257_v63 }
  0xf4   : > { %7471 = vmatpush3.bf16.msra.mxu0 %v8257_v63  ;;  %v8266_v63 = vld [vmem:[%s8473_s10 + $0xf8] sm:$0xff]  }
  0xf5   : > { %7472 = vmatprep.subr.bf16.mxu0 %v8263_v5 }
  0xf6   : > { %7065 = vmatmul.mubr.bf16.gmra.mrb[44].mxu1 %v8734_v49  ;;  %v1198_v49 = vld [vmem:[%s8473_s10] sm:$0xc] }
  0xf7   : > { %7413 = vmatmul.mubr.bf16.gmra.mrb[12].mxu0 %v8237_v28  ;;  %7068 = vmatprep.mubr.bf16.mxu1 %v8749_v22  ;;  %v8243_v22 = vld [vmem:[%s8473_s10 + $0x88] sm:$0xff]   ;;  %v6125_v45 = vcombine.low %v1198_v49, %v8807_v56  ;;  %v1227_v56 = vrot.slane %v8826_v34, 2  ;;  %v1233_v34 = vrot.slane %v8859_v10, 2  ;;  %v1235_v10 = vrot.slane %v8863_v41, 2  ;;  %v8267_v28 = vld [vmem:[%s8473_s10 + $0x100] sm:$0xff]  }
  0xf8   : > { %7416 = vmatprep.mubr.bf16.mxu0 %v8239_v31  ;;  %7473 = vmatpush3.bf16.msra.mxu0 %v8263_v5  ;;  %v8283_v41 = vld [vmem:[%s9592_s1 + $0xe8] sm:$0xff]   ;;  %v1250_v5 = vsel %vm1223_vm1, %v1247_v58, %v1249_v44  ;;  %v1251_v31 = vrot.slane %v8922_v15, 2  ;;  %v8367_v15 = vld [vmem:[%s8473_s10 + $0x80] sm:$0xff]  }
  0xf9   : > { %7474 = vmatprep.subr.bf16.mxu0 %v8269_v7  ;;  %v1224_v48 = vrot.slane %v6125_v45, 2  ;;  %v1236_v8 = vsel %vm1223_vm1, %v1233_v34, %v1235_v10  ;;  %v9067_v45 = vld [vmem:[%s8473_s10 + $0x38] sm:$0xff]   ;;  %v1255_v18 = vrot.slane %v8367_v15, 2  ;;  %v8301_v58 = vld [vmem:[%s9592_s1 + $0x220] sm:$0xff]   ;;  %v8319_v15 = vld [vmem:[%s9592_s1 + $0x230] sm:$0xff]  }
  0xfa   : > { %v1254_v49 = vsel %vm1223_vm1, %v1251_v31, %v1253_v3 }
  0xfc   : > { %7475 = vmatpush3.bf16.msra.mxu0 %v8269_v7  ;;  %v4172_v7 = vld [vmem:[%s8473_s10 + $0x30] sm:$0xe] }
  0xfd   : > { %7536 = vmatprep.subr.bf16.mxu0 %v8973_v13 }
  0xfe   : > { %7069 = vmatmul.mubr.bf16.gmra.mrb[48].mxu1 %v8753_v20  ;;  %v1225_v20 = vrot.slane %v8821_v2, 2 }
  0xff   : > { %7417 = vmatmul.mubr.bf16.gmra.mrb[16].mxu0 %v8240_v32  ;;  %7072 = vmatprep.mubr.bf16.mxu1 %v8766_v26  ;;  %v1252_v32 = vsel %vm1223_vm1, %v1249_v44, %v1251_v31  ;;  %v9135_v31 = vld [vmem:[%s8473_s10 + $0x78] sm:$0xff]  }
 0x100   : > { %7420 = vmatprep.mubr.bf16.mxu0 %v8242_v38  ;;  %v1226_v26 = vsel %vm1223_vm1, %v1224_v48, %v1225_v20  ;;  %v8268_v38 = vld [vmem:[%s8473_s10 + $0x108] sm:$0xff]  }
 0x101   : > { %v8368_v48 = vld [vmem:[%s8473_s10 + $0x88] sm:$0xff]  }
 0x106   : > { %7073 = vmatmul.mubr.bf16.gmra.mrb[52].mxu1 %v8770_v25  ;;  %v1229_v25 = vrot.slane %v8841_v11, 2  ;;  %v8264_v11 = vld [vmem:[%s9592_s1 + $0xd0] sm:$0xff]  }
 0x107   : > { %7421 = vmatmul.mubr.bf16.gmra.mrb[20].mxu0 %v8243_v22  ;;  %7076 = vmatprep.mubr.bf16.mxu1 %v8786_v36  ;;  %v1228_v36 = vsel %vm1223_vm1, %v1225_v20, %v1227_v56  ;;  %v8271_v22 = vld [vmem:[%s8473_s10 + $0x110] sm:$0xff]   ;;  %v1257_v20 = vrot.slane %v8368_v48, 2 }
 0x108   : > { %7424 = vmatprep.mubr.bf16.mxu0 %v8245_v42  ;;  %v1230_v2 = vsel %vm1223_vm1, %v1227_v56, %v1229_v25  ;;  %v6340_v42 = vcombine.low %v4172_v7, %v9059_v14  ;;  %v8272_v56 = vld [vmem:[%s8473_s10 + $0x118] sm:$0xff]   ;;  %v8375_v7 = vld [vmem:[%s8473_s10 + $0xc0] sm:$0xff]  }
 0x10e   : > { %7077 = vmatmul.mubr.bf16.gmra.mrb[56].mxu1 %v8789_v37  ;;  %v1231_v37 = vrot.slane %v8845_v12, 2  ;;  %v8270_v12 = vld [vmem:[%s9592_s1 + $0xd8] sm:$0xff]  }
 0x10f   : > { %7425 = vmatmul.mubr.bf16.gmra.mrb[24].mxu0 %v8246_v55  ;;  %7096 = vmatprep.mubr.bf16.mxu1 %v1226_v26  ;;  %v4403_v55 = vrot.slane %v6340_v42, 1  ;;  %v4404_v26 = vrot.slane %v9067_v45, 1  ;;  %v4420_v42 = vrot.slane %v9135_v31, 1 }
 0x110   : > { %7428 = vmatprep.mubr.bf16.mxu0 %v8249_v51  ;;  %v1232_v29 = vsel %vm1223_vm1, %v1229_v25, %v1231_v37  ;;  %v1234_v0 = vsel %vm1223_vm1, %v1231_v37, %v1233_v34  ;;  %v1256_v51 = vsel %vm1223_vm1, %v1253_v3, %v1255_v18  ;;  %v1258_v25 = vsel %vm1223_vm1, %v1255_v18, %v1257_v20  ;;  %v8370_v34 = vld [vmem:[%s8473_s10 + $0x98] sm:$0xff]   ;;  %v8310_v3 = vld [vmem:[%s9592_s1 + $0x228] sm:$0xff]  }
 0x116   : > { %7097 = vmatmul.mubr.bf16.vlgmr.msra.gmra.mrb[0].mxu1 %v1228_v36  ;;  %v9076_v36 = vld [vmem:[%s8473_s10 + $0x40] sm:$0xff]  }
 0x117   : > { %7429 = vmatmul.mubr.bf16.gmra.mrb[28].mxu0 %v8250_v53  ;;  %7100 = vmatprep.mubr.bf16.mxu1 %v1230_v2  ;;  %v4405_v53 = vsel %vm431_vm0, %v4403_v55, %v4404_v26  ;;  %v9080_v2 = vld [vmem:[%s8473_s10 + $0x48] sm:$0xff]   ;;  %v4406_v37 = vrot.slane %v9076_v36, 1  ;;  %v9151_v55 = vld [vmem:[%s8473_s10 + $0x80] sm:$0xff]  }
 0x118   : > { %7432 = vmatprep.mubr.bf16.mxu0 %v8252_v21  ;;  %7157 = vmatpush3.bf16.msra.mxu1 %v8887_v46  ;;  %v1237_v46 = vrot.slane %v8877_v39, 2  ;;  %v1239_v39 = vrot.slane %v8881_v52, 2  ;;  %v8296_v52 = vld [vmem:[%s9592_s1 + $0xf8] sm:$0xff]   ;;  %v8369_v21 = vld [vmem:[%s8473_s10 + $0x90] sm:$0xff]  }
 0x119   : > { %7158 = vmatprep.subr.bf16.mxu1 %v8258_v61 }
 0x11a   : > { %v1238_v17 = vsel %vm1223_vm1, %v1235_v10, %v1237_v46  ;;  %v1240_v16 = vsel %vm1223_vm1, %v1237_v46, %v1239_v39  ;;  %v1242_v1 = vsel %vm1223_vm1, %v1239_v39, %v1241_v60  ;;  %v9094_v46 = vld [vmem:[%s8473_s10 + $0x58] sm:$0xff]   ;;  %v8286_v60 = vld [vmem:[%s9592_s1 + $0x210] sm:$0xff]  }
 0x11b   : > { %v4412_v39 = vrot.slane %v9094_v46, 1 }
 0x11c   : > { %7159 = vmatpush3.bf16.msra.mxu1 %v8258_v61  ;;  %v1259_v61 = vrot.slane %v8369_v21, 2  ;;  %v4422_v21 = vrot.slane %v9151_v55, 1 }
 0x11d   : > { %7160 = vmatprep.subr.bf16.mxu1 %v8264_v11 }
 0x11e   : > { %7101 = vmatmul.mubr.bf16.gmra.mrb[4].mxu1 %v1232_v29  ;;  %v4408_v29 = vrot.slane %v9080_v2, 1 }
 0x11f   : > { %7433 = vmatmul.mubr.bf16.gmra.mrb[32].mxu0 %v8254_v62  ;;  %7104 = vmatprep.mubr.bf16.mxu1 %v1234_v0  ;;  %v1260_v62 = vsel %vm1223_vm1, %v1257_v20, %v1259_v61  ;;  %v4407_v0 = vsel %vm431_vm0, %v4404_v26, %v4406_v37 }
 0x120   : > { %7436 = vmatprep.mubr.bf16.mxu0 %v8255_v40  ;;  %7161 = vmatpush3.bf16.msra.mxu1 %v8264_v11  ;;  %v1261_v11 = vrot.slane %v8370_v34, 2  ;;  %v4409_v10 = vsel %vm431_vm0, %v4406_v37, %v4408_v29 }
 0x121   : > { %7162 = vmatprep.subr.bf16.mxu1 %v8270_v12 }
 0x122   : > { %v1262_v40 = vsel %vm1223_vm1, %v1259_v61, %v1261_v11  ;;  %v8378_v61 = vld [vmem:[%s8473_s10 + $0xd8] sm:$0xff]  }
 0x123   : > { %v1277_v37 = vrot.slane %v8378_v61, 2 }
 0x124   : > { %7163 = vmatpush3.bf16.msra.mxu1 %v8270_v12  ;;  %v9090_v12 = vld [vmem:[%s8473_s10 + $0x50] sm:$0xff]  }
 0x125   : > { %7164 = vmatprep.subr.bf16.mxu1 %v8277_v6 }
 0x126   : > { %7105 = vmatmul.mubr.bf16.gmra.mrb[8].mxu1 %v1236_v8  ;;  %v8371_v8 = vld [vmem:[%s8473_s10 + $0xa0] sm:$0xff]  }
 0x127   : > { %7437 = vmatmul.mubr.bf16.gmra.mrb[36].mxu0 %v8256_v50  ;;  %7108 = vmatprep.mubr.bf16.mxu1 %v1238_v17  ;;  %v1263_v50 = vrot.slane %v8371_v8, 2  ;;  %v4410_v17 = vrot.slane %v9090_v12, 1 }
 0x128   : > { %7440 = vmatprep.mubr.bf16.mxu0 %v8259_v57  ;;  %7165 = vmatpush3.bf16.msra.mxu1 %v8277_v6  ;;  %v8281_v6 = vld [vmem:[%s9592_s1 + $0x208] sm:$0xff]  }
 0x129   : > { %7166 = vmatprep.subr.bf16.mxu1 %v8283_v41  ;;  %v8372_v57 = vld [vmem:[%s8473_s10 + $0xa8] sm:$0xff]  }
 0x12c   : > { %7167 = vmatpush3.bf16.msra.mxu1 %v8283_v41  ;;  %v1265_v41 = vrot.slane %v8372_v57, 2 }
 0x12d   : > { %7168 = vmatprep.subr.bf16.mxu1 %v8289_v4 }
 0x12e   : > { %7109 = vmatmul.mubr.bf16.gmra.mrb[12].mxu1 %v1240_v16  ;;  %v4411_v16 = vsel %vm431_vm0, %v4408_v29, %v4410_v17  ;;  %v1268_v44 = vsel %vm1223_vm1, %v1265_v41, %v1267_v43  ;;  %v4423_v29 = vsel %vm431_vm0, %v4420_v42, %v4422_v21 }
 0x12f   : > { %7441 = vmatmul.mubr.bf16.gmra.mrb[40].mxu0 %v8260_v19  ;;  %7112 = vmatprep.mubr.bf16.mxu1 %v1242_v1  ;;  %v9111_v19 = vld [vmem:[%s8473_s10 + $0x60] sm:$0xff]   ;;  %v4413_v1 = vsel %vm431_vm0, %v4410_v17, %v4412_v39  ;;  %v8380_v17 = vld [vmem:[%s8473_s10 + $0xe8] sm:$0xff]  }
 0x130   : > { %7444 = vmatprep.mubr.bf16.mxu0 %v8261_v23  ;;  %7169 = vmatpush3.bf16.msra.mxu1 %v8289_v4  ;;  %v1264_v4 = vsel %vm1223_vm1, %v1261_v11, %v1263_v50  ;;  %v9115_v23 = vld [vmem:[%s8473_s10 + $0x68] sm:$0xff]   ;;  %v1281_v57 = vrot.slane %v8380_v17, 2 }
 0x131   : > { %7170 = vmatprep.subr.bf16.mxu1 %v8296_v52 }
 0x134   : > { %7171 = vmatpush3.bf16.msra.mxu1 %v8296_v52  ;;  %v8292_v52 = vld [vmem:[%s9592_s1 + $0x218] sm:$0xff]  }
 0x135   : > { %7612 = vmatprep.subr.bf16.mxu1 %v9046_v33 }
 0x136   : > { %7113 = vmatmul.mubr.bf16.gmra.mrb[16].mxu1 %v1244_v24  ;;  %v4414_v24 = vrot.slane %v9111_v19, 1 }
 0x137   : > { %7445 = vmatmul.mubr.bf16.gmra.mrb[44].mxu0 %v8262_v27  ;;  %7116 = vmatprep.mubr.bf16.mxu1 %v1246_v47  ;;  %v8374_v27 = vld [vmem:[%s8473_s10 + $0xb8] sm:$0xff]  }
 0x138   : > { %7448 = vmatprep.mubr.bf16.mxu0 %v8265_v59  ;;  %v1269_v47 = vrot.slane %v8374_v27, 2  ;;  %v4416_v59 = vrot.slane %v9115_v23, 1 }
 0x13e   : > { %7117 = vmatmul.mubr.bf16.gmra.mrb[20].mxu1 %v1248_v30  ;;  %v4415_v30 = vsel %vm431_vm0, %v4412_v39, %v4414_v24 }
 0x13f   : > { %7449 = vmatmul.mubr.bf16.gmra.mrb[48].mxu0 %v8266_v63  ;;  %7120 = vmatprep.mubr.bf16.mxu1 %v1250_v5  ;;  %v1270_v63 = vsel %vm1223_vm1, %v1267_v43, %v1269_v47  ;;  %v9131_v5 = vld [vmem:[%s8473_s10 + $0x70] sm:$0xff]  }
 0x140   : > { %7452 = vmatprep.mubr.bf16.mxu0 %v8267_v28  ;;  %v4417_v28 = vsel %vm431_vm0, %v4414_v24, %v4416_v59 }
 0x146   : > { %7121 = vmatmul.mubr.bf16.gmra.mrb[24].mxu1 %v1252_v32  ;;  %v1271_v32 = vrot.slane %v8375_v7, 2  ;;  %v8302_v7 = vld [vmem:[%s8473_s10 + $0x28] sm:$0xff]  }
 0x147   : > { %7453 = vmatmul.mubr.bf16.gmra.mrb[52].mxu0 %v8268_v38  ;;  %7124 = vmatprep.mubr.bf16.mxu1 %v1254_v49  ;;  %v4418_v38 = vrot.slane %v9131_v5, 1  ;;  %v8376_v49 = vld [vmem:[%s8473_s10 + $0xc8] sm:$0xff]  }
 0x148   : > { %7456 = vmatprep.mubr.bf16.mxu0 %v8271_v22  ;;  %v1273_v22 = vrot.slane %v8376_v49, 2  ;;  %v1272_v18 = vsel %vm1223_vm1, %v1269_v47, %v1271_v32  ;;  %v8297_v47 = vld [vmem:[%s8473_s10 + $0x18] sm:$0xff]  }
 0x149   : > { %v4419_v48 = vsel %vm431_vm0, %v4416_v59, %v4418_v38  ;;  %v4421_v26 = vsel %vm431_vm0, %v4418_v38, %v4420_v42  ;;  %v9207_v38 = vld [vmem:[%s8473_s10 + $0xc0] sm:$0xff]  }
 0x14a   : > { %v1274_v20 = vsel %vm1223_vm1, %v1271_v32, %v1273_v22  ;;  %v4438_v42 = vrot.slane %v9207_v38, 1 }
 0x14e   : > { %7125 = vmatmul.mubr.bf16.gmra.mrb[28].mxu1 %v1256_v51  ;;  %v9155_v51 = vld [vmem:[%s8473_s10 + $0x88] sm:$0xff]  }
 0x14f   : > { %7457 = vmatmul.mubr.bf16.gmra.mrb[56].mxu0 %v8272_v56  ;;  %7128 = vmatprep.mubr.bf16.mxu1 %v1258_v25  ;;  %v8328_v56 = vld [vmem:[%s9592_s1 + $0x238] sm:$0xff]   ;;  %v8377_v25 = vld [vmem:[%s8473_s10 + $0xd0] sm:$0xff]   ;;  %v4424_v34 = vrot.slane %v9155_v51, 1 }
 0x150   : > { %7476 = vmatprep.mubr.bf16.mxu0 %v4405_v53  ;;  %v1275_v53 = vrot.slane %v8377_v25, 2 }
 0x152   : > { %v1276_v11 = vsel %vm1223_vm1, %v1273_v22, %v1275_v53  ;;  %v9211_v22 = vld [vmem:[%s8473_s10 + $0xc8] sm:$0xff]  }
 0x156   : > { %7129 = vmatmul.mubr.bf16.gmra.mrb[32].mxu1 %v1260_v62  ;;  %v1278_v62 = vsel %vm1223_vm1, %v1275_v53, %v1277_v37  ;;  %v8382_v53 = vld [vmem:[%s9592_s1 + $0x110] sm:$0xff]  }
 0x157   : > { %7477 = vmatmul.mubr.bf16.vlgmr.msra.gmra.mrb[0].mxu0 %v4407_v0  ;;  %7132 = vmatprep.mubr.bf16.mxu1 %v1262_v40  ;;  %v9168_v0 = vld [vmem:[%s8473_s10 + $0x90] sm:$0xff]   ;;  %v4425_v40 = vsel %vm431_vm0, %v4422_v21, %v4424_v34 }
 0x158   : > { %7537 = vmatpush3.bf16.msra.mxu0 %v8973_v13  ;;  %7480 = vmatprep.mubr.bf16.mxu0 %v4409_v10  ;;  %v1266_v13 = vsel %vm1223_vm1, %v1263_v50, %v1265_v41  ;;  %v9172_v10 = vld [vmem:[%s8473_s10 + $0x98] sm:$0xff]   ;;  %v4426_v50 = vrot.slane %v9168_v0, 1 }
 0x159   : > { %7538 = vmatprep.subr.bf16.mxu0 %v8281_v6  ;;  %v4428_v41 = vrot.slane %v9172_v10, 1 }
 0x15c   : > { %7539 = vmatpush3.bf16.msra.mxu0 %v8281_v6  ;;  %v8379_v6 = vld [vmem:[%s8473_s10 + $0xe0] sm:$0xff]  }
 0x15d   : > { %7540 = vmatprep.subr.bf16.mxu0 %v8286_v60  ;;  %v1279_v8 = vrot.slane %v8379_v6, 2  ;;  %v9245_v6 = vld [vmem:[%s8473_s10 + $0xe8] sm:$0xff]  }
 0x15e   : > { %7133 = vmatmul.mubr.bf16.gmra.mrb[36].mxu1 %v1264_v4  ;;  %v4427_v4 = vsel %vm431_vm0, %v4424_v34, %v4426_v50  ;;  %v8308_v34 = vld [vmem:[%s8473_s10 + $0x40] sm:$0xff]   ;;  %v4448_v17 = vrot.slane %v9245_v6, 1 }
 0x15f   : > { %7481 = vmatmul.mubr.bf16.gmra.mrb[4].mxu0 %v4411_v16  ;;  %7136 = vmatprep.mubr.bf16.mxu1 %v1266_v13  ;;  %v1280_v39 = vsel %vm1223_vm1, %v1277_v37, %v1279_v8  ;;  %v1282_v16 = vsel %vm1223_vm1, %v1279_v8, %v1281_v57  ;;  %v9183_v13 = vld [vmem:[%s8473_s10 + $0xa0] sm:$0xff]   ;;  %v8383_v37 = vld [vmem:[%s9592_s1 + $0x118] sm:$0xff]  }
 0x160   : > { %7484 = vmatprep.mubr.bf16.mxu0 %v4413_v1  ;;  %7541 = vmatpush3.bf16.msra.mxu0 %v8286_v60  ;;  %v8294_v60 = vld [vmem:[%s8473_s10 + $0xf0] ss:$0 sps:$4 sm:$0x33]   ;;  %v4429_v1 = vsel %vm431_vm0, %v4426_v50, %v4428_v41  ;;  %v4430_v43 = vrot.slane %v9183_v13, 1  ;;  %v8384_v8 = vld [vmem:[%s9592_s1 + $0x120] sm:$0xff]  }
 0x161   : > { %7542 = vmatprep.subr.bf16.mxu0 %v8292_v52  ;;  %v1283_v9 = vrot.slane %v8294_v60, 2 }
 0x162   : > { %v4431_v59 = vsel %vm431_vm0, %v4428_v41, %v4430_v43  ;;  %v8313_v41 = vld [vmem:[%s8473_s10 + $0x50] sm:$0xff]  }
 0x163   : > { %v1284_v27 = vsel %vm1223_vm1, %v1281_v57, %v1283_v9  ;;  %v8385_v57 = vld [vmem:[%s9592_s1 + $0x128] sm:$0xff]   ;;  %v8386_v9 = vld [vmem:[%s9592_s1 + $0x130] sm:$0xff]  }
 0x164   : > { %7543 = vmatpush3.bf16.msra.mxu0 %v8292_v52  ;;  %v9187_v52 = vld [vmem:[%s8473_s10 + $0xa8] sm:$0xff]  }
 0x165   : > { %7544 = vmatprep.subr.bf16.mxu0 %v8301_v58  ;;  %v4432_v24 = vrot.slane %v9187_v52, 1 }
 0x166   : > { %7137 = vmatmul.mubr.bf16.gmra.mrb[40].mxu1 %v1268_v44 }
 0x167   : > { %7485 = vmatmul.mubr.bf16.gmra.mrb[8].mxu0 %v4415_v30  ;;  %7140 = vmatprep.mubr.bf16.mxu1 %v1270_v63  ;;  %v4433_v44 = vsel %vm431_vm0, %v4430_v43, %v4432_v24  ;;  %v9199_v30 = vld [vmem:[%s8473_s10 + $0xb8] sm:$0xff]  }
 0x168   : > { %7488 = vmatprep.mubr.bf16.mxu0 %v4417_v28  ;;  %7545 = vmatpush3.bf16.msra.mxu0 %v8301_v58  ;;  %v9195_v58 = vld [vmem:[%s8473_s10 + $0xb0] sm:$0xff]   ;;  %v4436_v28 = vrot.slane %v9199_v30, 1 }
 0x169   : > { %7546 = vmatprep.subr.bf16.mxu0 %v8310_v3  ;;  %v4434_v63 = vrot.slane %v9195_v58, 1 }
 0x16b   : > { %v4435_v32 = vsel %vm431_vm0, %v4432_v24, %v4434_v63  ;;  %v4437_v49 = vsel %vm431_vm0, %v4434_v63, %v4436_v28  ;;  %v9277_v63 = vld [vmem:[%s8473_s10 + $0x100] sm:$0xff]  }
 0x16c   : > { %7547 = vmatpush3.bf16.msra.mxu0 %v8310_v3  ;;  %v8299_v3 = vld [vmem:[%s8473_s10 + $0x20] sm:$0xff]  }
 0x16d   : > { %7548 = vmatprep.subr.bf16.mxu0 %v8319_v15 }
 0x16e   : > { %7141 = vmatmul.mubr.bf16.gmra.mrb[44].mxu1 %v1272_v18  ;;  %v8381_v18 = vld [vmem:[%s9592_s1 + $0x108] sm:$0xff]  }
 0x16f   : > { %7489 = vmatmul.mubr.bf16.gmra.mrb[12].mxu0 %v4419_v48  ;;  %7144 = vmatprep.mubr.bf16.mxu1 %v1274_v20  ;;  %v8304_v48 = vld [vmem:[%s8473_s10 + $0x30] sm:$0xff]   ;;  %v8306_v20 = vld [vmem:[%s8473_s10 + $0x38] sm:$0xff]  }
 0x170   : > { %7492 = vmatprep.mubr.bf16.mxu0 %v4421_v26  ;;  %7549 = vmatpush3.bf16.msra.mxu0 %v8319_v15  ;;  %v4440_v15 = vrot.slane %v9211_v22, 1  ;;  %v4439_v26 = vsel %vm431_vm0, %v4436_v28, %v4438_v42 }
 0x171   : > { %7550 = vmatprep.subr.bf16.mxu0 %v8328_v56 }
 0x172   : > { %v4441_v25 = vsel %vm431_vm0, %v4438_v42, %v4440_v15  ;;  %v8324_v42 = vld [vmem:[%s8473_s10 + $0x78] sm:$0xff]  }
 0x174   : > { %7551 = vmatpush3.bf16.msra.mxu0 %v8328_v56  ;;  %v9223_v56 = vld [vmem:[%s8473_s10 + $0xd0] sm:$0xff]  }
 0x175   : > { %v4442_v21 = vrot.slane %v9223_v56, 1 }
 0x176   : > { %7145 = vmatmul.mubr.bf16.gmra.mrb[48].mxu1 %v1276_v11  ;;  %v8311_v11 = vld [vmem:[%s8473_s10 + $0x48] sm:$0xff]  }
 0x177   : > { %7493 = vmatmul.mubr.bf16.gmra.mrb[16].mxu0 %v4423_v29  ;;  %7148 = vmatprep.mubr.bf16.mxu1 %v1278_v62  ;;  %v4443_v29 = vsel %vm431_vm0, %v4440_v15, %v4442_v21  ;;  %v9241_v62 = vld [vmem:[%s8473_s10 + $0xe0] sm:$0xff]  }
 0x178   : > { %7496 = vmatprep.mubr.bf16.mxu0 %v4425_v40  ;;  %v4446_v50 = vrot.slane %v9241_v62, 1 }
 0x17e   : > { %7149 = vmatmul.mubr.bf16.gmra.mrb[52].mxu1 %v1280_v39  ;;  %v8315_v39 = vld [vmem:[%s8473_s10 + $0x58] sm:$0xff]  }
 0x17f   : > { %7497 = vmatmul.mubr.bf16.gmra.mrb[20].mxu0 %v4427_v4  ;;  %7152 = vmatprep.mubr.bf16.mxu1 %v1282_v16  ;;  %v9259_v4 = vld [vmem:[%s8473_s10 + $0xf0] sm:$0xff]   ;;  %v4449_v16 = vsel %vm431_vm0, %v4446_v50, %v4448_v17 }
 0x180   : > { %7500 = vmatprep.mubr.bf16.mxu0 %v4429_v1  ;;  %v9263_v1 = vld [vmem:[%s8473_s10 + $0xf8] sm:$0xff]   ;;  %v4450_v43 = vrot.slane %v9259_v4, 1 }
 0x181   : > { %v4452_v24 = vrot.slane %v9263_v1, 1 }
 0x183   : > { %v4453_v28 = vsel %vm431_vm0, %v4450_v43, %v4452_v24 }
 0x186   : > { %7153 = vmatmul.mubr.bf16.gmra.mrb[56].mxu1 %v1284_v27  ;;  %v8387_v27 = vld [vmem:[%s9592_s1 + $0x138] sm:$0xff]  }
 0x187   : > { %7501 = vmatmul.mubr.bf16.gmra.mrb[24].mxu0 %v4431_v59  ;;  %7172 = vmatprep.mubr.bf16.mxu1 %v8297_v47  ;;  %v8317_v47 = vld [vmem:[%s8473_s10 + $0x60] sm:$0xff]   ;;  %v8320_v59 = vld [vmem:[%s8473_s10 + $0x68] sm:$0xff]  }
 0x188   : > { %7504 = vmatprep.mubr.bf16.mxu0 %v4433_v44  ;;  %v4451_v44 = vsel %vm431_vm0, %v4448_v17, %v4450_v43  ;;  %v8331_v17 = vld [vmem:[%s8473_s10 + $0x90] sm:$0xff]  }
 0x18e   : > { %7173 = vmatmul.mubr.bf16.vlgmr.msra.gmra.mrb[0].mxu1 %v8299_v3  ;;  %v9281_v3 = vld [vmem:[%s8473_s10 + $0x108] sm:$0xff]  }
 0x18f   : > { %7505 = vmatmul.mubr.bf16.gmra.mrb[28].mxu0 %v4435_v32  ;;  %7176 = vmatprep.mubr.bf16.mxu1 %v8302_v7  ;;  %v4454_v7 = vrot.slane %v9277_v63, 1  ;;  %v4456_v32 = vrot.slane %v9281_v3, 1 }
 0x190   : > { %7508 = vmatprep.mubr.bf16.mxu0 %v4437_v49  ;;  %7620 = vmatpush3.bf16.msra.mxu1 %v9046_v33  ;;  %v9227_v33 = vld [vmem:[%s8473_s10 + $0xd8] sm:$0xff]   ;;  %v8322_v49 = vld [vmem:[%s8473_s10 + $0x70] sm:$0xff]  }
 0x191   : > { %7613 = vmatprep.subr.bf16.mxu1 %v8381_v18  ;;  %v4444_v61 = vrot.slane %v9227_v33, 1  ;;  %v4455_v15 = vsel %vm431_vm0, %v4452_v24, %v4454_v7  ;;  %v4907_v24 = vrot.slane %v9090_v12, 2  ;;  %v8340_v12 = vld [vmem:[%s8473_s10 + $0xc8] sm:$0xff]  }
 0x193   : > { %v4445_v40 = vsel %vm431_vm0, %v4442_v21, %v4444_v61  ;;  %v4447_v60 = vsel %vm431_vm0, %v4444_v61, %v4446_v50  ;;  %v4875_v21 = vld [vmem:[%s8473_s10 + $0x30] sm:$0xc]  ;;  %v8329_v61 = vld [vmem:[%s8473_s10 + $0x88] sm:$0xff]   ;;  %v4901_v50 = vrot.slane %v9067_v45, 2 }
 0x194   : > { %7621 = vmatpush3.bf16.msra.mxu1 %v8381_v18  ;;  %v9289_v18 = vld [vmem:[%s8473_s10 + $0x110] sm:$0xff]  }
 0x195   : > { %7614 = vmatprep.subr.bf16.mxu1 %v8382_v53 }
 0x196   : > { %7177 = vmatmul.mubr.bf16.gmra.mrb[4].mxu1 %v8304_v48  ;;  %v4457_v48 = vsel %vm431_vm0, %v4454_v7, %v4456_v32  ;;  %v8339_v7 = vld [vmem:[%s8473_s10 + $0xc0] sm:$0xff]  }
 0x197   : > { %7509 = vmatmul.mubr.bf16.gmra.mrb[32].mxu0 %v4439_v26  ;;  %7180 = vmatprep.mubr.bf16.mxu1 %v8306_v20  ;;  %v9293_v20 = vld [vmem:[%s8473_s10 + $0x118] sm:$0xff]   ;;  %v4458_v26 = vrot.slane %v9289_v18, 1 }
 0x198   : > { %7512 = vmatprep.mubr.bf16.mxu0 %v4441_v25  ;;  %7622 = vmatpush3.bf16.msra.mxu1 %v8382_v53  ;;  %v4460_v25 = vrot.slane %v9293_v20, 1  ;;  %v8326_v53 = vld [vmem:[%s8473_s10 + $0x80] sm:$0xff]  }
 0x199   : > { %7615 = vmatprep.subr.bf16.mxu1 %v8383_v37 }
 0x19c   : > { %7623 = vmatpush3.bf16.msra.mxu1 %v8383_v37  ;;  %v4459_v37 = vsel %vm431_vm0, %v4456_v32, %v4458_v26 }
 0x19d   : > { %7616 = vmatprep.subr.bf16.mxu1 %v8384_v8 }
 0x19e   : > { %7181 = vmatmul.mubr.bf16.gmra.mrb[8].mxu1 %v8308_v34  ;;  %v8332_v34 = vld [vmem:[%s8473_s10 + $0x120] ss:$0 sps:$4 sm:$0x11]  }
 0x19f   : > { %7513 = vmatmul.mubr.bf16.gmra.mrb[36].mxu0 %v4443_v29  ;;  %7184 = vmatprep.mubr.bf16.mxu1 %v8311_v11  ;;  %v4461_v11 = vsel %vm431_vm0, %v4458_v26, %v4460_v25  ;;  %v6395_v29 = vcombine.low %v4875_v21, %v9059_v14  ;;  %v4903_v14 = vrot.slane %v9076_v36, 2  ;;  %v8338_v36 = vld [vmem:[%s8473_s10 + $0xb8] sm:$0xff]   ;;  %v4919_v26 = vrot.slane %v9151_v55, 2 }
 0x1a0   : > { %7516 = vmatprep.mubr.bf16.mxu0 %v4445_v40  ;;  %7624 = vmatpush3.bf16.msra.mxu1 %v8384_v8  ;;  %v4462_v40 = vrot.slane %v8332_v34, 1  ;;  %v8345_v34 = vld [vmem:[%s8473_s10 + $0xf0] sm:$0xff]   ;;  %v8346_v55 = vld [vmem:[%s8473_s10 + $0xf8] sm:$0xff]  }
 0x1a1   : > { %7617 = vmatprep.subr.bf16.mxu1 %v8385_v57  ;;  %v4900_v8 = vrot.slane %v6395_v29, 2  ;;  %v4904_v45 = vsel %vm1223_vm1, %v4901_v50, %v4903_v14  ;;  %v4927_v29 = vrot.slane %v9183_v13, 2  ;;  %v4931_v13 = vrot.slane %v9195_v58, 2 }
 0x1a2   : > { %v4935_v58 = vrot.slane %v9207_v38, 2  ;;  %v4939_v38 = vrot.slane %v9223_v56, 2  ;;  %v4943_v56 = vrot.slane %v9241_v62, 2  ;;  %v4947_v62 = vrot.slane %v9259_v4, 2 }
 0x1a3   : > { %v4951_v4 = vrot.slane %v9277_v63, 2  ;;  %v4955_v63 = vrot.slane %v9289_v18, 2 }
 0x1a4   : > { %7625 = vmatpush3.bf16.msra.mxu1 %v8385_v57  ;;  %v8333_v57 = vld [vmem:[%s8473_s10 + $0x98] sm:$0xff]  }
 0x1a5   : > { %7618 = vmatprep.subr.bf16.mxu1 %v8386_v9 }
 0x1a6   : > { %7185 = vmatmul.mubr.bf16.gmra.mrb[12].mxu1 %v8313_v41  ;;  %v4463_v41 = vsel %vm431_vm0, %v4460_v25, %v4462_v40  ;;  %v4921_v25 = vrot.slane %v9155_v51, 2  ;;  %v8388_v40 = vld [vmem:[%s8473_s10 + $0xa0] sm:$0xff]  }
 0x1a7   : > { %7517 = vmatmul.mubr.bf16.gmra.mrb[40].mxu0 %v4447_v60  ;;  %7188 = vmatprep.mubr.bf16.mxu1 %v8315_v39  ;;  %v4902_v39 = vsel %vm1223_vm1, %v4900_v8, %v4901_v50  ;;  %v4905_v60 = vrot.slane %v9080_v2, 2  ;;  %v2598_v8 = vrot.slane %v8388_v40, 1  ;;  %v8347_v50 = vld [vmem:[%s8473_s10 + $0x100] sm:$0xff]  }
 0x1a8   : > { %7520 = vmatprep.mubr.bf16.mxu0 %v4449_v16  ;;  %7626 = vmatpush3.bf16.msra.mxu1 %v8386_v9  ;;  %v8335_v16 = vld [vmem:[%s8473_s10 + $0xa0] sm:$0xff]   ;;  %v8336_v9 = vld [vmem:[%s8473_s10 + $0xa8] sm:$0xff]   ;;  %v4922_v21 = vsel %vm1223_vm1, %v4919_v26, %v4921_v25 }
 0x1a9   : > { %7619 = vmatprep.subr.bf16.mxu1 %v8387_v27  ;;  %v4906_v43 = vsel %vm1223_vm1, %v4903_v14, %v4905_v60  ;;  %v4908_v2 = vsel %vm1223_vm1, %v4905_v60, %v4907_v24  ;;  %v4933_v60 = vrot.slane %v9199_v30, 2 }
 0x1ac   : > { %7627 = vmatpush3.bf16.msra.mxu1 %v8387_v27  ;;  %v4909_v27 = vrot.slane %v9094_v46, 2 }
 0x1ae   : > { %7189 = vmatmul.mubr.bf16.gmra.mrb[16].mxu1 %v8317_v47  ;;  %v8337_v47 = vld [vmem:[%s8473_s10 + $0xb0] sm:$0xff]  }
 0x1af   : > { %7521 = vmatmul.mubr.bf16.gmra.mrb[44].mxu0 %v4451_v44  ;;  %7192 = vmatprep.mubr.bf16.mxu1 %v8320_v59  ;;  %v4910_v59 = vsel %vm1223_vm1, %v4907_v24, %v4909_v27  ;;  %v4911_v44 = vrot.slane %v9111_v19, 2  ;;  %v8342_v19 = vld [vmem:[%s8473_s10 + $0xd8] sm:$0xff]   ;;  %v8392_v24 = vld [vmem:[%s8473_s10 + $0xc0] sm:$0xff]  }
 0x1b0   : > { %7524 = vmatprep.mubr.bf16.mxu0 %v4453_v28  ;;  %v4913_v28 = vrot.slane %v9115_v23, 2  ;;  %v2606_v30 = vrot.slane %v8392_v24, 1 }
 0x1b1   : > { %v4912_v46 = vsel %vm1223_vm1, %v4909_v27, %v4911_v44  ;;  %v4937_v27 = vrot.slane %v9211_v22, 2 }
 0x1b2   : > { %v4914_v32 = vsel %vm1223_vm1, %v4911_v44, %v4913_v28  ;;  %v8393_v44 = vld [vmem:[%s8473_s10 + $0xc8] sm:$0xff]  }
 0x1b6   : > { %7193 = vmatmul.mubr.bf16.gmra.mrb[20].mxu1 %v8322_v49  ;;  %v4915_v49 = vrot.slane %v9131_v5, 2  ;;  %v8344_v5 = vld [vmem:[%s8473_s10 + $0xe8] sm:$0xff]  }
 0x1b7   : > { %7525 = vmatmul.mubr.bf16.gmra.mrb[48].mxu0 %v4455_v15  ;;  %7196 = vmatprep.mubr.bf16.mxu1 %v8324_v42  ;;  %v4917_v42 = vrot.slane %v9135_v31, 2  ;;  %v8341_v15 = vld [vmem:[%s8473_s10 + $0xd0] sm:$0xff]  }
 0x1b8   : > { %7528 = vmatprep.mubr.bf16.mxu0 %v4457_v48  ;;  %v4916_v23 = vsel %vm1223_vm1, %v4913_v28, %v4915_v49  ;;  %v2608_v28 = vrot.slane %v8393_v44, 1 }
 0x1b9   : > { %v4918_v48 = vsel %vm1223_vm1, %v4915_v49, %v4917_v42  ;;  %v4920_v31 = vsel %vm1223_vm1, %v4917_v42, %v4919_v26 }
 0x1be   : > { %7197 = vmatmul.mubr.bf16.gmra.mrb[24].mxu1 %v8326_v53  ;;  %v8343_v53 = vld [vmem:[%s8473_s10 + $0xe0] sm:$0xff]  }
 0x1bf   : > { %7529 = vmatmul.mubr.bf16.gmra.mrb[52].mxu0 %v4459_v37  ;;  %7200 = vmatprep.mubr.bf16.mxu1 %v8329_v61  ;;  %v4923_v61 = vrot.slane %v9168_v0, 2  ;;  %v4925_v37 = vrot.slane %v9172_v10, 2  ;;  %v4929_v0 = vrot.slane %v9187_v52, 2  ;;  %v8390_v52 = vld [vmem:[%s8473_s10 + $0xb0] sm:$0xff]  }
 0x1c0   : > { %7532 = vmatprep.mubr.bf16.mxu0 %v4461_v11  ;;  %v2602_v14 = vrot.slane %v8390_v52, 1 }
 0x1c1   : > { %v4924_v51 = vsel %vm1223_vm1, %v4921_v25, %v4923_v61  ;;  %v4926_v11 = vsel %vm1223_vm1, %v4923_v61, %v4925_v37  ;;  %v4928_v10 = vsel %vm1223_vm1, %v4925_v37, %v4927_v29  ;;  %v8398_v61 = vld [vmem:[%s8473_s10 + $0xf0] sm:$0xff]   ;;  %v4949_v37 = vrot.slane %v9263_v1, 2 }
 0x1c2   : > { %v4953_v1 = vrot.slane %v9281_v3, 2 }
 0x1c4   : > { %v4956_v52 = vsel %vm1223_vm1, %v4953_v1, %v4955_v63 }
 0x1c6   : > { %7201 = vmatmul.mubr.bf16.gmra.mrb[28].mxu1 %v8331_v17  ;;  %v2599_v17 = vsel %vm431_vm0, %v2596_v54, %v2598_v8  ;;  %v4932_v54 = vsel %vm1223_vm1, %v4929_v0, %v4931_v13 }
 0x1c7   : > { %7533 = vmatmul.mubr.bf16.gmra.mrb[56].mxu0 %v4463_v41  ;;  %7204 = vmatprep.mubr.bf16.mxu1 %v8333_v57  ;;  %v4930_v57 = vsel %vm1223_vm1, %v4927_v29, %v4929_v0  ;;  %v8389_v41 = vld [vmem:[%s8473_s10 + $0xa8] sm:$0xff]   ;;  %v8399_v29 = vld [vmem:[%s8473_s10 + $0xf8] sm:$0xff]  }
 0x1c8   : > { %7552 = vmatprep.mubr.bf16.mxu0 %v4902_v39  ;;  %v2600_v39 = vrot.slane %v8389_v41, 1  ;;  %v2620_v40 = vrot.slane %v8399_v29, 1  ;;  %v4954_v41 = vsel %vm1223_vm1, %v4951_v4, %v4953_v1 }
 0x1ca   : > { %v2601_v35 = vsel %vm431_vm0, %v2598_v8, %v2600_v39  ;;  %v8400_v8 = vld [vmem:[%s8473_s10 + $0x100] sm:$0xff]  }
 0x1cb   : > { %v2622_v0 = vrot.slane %v8400_v8, 1 }
 0x1ce   : > { %7205 = vmatmul.mubr.bf16.gmra.mrb[32].mxu1 %v8335_v16  ;;  %v2603_v16 = vsel %vm431_vm0, %v2600_v39, %v2602_v14 }
 0x1cf   : > { %7553 = vmatmul.mubr.bf16.vlgmr.msra.gmra.mrb[0].mxu0 %v4904_v45  ;;  %7208 = vmatprep.mubr.bf16.mxu1 %v8336_v9  ;;  %v4934_v9 = vsel %vm1223_vm1, %v4931_v13, %v4933_v60  ;;  %v8391_v45 = vld [vmem:[%s8473_s10 + $0xb8] sm:$0xff]   ;;  %v4957_v13 = vrot.slane %v9293_v20, 2 }
 0x1d0   : > { %7556 = vmatprep.mubr.bf16.mxu0 %v4906_v43  ;;  %v2604_v43 = vrot.slane %v8391_v45, 1 }
 0x1d6   : > { %7209 = vmatmul.mubr.bf16.gmra.mrb[36].mxu1 %v8337_v47  ;;  %v2605_v47 = vsel %vm431_vm0, %v2602_v14, %v2604_v43  ;;  %v8349_v14 = vld [vmem:[%s8473_s10 + $0x120] ss:$0 sps:$4 sm:$0x33]  }
 0x1d7   : > { %7557 = vmatmul.mubr.bf16.gmra.mrb[4].mxu0 %v4908_v2  ;;  %7212 = vmatprep.mubr.bf16.mxu1 %v8338_v36  ;;  %v4936_v36 = vsel %vm1223_vm1, %v4933_v60, %v4935_v58  ;;  %v2607_v2 = vsel %vm431_vm0, %v2604_v43, %v2606_v30  ;;  %v4958_v60 = vsel %vm1223_vm1, %v4955_v63, %v4957_v13 }
 0x1d8   : > { %7560 = vmatprep.mubr.bf16.mxu0 %v4910_v59  ;;  %v4938_v59 = vsel %vm1223_vm1, %v4935_v58, %v4937_v27 }
 0x1de   : > { %7213 = vmatmul.mubr.bf16.gmra.mrb[40].mxu1 %v8339_v7  ;;  %v8394_v7 = vld [vmem:[%s8473_s10 + $0xd0] sm:$0xff]  }
 0x1df   : > { %7561 = vmatmul.mubr.bf16.gmra.mrb[8].mxu0 %v4912_v46  ;;  %7216 = vmatprep.mubr.bf16.mxu1 %v8340_v12  ;;  %v2610_v22 = vrot.slane %v8394_v7, 1  ;;  %v4941_v12 = vrot.slane %v9227_v33, 2  ;;  %v2609_v46 = vsel %vm431_vm0, %v2606_v30, %v2608_v28 }
 0x1e0   : > { %7564 = vmatprep.mubr.bf16.mxu0 %v4914_v32  ;;  %v4940_v32 = vsel %vm1223_vm1, %v4937_v27, %v4939_v38 }
 0x1e1   : > { %v2611_v49 = vsel %vm431_vm0, %v2608_v28, %v2610_v22  ;;  %v4942_v42 = vsel %vm1223_vm1, %v4939_v38, %v4941_v12  ;;  %v4944_v25 = vsel %vm1223_vm1, %v4941_v12, %v4943_v56 }
 0x1e6   : > { %7217 = vmatmul.mubr.bf16.gmra.mrb[44].mxu1 %v8341_v15  ;;  %v8395_v15 = vld [vmem:[%s8473_s10 + $0xd8] sm:$0xff]  }
 0x1e7   : > { %7565 = vmatmul.mubr.bf16.gmra.mrb[12].mxu0 %v4916_v23  ;;  %7220 = vmatprep.mubr.bf16.mxu1 %v8342_v19  ;;  %v2612_v19 = vrot.slane %v8395_v15, 1  ;;  %v8396_v23 = vld [vmem:[%s8473_s10 + $0xe0] sm:$0xff]  }
 0x1e8   : > { %7568 = vmatprep.mubr.bf16.mxu0 %v4918_v48  ;;  %v2614_v33 = vrot.slane %v8396_v23, 1  ;;  %v4945_v48 = vrot.slane %v9245_v6, 2  ;;  %v2618_v6 = vrot.slane %v8398_v61, 1 }
 0x1e9   : > { %v2613_v26 = vsel %vm431_vm0, %v2610_v22, %v2612_v19 }
 0x1ee   : > { %7221 = vmatmul.mubr.bf16.gmra.mrb[48].mxu1 %v8343_v53  ;;  %v2615_v53 = vsel %vm431_vm0, %v2612_v19, %v2614_v33 }
 0x1ef   : > { %7569 = vmatmul.mubr.bf16.gmra.mrb[16].mxu0 %v4920_v31  ;;  %7224 = vmatprep.mubr.bf16.mxu1 %v8344_v5  ;;  %v4946_v5 = vsel %vm1223_vm1, %v4943_v56, %v4945_v48  ;;  %v8397_v31 = vld [vmem:[%s8473_s10 + $0xe8] sm:$0xff]  }
 0x1f0   : > { %7572 = vmatprep.mubr.bf16.mxu0 %v4922_v21  ;;  %v2616_v21 = vrot.slane %v8397_v31, 1 }
 0x1f6   : > { %7225 = vmatmul.mubr.bf16.gmra.mrb[52].mxu1 %v8345_v34  ;;  %v2617_v34 = vsel %vm431_vm0, %v2614_v33, %v2616_v21  ;;  %v5372_v33 = vlaneseq }
 0x1f7   : > { %7573 = vmatmul.mubr.bf16.gmra.mrb[20].mxu0 %v4924_v51  ;;  %7228 = vmatprep.mubr.bf16.mxu1 %v8346_v55  ;;  %v4948_v55 = vsel %vm1223_vm1, %v4945_v48, %v4947_v62  ;;  %v2619_v51 = vsel %vm431_vm0, %v2616_v21, %v2618_v6 }
 0x1f8   : > { %7576 = vmatprep.mubr.bf16.mxu0 %v4926_v11  ;;  %v4950_v11 = vsel %vm1223_vm1, %v4947_v62, %v4949_v37 }
 0x1fe   : > { %7229 = vmatmul.mubr.bf16.gmra.mrb[56].mxu1 %v8347_v50  ;;  %v2621_v50 = vsel %vm431_vm0, %v2618_v6, %v2620_v40 }
 0x1ff   : > { %7577 = vmatmul.mubr.bf16.gmra.mrb[24].mxu0 %v4928_v10  ;;  %7280 = vmatprep.mubr.bf16.mxu1 %v2599_v17  ;;  %v8348_v10 = vld [vmem:[%s8473_s10 + $0x108] ss:$0 sps:$4 sm:$0x11]   ;;  %v4952_v17 = vsel %vm1223_vm1, %v4949_v37, %v4951_v4  ;;  %s8109_s10 = smul.u32 240, %s9596_s13 }
 0x200   : > { %7580 = vmatprep.mubr.bf16.mxu0 %v4930_v57  ;;  %v2623_v57 = vsel %vm431_vm0, %v2620_v40, %v2622_v0  ;;  %v2624_v39 = vrot.slane %v8348_v10, 1 }
 0x201   : > { %s9467_s8 = scalar_lea.vmem %s9593_s2, %s8109_s10 }
 0x202   : > { %v2625_v3 = vsel %vm431_vm0, %v2622_v0, %v2624_v39 }
 0x206   : > { %7281 = vmatmul.mubr.bf16.vlgmr.msra.gmra.mrb[32].mxu1 %v2601_v35  ;;  %v4959_v35 = vrot.slane %v8349_v14, 2 }
 0x207   : > { %7581 = vmatmul.mubr.bf16.gmra.mrb[28].mxu0 %v4932_v54  ;;  %7284 = vmatprep.mubr.bf16.mxu1 %v2603_v16 }
 0x208   : > { %7584 = vmatprep.mubr.bf16.mxu0 %v4934_v9  ;;  %v4960_v54 = vsel %vm1223_vm1, %v4957_v13, %v4959_v35 }
 0x20e   : > { %7285 = vmatmul.mubr.bf16.gmra.mrb[36].mxu1 %v2605_v47 }
 0x20f   : > { %7585 = vmatmul.mubr.bf16.gmra.mrb[32].mxu0 %v4936_v36  ;;  %7288 = vmatprep.mubr.bf16.mxu1 %v2607_v2 }
 0x210   : > { %7588 = vmatprep.mubr.bf16.mxu0 %v4938_v59 }
 0x216   : > { %7289 = vmatmul.mubr.bf16.gmra.mrb[40].mxu1 %v2609_v46 }
 0x217   : > { %7589 = vmatmul.mubr.bf16.gmra.mrb[36].mxu0 %v4940_v32  ;;  %7292 = vmatprep.mubr.bf16.mxu1 %v2611_v49 }
 0x218   : > { %7592 = vmatprep.mubr.bf16.mxu0 %v4942_v42 }
 0x21e   : > { %7293 = vmatmul.mubr.bf16.gmra.mrb[44].mxu1 %v2613_v26 }
 0x21f   : > { %7593 = vmatmul.mubr.bf16.gmra.mrb[40].mxu0 %v4944_v25  ;;  %7296 = vmatprep.mubr.bf16.mxu1 %v2615_v53  ;;  %v5373_v25 = vshrl.u32 %v5372_v33, 7 }
 0x220   : > { %7596 = vmatprep.mubr.bf16.mxu0 %v4946_v5 }
 0x221   : > { %v9460_v31 = vadd.s32 16, %v5373_v25 }
 0x223   : > { %vm5378_vm2 = vcmp.lt.s32.totalorder %v9460_v31, 20 }
 0x226   : > { %7297 = vmatmul.mubr.bf16.gmra.mrb[48].mxu1 %v2617_v34 }
 0x227   : > { %7597 = vmatmul.mubr.bf16.gmra.mrb[44].mxu0 %v4948_v55  ;;  %7300 = vmatprep.mubr.bf16.mxu1 %v2619_v51 }
 0x228   : > { %7600 = vmatprep.mubr.bf16.mxu0 %v4950_v11 }
 0x22e   : > { %7301 = vmatmul.mubr.bf16.gmra.mrb[52].mxu1 %v2621_v50 }
 0x22f   : > { %7601 = vmatmul.mubr.bf16.gmra.mrb[48].mxu0 %v4952_v17  ;;  %7304 = vmatprep.mubr.bf16.mxu1 %v2623_v57 }
 0x230   : > { %7604 = vmatprep.mubr.bf16.mxu0 %v4954_v41 }
 0x236   : > { %7305 = vmatmul.mubr.bf16.gmra.mrb[56].mxu1 %v2625_v3 }
 0x237   : > { %7605 = vmatmul.mubr.bf16.gmra.mrb[52].mxu0 %v4956_v52 }
 0x238   : > { %7608 = vmatprep.mubr.bf16.mxu0 %v4958_v60 }
 0x23f   : > { %7609 = vmatmul.mubr.bf16.gmra.mrb[56].mxu0 %v4960_v54 }
 0x261   : > { %v7174_v16 = vpop.f32.mrb[0].mxu1 }
 0x262   : > { %v2035_v9 = vpop.f32.mrb[1].mxu1 }
 0x263   : > { %v7175_v45 = vpop.f32.mrb[2].mxu1 }
 0x264   : > { %v2038_v18 = vpop.f32.mrb[3].mxu1 }
 0x269   : > { %v7178_v43 = vpop.f32.mrb[4].mxu1 }
 0x26a   : > { %v2051_v20 = vpop.f32.mrb[5].mxu1 }
 0x26b   : > { %v7179_v58 = vpop.f32.mrb[6].mxu1 }
 0x26c   : > { %v9410_v24 = vpop.f32.mrb[7].mxu1 }
 0x271   : > { %v9412_v30 = vpop.f32.mrb[8].mxu1 }
 0x272   : > { %v9414_v27 = vpop.f32.mrb[9].mxu1 }
 0x273   : > { %v9416_v47 = vpop.f32.mrb[10].mxu1 }
 0x274   : > { %v9418_v36 = vpop.f32.mrb[11].mxu1 }
 0x279   : > { %v9420_v2 = vpop.f32.mrb[12].mxu1 }
 0x27a   : > { %v9422_v59 = vpop.f32.mrb[13].mxu1 }
 0x27b   : > { %v9424_v44 = vpop.f32.mrb[14].mxu1 }
 0x27c   : > { %v9426_v28 = vpop.f32.mrb[15].mxu1 }
 0x281   : > { %v9428_v38 = vpop.f32.mrb[16].mxu1 }
 0x282   : > { %v9430_v7 = vpop.f32.mrb[17].mxu1 }
 0x283   : > { %v9432_v22 = vpop.f32.mrb[18].mxu1 }
 0x284   : > { %v9434_v12 = vpop.f32.mrb[19].mxu1 }
 0x289   : > { %v9436_v46 = vpop.f32.mrb[20].mxu1 }
 0x28a   : > { %v9438_v32 = vpop.f32.mrb[21].mxu1 }
 0x28b   : > { %v9440_v49 = vpop.f32.mrb[22].mxu1 }
 0x28c   : > { %v9442_v42 = vpop.f32.mrb[23].mxu1 }
 0x291   : > { %v9444_v15 = vpop.f32.mrb[24].mxu1 }
 0x292   : > { %v9446_v19 = vpop.f32.mrb[25].mxu1 }
 0x293   : > { %v9448_v56 = vpop.f32.mrb[26].mxu1 }
 0x294   : > { %v9450_v23 = vpop.f32.mrb[27].mxu1 }
 0x299   : > { %v9452_v48 = vpop.f32.mrb[28].mxu1 }
 0x29a   : > { %v9454_v26 = vpop.f32.mrb[29].mxu1 }
 0x29b   : > { %v9456_v53 = vpop.f32.mrb[30].mxu1 }
 0x29c   : > { %v9458_v5 = vpop.f32.mrb[31].mxu1 }
 0x2a2   : > { %v7554_v21 = vpop.f32.mrb[0].mxu0 }
 0x2a3   : > { %v7628_v62 = vadd.f32 %v7554_v21, %v7174_v16  ;;  %v5073_v61 = vpop.f32.mrb[1].mxu0 }
 0x2a4   : > { %v7629_v6 = vadd.f32 %v5073_v61, %v2035_v9  ;;  %v7555_v37 = vpop.f32.mrb[2].mxu0 }
 0x2a5   : > { %v5381_v34 = vsel %vm5378_vm2, %v7628_v62, 0.0  ;;  %v7630_v55 = vadd.f32 %v7555_v37, %v7175_v45  ;;  %v5076_v51 = vpop.f32.mrb[3].mxu0 }
 0x2a6   : > { %v6469_v11 = vpack.c.bf16 %v5381_v34, %v5381_v34  ;;  %v7631_v29 = vadd.f32 %v5076_v51, %v2038_v18  ;;  %v5505_v4 = vmul.f32 %v7629_v6, %v7629_v6  ;;  %v5507_v50 = vmul.f32 %v5381_v34, %v5381_v34 }
 0x2a7   : > { %v6470_v40 = vpack.c.bf16 %v7630_v55, %v7630_v55  ;;  %v5508_v63 = vmul.f32 %v7630_v55, %v7630_v55 }
 0x2a8   : > { %5893 = vst [vmem:[%s9467_s8 + $0x8] sm:$0x3] %v6469_v11  ;;  %v5439_v8 = vadd.f32 %v7631_v29, %v7629_v6  ;;  %v5506_v0 = vmul.f32 %v7631_v29, %v7631_v29  ;;  %v6530_v1 = vpack.c.bf16 %v7631_v29, %v7629_v6 }
 0x2a9   : > { %5894 = vst [vmem:[%s9467_s8 + $0xc] sm:$0xf] %v6470_v40 }
 0x2aa   : > { %v5440_v10 = vadd.f32 %v5439_v8, %v5381_v34  ;;  %v5565_v17 = vadd.f32 %v5506_v0, %v5505_v4  ;;  %6531 = vst [vmem:[%s9467_s8] sm:$0xff] %v6530_v1   ;;  %v7558_v57 = vpop.f32.mrb[4].mxu0 }
 0x2ab   : > { %v7632_v41 = vadd.f32 %v7558_v57, %v7178_v43  ;;  %v5089_v39 = vpop.f32.mrb[5].mxu0 }
 0x2ac   : > { %v5566_v13 = vadd.f32 %v5565_v17, %v5507_v50  ;;  %v7633_v3 = vadd.f32 %v5089_v39, %v2051_v20  ;;  %v5441_v52 = vadd.f32 %v7630_v55, %v5440_v10  ;;  %v7559_v14 = vpop.f32.mrb[6].mxu0 }
 0x2ad   : > { %v7634_v60 = vadd.f32 %v7559_v14, %v7179_v58  ;;  %v5092_v35 = vpop.f32.mrb[7].mxu0  ;;  %v5511_v37 = vmul.f32 %v7632_v41, %v7632_v41 }
 0x2ae   : > { %v5442_v54 = vadd.f32 %v7633_v3, %v5441_v52  ;;  %v5509_v16 = vmul.f32 %v7633_v3, %v7633_v3  ;;  %v5567_v9 = vadd.f32 %v5566_v13, %v5508_v63  ;;  %v6471_v45 = vpack.c.bf16 %v7633_v3, %v7633_v3 }
 0x2af   : > { %v6535_v18 = vpack.c.bf16 %v7634_v60, %v7632_v41  ;;  %v7635_v33 = vadd.f32 %v5092_v35, %v9410_v24  ;;  %v5512_v11 = vmul.f32 %v7634_v60, %v7634_v60 }
 0x2b0   : > { %v5568_v25 = vadd.f32 %v5567_v9, %v5509_v16  ;;  %5895 = vst [vmem:[%s9467_s8 + $0x10] sm:$0xf] %v6471_v45 }
 0x2b1   : > { %6577 = vst [vmem:[%s9467_s8 + $0x18] sm:$0xff] %v6535_v18   ;;  %v5384_v43 = vsel %vm5378_vm2, %v7635_v33, 0.0 }
 0x2b2   : > { %v5443_v21 = vadd.f32 %v5442_v54, %v5384_v43  ;;  %v5510_v20 = vmul.f32 %v5384_v43, %v5384_v43  ;;  %v6472_v62 = vpack.c.bf16 %v5384_v43, %v5384_v43  ;;  %v7562_v61 = vpop.f32.mrb[8].mxu0 }
 0x2b3   : > { %v7636_v58 = vadd.f32 %v7562_v61, %v9412_v30  ;;  %v5105_v6 = vpop.f32.mrb[9].mxu0 }
 0x2b4   : > { %v5444_v34 = vadd.f32 %v7632_v41, %v5443_v21  ;;  %v5569_v55 = vadd.f32 %v5568_v25, %v5510_v20  ;;  %5896 = vst [vmem:[%s9467_s8 + $0x14] sm:$0x3] %v6472_v62  ;;  %v7637_v24 = vadd.f32 %v5105_v6, %v9414_v27  ;;  %v7563_v51 = vpop.f32.mrb[10].mxu0 }
 0x2b5   : > { %v6477_v29 = vpack.c.bf16 %v7636_v58, %v7636_v58  ;;  %v7638_v40 = vadd.f32 %v7563_v51, %v9416_v47  ;;  %v5108_v4 = vpop.f32.mrb[11].mxu0  ;;  %v5515_v14 = vmul.f32 %v7636_v58, %v7636_v58 }
 0x2b6   : > { %v5570_v8 = vadd.f32 %v5569_v55, %v5511_v37  ;;  %v5387_v30 = vsel %vm5378_vm2, %v7637_v24, 0.0  ;;  %v5445_v0 = vadd.f32 %v7634_v60, %v5444_v34  ;;  %v7639_v1 = vadd.f32 %v5108_v4, %v9418_v36 }
 0x2b7   : > { %5901 = vst [vmem:[%s9467_s8 + $0x28] sm:$0xf] %v6477_v29  ;;  %v5513_v50 = vmul.f32 %v5387_v30, %v5387_v30  ;;  %v6475_v10 = vpack.c.bf16 %v5387_v30, %v5387_v30  ;;  %v5390_v27 = vsel %vm5378_vm2, %v7638_v40, 0.0 }
 0x2b8   : > { %v5446_v17 = vadd.f32 %v5445_v0, %v5387_v30  ;;  %v5571_v57 = vadd.f32 %v5570_v8, %v5512_v11  ;;  %v6478_v41 = vpack.c.bf16 %v5390_v27, %v5390_v27  ;;  %v5514_v47 = vmul.f32 %v7639_v1, %v7639_v1 }
 0x2b9   : > { %5899 = vst [vmem:[%s9467_s8 + $0x20] sm:$0x3] %v6475_v10  ;;  %v6476_v39 = vpack.c.bf16 %v7639_v1, %v7639_v1  ;;  %v5516_v33 = vmul.f32 %v5390_v27, %v5390_v27 }
 0x2ba   : > { %v5572_v63 = vadd.f32 %v5571_v57, %v5513_v50  ;;  %5902 = vst [vmem:[%s9467_s8 + $0x2c] sm:$0x3] %v6478_v41  ;;  %v5447_v13 = vadd.f32 %v7639_v1, %v5446_v17  ;;  %v7566_v3 = vpop.f32.mrb[12].mxu0 }
 0x2bb   : > { %5900 = vst [vmem:[%s9467_s8 + $0x24] sm:$0xf] %v6476_v39  ;;  %v7640_v52 = vadd.f32 %v7566_v3, %v9420_v2  ;;  %v5121_v36 = vpop.f32.mrb[13].mxu0 }
 0x2bc   : > { %v5448_v60 = vadd.f32 %v7636_v58, %v5447_v13  ;;  %v5573_v35 = vadd.f32 %v5572_v63, %v5514_v47  ;;  %v7641_v54 = vadd.f32 %v5121_v36, %v9422_v59  ;;  %v7567_v16 = vpop.f32.mrb[14].mxu0 }
 0x2bd   : > { %v5393_v9 = vsel %vm5378_vm2, %v7640_v52, 0.0  ;;  %v7642_v45 = vadd.f32 %v7567_v16, %v9424_v44  ;;  %v5124_v18 = vpop.f32.mrb[15].mxu0 }
 0x2be   : > { %v5574_v25 = vadd.f32 %v5573_v35, %v5515_v14  ;;  %v6481_v43 = vpack.c.bf16 %v5393_v9, %v5393_v9  ;;  %v5449_v2 = vadd.f32 %v5448_v60, %v5390_v27  ;;  %v5517_v21 = vmul.f32 %v7641_v54, %v7641_v54 }
 0x2bf   : > { %v6482_v20 = vpack.c.bf16 %v7642_v45, %v7642_v45  ;;  %v7643_v62 = vadd.f32 %v5124_v18, %v9426_v28  ;;  %v5519_v51 = vmul.f32 %v5393_v9, %v5393_v9  ;;  %v5520_v4 = vmul.f32 %v7642_v45, %v7642_v45 }
 0x2c0   : > { %5905 = vst [vmem:[%s9467_s8 + $0x38] sm:$0x3] %v6481_v43  ;;  %v5450_v61 = vadd.f32 %v7641_v54, %v5449_v2  ;;  %v5575_v58 = vadd.f32 %v5574_v25, %v5516_v33 }
 0x2c1   : > { %5906 = vst [vmem:[%s9467_s8 + $0x3c] sm:$0xf] %v6482_v20  ;;  %v5518_v59 = vmul.f32 %v7643_v62, %v7643_v62  ;;  %v6540_v6 = vpack.c.bf16 %v7643_v62, %v7641_v54 }
 0x2c2   : > { %v5576_v37 = vadd.f32 %v5575_v58, %v5517_v21  ;;  %v5451_v34 = vadd.f32 %v7643_v62, %v5450_v61  ;;  %v7570_v55 = vpop.f32.mrb[16].mxu0 }
 0x2c3   : > { %6578 = vst [vmem:[%s9467_s8 + $0x30] sm:$0xff] %v6540_v6   ;;  %v7644_v44 = vadd.f32 %v7570_v55, %v9428_v38  ;;  %v5137_v24 = vpop.f32.mrb[17].mxu0 }
 0x2c4   : > { %v5452_v11 = vadd.f32 %v5451_v34, %v5393_v9  ;;  %v5577_v29 = vadd.f32 %v5576_v37, %v5518_v59  ;;  %v7645_v28 = vadd.f32 %v5137_v24, %v9430_v7  ;;  %v7571_v40 = vpop.f32.mrb[18].mxu0 }
 0x2c5   : > { %v7646_v8 = vadd.f32 %v7571_v40, %v9432_v22  ;;  %v5140_v30 = vpop.f32.mrb[19].mxu0  ;;  %v5523_v52 = vmul.f32 %v7644_v44, %v7644_v44 }
 0x2c6   : > { %v5578_v0 = vadd.f32 %v5577_v29, %v5519_v51  ;;  %v5453_v1 = vadd.f32 %v7642_v45, %v5452_v11  ;;  %v5521_v50 = vmul.f32 %v7645_v28, %v7645_v28  ;;  %v6483_v10 = vpack.c.bf16 %v7645_v28, %v7645_v28 }
 0x2c7   : > { %v6545_v27 = vpack.c.bf16 %v7646_v8, %v7644_v44  ;;  %v7647_v38 = vadd.f32 %v5140_v30, %v9434_v12  ;;  %v5524_v35 = vmul.f32 %v7646_v8, %v7646_v8 }
 0x2c8   : > { %v5454_v17 = vadd.f32 %v7645_v28, %v5453_v1  ;;  %v5579_v57 = vadd.f32 %v5578_v0, %v5520_v4  ;;  %5907 = vst [vmem:[%s9467_s8 + $0x40] sm:$0xf] %v6483_v10 }
 0x2c9   : > { %6579 = vst [vmem:[%s9467_s8 + $0x48] sm:$0xff] %v6545_v27   ;;  %v5396_v7 = vsel %vm5378_vm2, %v7647_v38, 0.0 }
 0x2ca   : > { %v5580_v41 = vadd.f32 %v5579_v57, %v5521_v50  ;;  %v5455_v47 = vadd.f32 %v5454_v17, %v5396_v7  ;;  %v5522_v39 = vmul.f32 %v5396_v7, %v5396_v7  ;;  %v6484_v22 = vpack.c.bf16 %v5396_v7, %v5396_v7  ;;  %v7574_v63 = vpop.f32.mrb[20].mxu0 }
 0x2cb   : > { %v7648_v13 = vadd.f32 %v7574_v63, %v9436_v46  ;;  %v5153_v3 = vpop.f32.mrb[21].mxu0 }
 0x2cc   : > { %v5456_v36 = vadd.f32 %v7644_v44, %v5455_v47  ;;  %v5581_v12 = vadd.f32 %v5580_v41, %v5522_v39  ;;  %5908 = vst [vmem:[%s9467_s8 + $0x44] sm:$0x3] %v6484_v22  ;;  %v7649_v14 = vadd.f32 %v5153_v3, %v9438_v32  ;;  %v7575_v60 = vpop.f32.mrb[22].mxu0 }
 0x2cd   : > { %v6489_v54 = vpack.c.bf16 %v7648_v13, %v7648_v13  ;;  %v7650_v16 = vadd.f32 %v7575_v60, %v9440_v49  ;;  %v5156_v9 = vpop.f32.mrb[23].mxu0  ;;  %v5527_v37 = vmul.f32 %v7648_v13, %v7648_v13 }
 0x2ce   : > { %v5582_v45 = vadd.f32 %v5581_v12, %v5523_v52  ;;  %v5399_v46 = vsel %vm5378_vm2, %v7649_v14, 0.0  ;;  %v5457_v18 = vadd.f32 %v7646_v8, %v5456_v36  ;;  %v7651_v33 = vadd.f32 %v5156_v9, %v9442_v42 }
 0x2cf   : > { %5913 = vst [vmem:[%s9467_s8 + $0x58] sm:$0xf] %v6489_v54  ;;  %v5525_v25 = vmul.f32 %v5399_v46, %v5399_v46  ;;  %v6487_v43 = vpack.c.bf16 %v5399_v46, %v5399_v46  ;;  %v5402_v32 = vsel %vm5378_vm2, %v7650_v16, 0.0 }
 0x2d0   : > { %v5458_v2 = vadd.f32 %v5457_v18, %v5399_v46  ;;  %v5583_v21 = vadd.f32 %v5582_v45, %v5524_v35  ;;  %v6490_v20 = vpack.c.bf16 %v5402_v32, %v5402_v32  ;;  %v5526_v49 = vmul.f32 %v7651_v33, %v7651_v33 }
 0x2d1   : > { %5911 = vst [vmem:[%s9467_s8 + $0x50] sm:$0x3] %v6487_v43  ;;  %v6488_v62 = vpack.c.bf16 %v7651_v33, %v7651_v33  ;;  %v5528_v28 = vmul.f32 %v5402_v32, %v5402_v32 }
 0x2d2   : > { %v5584_v61 = vadd.f32 %v5583_v21, %v5525_v25  ;;  %5914 = vst [vmem:[%s9467_s8 + $0x5c] sm:$0x3] %v6490_v20  ;;  %v5459_v58 = vadd.f32 %v7651_v33, %v5458_v2  ;;  %v7578_v59 = vpop.f32.mrb[24].mxu0 }
 0x2d3   : > { %5912 = vst [vmem:[%s9467_s8 + $0x54] sm:$0xf] %v6488_v62  ;;  %v7652_v6 = vadd.f32 %v7578_v59, %v9444_v15  ;;  %v5169_v42 = vpop.f32.mrb[25].mxu0 }
 0x2d4   : > { %v5460_v34 = vadd.f32 %v7648_v13, %v5459_v58  ;;  %v5585_v55 = vadd.f32 %v5584_v61, %v5526_v49  ;;  %v7653_v44 = vadd.f32 %v5169_v42, %v9446_v19  ;;  %v7579_v24 = vpop.f32.mrb[26].mxu0 }
 0x2d5   : > { %v5405_v51 = vsel %vm5378_vm2, %v7652_v6, 0.0  ;;  %v7654_v11 = vadd.f32 %v7579_v24, %v9448_v56  ;;  %v5172_v29 = vpop.f32.mrb[27].mxu0 }
 0x2d6   : > { %v5586_v40 = vadd.f32 %v5585_v55, %v5527_v37  ;;  %v6493_v4 = vpack.c.bf16 %v5405_v51, %v5405_v51  ;;  %v5461_v15 = vadd.f32 %v5460_v34, %v5402_v32  ;;  %v5529_v8 = vmul.f32 %v7653_v44, %v7653_v44 }
 0x2d7   : > { %v6494_v30 = vpack.c.bf16 %v7654_v11, %v7654_v11  ;;  %v7655_v0 = vadd.f32 %v5172_v29, %v9450_v23  ;;  %v5531_v39 = vmul.f32 %v5405_v51, %v5405_v51  ;;  %v5532_v52 = vmul.f32 %v7654_v11, %v7654_v11 }
 0x2d8   : > { %5917 = vst [vmem:[%s9467_s8 + $0x68] sm:$0x3] %v6493_v4  ;;  %v5462_v1 = vadd.f32 %v7653_v44, %v5461_v15  ;;  %v5587_v50 = vadd.f32 %v5586_v40, %v5528_v28 }
 0x2d9   : > { %5918 = vst [vmem:[%s9467_s8 + $0x6c] sm:$0xf] %v6494_v30  ;;  %v5530_v19 = vmul.f32 %v7655_v0, %v7655_v0  ;;  %v6550_v10 = vpack.c.bf16 %v7655_v0, %v7653_v44  ;;  %v7282_v27 = vpop.f32.mrb[32].mxu1 }
 0x2da   : > { %v5588_v38 = vadd.f32 %v5587_v50, %v5529_v8  ;;  %v5463_v17 = vadd.f32 %v7655_v0, %v5462_v1  ;;  %v7582_v56 = vpop.f32.mrb[28].mxu0  ;;  %v2866_v57 = vpop.f32.mrb[33].mxu1 }
 0x2db   : > { %6580 = vst [vmem:[%s9467_s8 + $0x60] sm:$0xff] %v6550_v10   ;;  %v7656_v7 = vadd.f32 %v7582_v56, %v9452_v48  ;;  %v5185_v41 = vpop.f32.mrb[29].mxu0  ;;  %v7283_v47 = vpop.f32.mrb[34].mxu1 }
 0x2dc   : > { %v5464_v22 = vadd.f32 %v5463_v17, %v5405_v51  ;;  %v5589_v23 = vadd.f32 %v5588_v38, %v5530_v19  ;;  %v7657_v63 = vadd.f32 %v5185_v41, %v9454_v26  ;;  %v7583_v13 = vpop.f32.mrb[30].mxu0  ;;  %v2869_v3 = vpop.f32.mrb[35].mxu1 }
 0x2dd   : > { %v7658_v36 = vadd.f32 %v7583_v13, %v9456_v53  ;;  %v5188_v12 = vpop.f32.mrb[31].mxu0 }
 0x2de   : > { %v5590_v14 = vadd.f32 %v5589_v23, %v5531_v39  ;;  %v5465_v60 = vadd.f32 %v7654_v11, %v5464_v22  ;;  %v5533_v35 = vmul.f32 %v7657_v63, %v7657_v63  ;;  %v6495_v54 = vpack.c.bf16 %v7657_v63, %v7657_v63 }
 0x2df   : > { %v6555_v48 = vpack.c.bf16 %v7658_v36, %v7656_v7  ;;  %v7659_v16 = vadd.f32 %v5188_v12, %v9458_v5  ;;  %v5535_v5 = vmul.f32 %v7656_v7, %v7656_v7  ;;  %v5536_v6 = vmul.f32 %v7658_v36, %v7658_v36 }
 0x2e0   : > { %v5466_v9 = vadd.f32 %v7657_v63, %v5465_v60  ;;  %v5591_v45 = vadd.f32 %v5590_v14, %v5532_v52  ;;  %5919 = vst [vmem:[%s9467_s8 + $0x70] sm:$0xf] %v6495_v54 }
 0x2e1   : > { %6581 = vst [vmem:[%s9467_s8 + $0x78] sm:$0xff] %v6555_v48   ;;  %v5408_v26 = vsel %vm5378_vm2, %v7659_v16, 0.0  ;;  %v7286_v46 = vpop.f32.mrb[36].mxu1 }
 0x2e2   : > { %v5592_v18 = vadd.f32 %v5591_v45, %v5533_v35  ;;  %v5467_v33 = vadd.f32 %v5466_v9, %v5408_v26  ;;  %v5534_v53 = vmul.f32 %v5408_v26, %v5408_v26  ;;  %v6496_v25 = vpack.c.bf16 %v5408_v26, %v5408_v26  ;;  %v7586_v43 = vpop.f32.mrb[32].mxu0  ;;  %v2882_v32 = vpop.f32.mrb[37].mxu1 }
 0x2e3   : > { %v7660_v2 = vadd.f32 %v7586_v43, %v7282_v27  ;;  %v5201_v21 = vpop.f32.mrb[33].mxu0  ;;  %v7287_v20 = vpop.f32.mrb[38].mxu1 }
 0x2e4   : > { %v5468_v49 = vadd.f32 %v7656_v7, %v5467_v33  ;;  %v5593_v62 = vadd.f32 %v5592_v18, %v5534_v53  ;;  %5920 = vst [vmem:[%s9467_s8 + $0x74] sm:$0x3] %v6496_v25  ;;  %v7661_v61 = vadd.f32 %v5201_v21, %v2866_v57  ;;  %v7587_v58 = vpop.f32.mrb[34].mxu0  ;;  %v2885_v59 = vpop.f32.mrb[39].mxu1 }
 0x2e5   : > { %v6501_v42 = vpack.c.bf16 %v7660_v2, %v7660_v2  ;;  %v7662_v37 = vadd.f32 %v7587_v58, %v7283_v47  ;;  %v5204_v34 = vpop.f32.mrb[35].mxu0  ;;  %v5539_v56 = vmul.f32 %v7660_v2, %v7660_v2 }
 0x2e6   : > { %v5594_v55 = vadd.f32 %v5593_v62, %v5535_v5  ;;  %v5411_v44 = vsel %vm5378_vm2, %v7661_v61, 0.0  ;;  %v5469_v24 = vadd.f32 %v7658_v36, %v5468_v49  ;;  %v7663_v51 = vadd.f32 %v5204_v34, %v2869_v3 }
 0x2e7   : > { %5925 = vst [vmem:[%s9467_s8 + $0x88] sm:$0xf] %v6501_v42  ;;  %v5537_v11 = vmul.f32 %v5411_v44, %v5411_v44  ;;  %v6499_v29 = vpack.c.bf16 %v5411_v44, %v5411_v44  ;;  %v5414_v28 = vsel %vm5378_vm2, %v7662_v37, 0.0 }
 0x2e8   : > { %v5470_v40 = vadd.f32 %v5469_v24, %v5411_v44  ;;  %v5595_v4 = vadd.f32 %v5594_v55, %v5536_v6  ;;  %v6502_v15 = vpack.c.bf16 %v5414_v28, %v5414_v28  ;;  %v5538_v8 = vmul.f32 %v7663_v51, %v7663_v51 }
 0x2e9   : > { %5923 = vst [vmem:[%s9467_s8 + $0x80] sm:$0x3] %v6499_v29  ;;  %v6500_v30 = vpack.c.bf16 %v7663_v51, %v7663_v51  ;;  %v7290_v0 = vpop.f32.mrb[40].mxu1  ;;  %v5540_v13 = vmul.f32 %v5414_v28, %v5414_v28 }
 0x2ea   : > { %v5596_v1 = vadd.f32 %v5595_v4, %v5537_v11  ;;  %5926 = vst [vmem:[%s9467_s8 + $0x8c] sm:$0x3] %v6502_v15  ;;  %v5471_v50 = vadd.f32 %v7663_v51, %v5470_v40  ;;  %v7590_v19 = vpop.f32.mrb[36].mxu0  ;;  %v2898_v10 = vpop.f32.mrb[41].mxu1 }
 0x2eb   : > { %5924 = vst [vmem:[%s9467_s8 + $0x84] sm:$0xf] %v6500_v30  ;;  %v7664_v27 = vadd.f32 %v7590_v19, %v7286_v46  ;;  %v5217_v38 = vpop.f32.mrb[37].mxu0  ;;  %v7291_v17 = vpop.f32.mrb[42].mxu1 }
 0x2ec   : > { %v5472_v57 = vadd.f32 %v7660_v2, %v5471_v50  ;;  %v5597_v7 = vadd.f32 %v5596_v1, %v5538_v8  ;;  %v7665_v41 = vadd.f32 %v5217_v38, %v2882_v32  ;;  %v7591_v47 = vpop.f32.mrb[38].mxu0  ;;  %v2901_v39 = vpop.f32.mrb[43].mxu1 }
 0x2ed   : > { %v5417_v22 = vsel %vm5378_vm2, %v7664_v27, 0.0  ;;  %v7666_v23 = vadd.f32 %v7591_v47, %v7287_v20  ;;  %v5220_v63 = vpop.f32.mrb[39].mxu0 }
 0x2ee   : > { %v5598_v3 = vadd.f32 %v5597_v7, %v5539_v56  ;;  %v6505_v52 = vpack.c.bf16 %v5417_v22, %v5417_v22  ;;  %v5473_v36 = vadd.f32 %v5472_v57, %v5414_v28  ;;  %v5541_v12 = vmul.f32 %v7665_v41, %v7665_v41 }
 0x2ef   : > { %v6506_v14 = vpack.c.bf16 %v7666_v23, %v7666_v23  ;;  %v7667_v60 = vadd.f32 %v5220_v63, %v2885_v59  ;;  %v5543_v43 = vmul.f32 %v5417_v22, %v5417_v22  ;;  %v5544_v49 = vmul.f32 %v7666_v23, %v7666_v23 }
 0x2f0   : > { %5929 = vst [vmem:[%s9467_s8 + $0x98] sm:$0x3] %v6505_v52  ;;  %v5474_v35 = vadd.f32 %v7665_v41, %v5473_v36  ;;  %v5599_v54 = vadd.f32 %v5598_v3, %v5540_v13 }
 0x2f1   : > { %5930 = vst [vmem:[%s9467_s8 + $0x9c] sm:$0xf] %v6506_v14  ;;  %v5542_v48 = vmul.f32 %v7667_v60, %v7667_v60  ;;  %v6560_v16 = vpack.c.bf16 %v7667_v60, %v7665_v41  ;;  %v7294_v9 = vpop.f32.mrb[44].mxu1 }
 0x2f2   : > { %v5600_v45 = vadd.f32 %v5599_v54, %v5541_v12  ;;  %v5475_v26 = vadd.f32 %v7667_v60, %v5474_v35  ;;  %v7594_v46 = vpop.f32.mrb[40].mxu0  ;;  %v2914_v18 = vpop.f32.mrb[45].mxu1 }
 0x2f3   : > { %6582 = vst [vmem:[%s9467_s8 + $0x90] sm:$0xff] %v6560_v16   ;;  %v7668_v33 = vadd.f32 %v7594_v46, %v7290_v0  ;;  %v5233_v53 = vpop.f32.mrb[41].mxu0  ;;  %v7295_v25 = vpop.f32.mrb[46].mxu1 }
 0x2f4   : > { %v5476_v32 = vadd.f32 %v5475_v26, %v5417_v22  ;;  %v5601_v2 = vadd.f32 %v5600_v45, %v5542_v48  ;;  %v7669_v21 = vadd.f32 %v5233_v53, %v2898_v10  ;;  %v7595_v20 = vpop.f32.mrb[42].mxu0  ;;  %v2917_v5 = vpop.f32.mrb[47].mxu1 }
 0x2f5   : > { %v7670_v62 = vadd.f32 %v7595_v20, %v7291_v17  ;;  %v5236_v61 = vpop.f32.mrb[43].mxu0  ;;  %v5547_v1 = vmul.f32 %v7668_v33, %v7668_v33 }
 0x2f6   : > { %v5602_v58 = vadd.f32 %v5601_v2, %v5543_v43  ;;  %v5477_v59 = vadd.f32 %v7666_v23, %v5476_v32  ;;  %v5545_v6 = vmul.f32 %v7669_v21, %v7669_v21  ;;  %v6507_v42 = vpack.c.bf16 %v7669_v21, %v7669_v21 }
 0x2f7   : > { %v6565_v37 = vpack.c.bf16 %v7670_v62, %v7668_v33  ;;  %v7671_v34 = vadd.f32 %v5236_v61, %v2901_v39  ;;  %v5548_v17 = vmul.f32 %v7670_v62, %v7670_v62 }
 0x2f8   : > { %v5478_v55 = vadd.f32 %v7669_v21, %v5477_v59  ;;  %v5603_v44 = vadd.f32 %v5602_v58, %v5544_v49  ;;  %5931 = vst [vmem:[%s9467_s8 + $0xa0] sm:$0xf] %v6507_v42 }
 0x2f9   : > { %6583 = vst [vmem:[%s9467_s8 + $0xa8] sm:$0xff] %v6565_v37   ;;  %v5420_v24 = vsel %vm5378_vm2, %v7671_v34, 0.0  ;;  %v7298_v51 = vpop.f32.mrb[48].mxu1 }
 0x2fa   : > { %v5604_v11 = vadd.f32 %v5603_v44, %v5545_v6  ;;  %v5479_v29 = vadd.f32 %v5478_v55, %v5420_v24  ;;  %v5546_v28 = vmul.f32 %v5420_v24, %v5420_v24  ;;  %v6508_v40 = vpack.c.bf16 %v5420_v24, %v5420_v24  ;;  %v7598_v4 = vpop.f32.mrb[44].mxu0  ;;  %v2930_v15 = vpop.f32.mrb[49].mxu1 }
 0x2fb   : > { %v7672_v8 = vadd.f32 %v7598_v4, %v7294_v9  ;;  %v5249_v30 = vpop.f32.mrb[45].mxu0  ;;  %v7299_v0 = vpop.f32.mrb[50].mxu1 }
 0x2fc   : > { %v5480_v50 = vadd.f32 %v7668_v33, %v5479_v29  ;;  %v5605_v19 = vadd.f32 %v5604_v11, %v5546_v28  ;;  %5932 = vst [vmem:[%s9467_s8 + $0xa4] sm:$0x3] %v6508_v40  ;;  %v7673_v10 = vadd.f32 %v5249_v30, %v2914_v18  ;;  %v7599_v27 = vpop.f32.mrb[46].mxu0  ;;  %v2933_v38 = vpop.f32.mrb[51].mxu1 }
 0x2fd   : > { %v6513_v56 = vpack.c.bf16 %v7672_v8, %v7672_v8  ;;  %v7674_v57 = vadd.f32 %v7599_v27, %v7295_v25  ;;  %v5252_v7 = vpop.f32.mrb[47].mxu0  ;;  %v5551_v46 = vmul.f32 %v7672_v8, %v7672_v8 }
 0x2fe   : > { %v5606_v41 = vadd.f32 %v5605_v19, %v5547_v1  ;;  %v5423_v47 = vsel %vm5378_vm2, %v7673_v10, 0.0  ;;  %v5481_v39 = vadd.f32 %v7670_v62, %v5480_v50  ;;  %v7675_v22 = vadd.f32 %v5252_v7, %v2917_v5 }
 0x2ff   : > { %5937 = vst [vmem:[%s9467_s8 + $0xb8] sm:$0xf] %v6513_v56  ;;  %v5549_v23 = vmul.f32 %v5423_v47, %v5423_v47  ;;  %v6511_v63 = vpack.c.bf16 %v5423_v47, %v5423_v47  ;;  %v5426_v13 = vsel %vm5378_vm2, %v7674_v57, 0.0 }
 0x300   : > { %v5482_v3 = vadd.f32 %v5481_v39, %v5423_v47  ;;  %v5607_v52 = vadd.f32 %v5606_v41, %v5548_v17  ;;  %v6514_v36 = vpack.c.bf16 %v5426_v13, %v5426_v13  ;;  %v5550_v12 = vmul.f32 %v7675_v22, %v7675_v22 }
 0x301   : > { %5935 = vst [vmem:[%s9467_s8 + $0xb0] sm:$0x3] %v6511_v63  ;;  %v6512_v14 = vpack.c.bf16 %v7675_v22, %v7675_v22  ;;  %v7302_v60 = vpop.f32.mrb[52].mxu1  ;;  %v5552_v20 = vmul.f32 %v5426_v13, %v5426_v13 }
 0x302   : > { %v5608_v35 = vadd.f32 %v5607_v52, %v5549_v23  ;;  %5938 = vst [vmem:[%s9467_s8 + $0xbc] sm:$0x3] %v6514_v36  ;;  %v5483_v54 = vadd.f32 %v7675_v22, %v5482_v3  ;;  %v7602_v48 = vpop.f32.mrb[48].mxu0  ;;  %v2946_v16 = vpop.f32.mrb[53].mxu1 }
 0x303   : > { %5936 = vst [vmem:[%s9467_s8 + $0xb4] sm:$0xf] %v6512_v14  ;;  %v7676_v9 = vadd.f32 %v7602_v48, %v7298_v51  ;;  %v5265_v45 = vpop.f32.mrb[49].mxu0  ;;  %v7303_v26 = vpop.f32.mrb[54].mxu1 }
 0x304   : > { %v5484_v18 = vadd.f32 %v7672_v8, %v5483_v54  ;;  %v5609_v33 = vadd.f32 %v5608_v35, %v5550_v12  ;;  %v7677_v53 = vadd.f32 %v5265_v45, %v2930_v15  ;;  %v7603_v25 = vpop.f32.mrb[50].mxu0  ;;  %v2949_v43 = vpop.f32.mrb[55].mxu1 }
 0x305   : > { %v5429_v32 = vsel %vm5378_vm2, %v7676_v9, 0.0  ;;  %v7678_v2 = vadd.f32 %v7603_v25, %v7299_v0  ;;  %v5268_v21 = vpop.f32.mrb[51].mxu0 }
 0x306   : > { %v5610_v5 = vadd.f32 %v5609_v33, %v5551_v46  ;;  %v6517_v49 = vpack.c.bf16 %v5429_v32, %v5429_v32  ;;  %v5485_v62 = vadd.f32 %v5484_v18, %v5426_v13  ;;  %v5553_v61 = vmul.f32 %v7677_v53, %v7677_v53 }
 0x307   : > { %v6518_v58 = vpack.c.bf16 %v7678_v2, %v7678_v2  ;;  %v7679_v59 = vadd.f32 %v5268_v21, %v2933_v38  ;;  %v5555_v4 = vmul.f32 %v5429_v32, %v5429_v32  ;;  %v5556_v50 = vmul.f32 %v7678_v2, %v7678_v2 }
 0x308   : > { %5941 = vst [vmem:[%s9467_s8 + $0xc8] sm:$0x3] %v6517_v49  ;;  %v5486_v6 = vadd.f32 %v7677_v53, %v5485_v62  ;;  %v5611_v42 = vadd.f32 %v5610_v5, %v5552_v20 }
 0x309   : > { %5942 = vst [vmem:[%s9467_s8 + $0xcc] sm:$0xf] %v6518_v58  ;;  %v5554_v37 = vmul.f32 %v7679_v59, %v7679_v59  ;;  %v6570_v34 = vpack.c.bf16 %v7679_v59, %v7677_v53  ;;  %v7306_v55 = vpop.f32.mrb[56].mxu1 }
 0x30a   : > { %v5612_v44 = vadd.f32 %v5611_v42, %v5553_v61  ;;  %v5487_v24 = vadd.f32 %v7679_v59, %v5486_v6  ;;  %v7606_v51 = vpop.f32.mrb[52].mxu0  ;;  %v2962_v11 = vpop.f32.mrb[57].mxu1 }
 0x30b   : > { %6584 = vst [vmem:[%s9467_s8 + $0xc0] sm:$0xff] %v6570_v34   ;;  %v7680_v29 = vadd.f32 %v7606_v51, %v7302_v60  ;;  %v5281_v28 = vpop.f32.mrb[53].mxu0  ;;  %v7307_v40 = vpop.f32.mrb[58].mxu1 }
 0x30c   : > { %v5488_v15 = vadd.f32 %v5487_v24, %v5429_v32  ;;  %v5613_v8 = vadd.f32 %v5612_v44, %v5554_v37  ;;  %v7681_v30 = vadd.f32 %v5281_v28, %v2946_v16  ;;  %v7607_v0 = vpop.f32.mrb[54].mxu0  ;;  %v2965_v1 = vpop.f32.mrb[59].mxu1 }
 0x30d   : > { %v7682_v19 = vadd.f32 %v7607_v0, %v7303_v26  ;;  %v5284_v10 = vpop.f32.mrb[55].mxu0  ;;  %v5559_v12 = vmul.f32 %v7680_v29, %v7680_v29 }
 0x30e   : > { %v5614_v27 = vadd.f32 %v5613_v8, %v5555_v4  ;;  %v5489_v38 = vadd.f32 %v7678_v2, %v5488_v15  ;;  %v5557_v17 = vmul.f32 %v7681_v30, %v7681_v30  ;;  %v6519_v56 = vpack.c.bf16 %v7681_v30, %v7681_v30 }
 0x30f   : > { %v6575_v57 = vpack.c.bf16 %v7682_v19, %v7680_v29  ;;  %v7683_v7 = vadd.f32 %v5284_v10, %v2949_v43  ;;  %v5560_v48 = vmul.f32 %v7682_v19, %v7682_v19 }
 0x310   : > { %v5490_v41 = vadd.f32 %v7681_v30, %v5489_v38  ;;  %v5615_v47 = vadd.f32 %v5614_v27, %v5556_v50  ;;  %5943 = vst [vmem:[%s9467_s8 + $0xd0] sm:$0xf] %v6519_v56 }
 0x311   : > { %6585 = vst [vmem:[%s9467_s8 + $0xd8] sm:$0xff] %v6575_v57   ;;  %v5432_v39 = vsel %vm5378_vm2, %v7683_v7, 0.0 }
 0x312   : > { %v5616_v22 = vadd.f32 %v5615_v47, %v5557_v17  ;;  %v5491_v23 = vadd.f32 %v5490_v41, %v5432_v39  ;;  %v5558_v63 = vmul.f32 %v5432_v39, %v5432_v39  ;;  %v6520_v13 = vpack.c.bf16 %v5432_v39, %v5432_v39  ;;  %v7610_v3 = vpop.f32.mrb[56].mxu0 }
 0x313   : > { %v7684_v52 = vadd.f32 %v7610_v3, %v7306_v55  ;;  %v5297_v36 = vpop.f32.mrb[57].mxu0 }
 0x314   : > { %v5492_v14 = vadd.f32 %v7680_v29, %v5491_v23  ;;  %v5617_v60 = vadd.f32 %v5616_v22, %v5558_v63  ;;  %5944 = vst [vmem:[%s9467_s8 + $0xd4] sm:$0x3] %v6520_v13  ;;  %v7685_v35 = vadd.f32 %v5297_v36, %v2962_v11  ;;  %v7611_v54 = vpop.f32.mrb[58].mxu0 }
 0x315   : > { %v6525_v16 = vpack.c.bf16 %v7684_v52, %v7684_v52  ;;  %v7686_v9 = vadd.f32 %v7611_v54, %v7307_v40  ;;  %v5300_v45 = vpop.f32.mrb[59].mxu0  ;;  %v5563_v61 = vmul.f32 %v7684_v52, %v7684_v52 }
 0x316   : > { %v5618_v26 = vadd.f32 %v5617_v60, %v5559_v12  ;;  %v5435_v46 = vsel %vm5378_vm2, %v7685_v35, 0.0  ;;  %v5493_v18 = vadd.f32 %v7682_v19, %v5492_v14  ;;  %v7687_v33 = vadd.f32 %v5300_v45, %v2965_v1 }
 0x317   : > { %5949 = vst [vmem:[%s9467_s8 + $0xe8] sm:$0xf] %v6525_v16  ;;  %v5561_v53 = vmul.f32 %v5435_v46, %v5435_v46  ;;  %v6523_v25 = vpack.c.bf16 %v5435_v46, %v5435_v46  ;;  %v5438_v43 = vsel %vm5378_vm2, %v7686_v9, 0.0 }
 0x318   : > { %v5494_v32 = vadd.f32 %v5493_v18, %v5435_v46  ;;  %v5619_v2 = vadd.f32 %v5618_v26, %v5560_v48  ;;  %v6526_v21 = vpack.c.bf16 %v5438_v43, %v5438_v43  ;;  %v5562_v20 = vmul.f32 %v7687_v33, %v7687_v33 }
 0x319   : > { %5947 = vst [vmem:[%s9467_s8 + $0xe0] sm:$0x3] %v6523_v25  ;;  %v6524_v5 = vpack.c.bf16 %v7687_v33, %v7687_v33  ;;  %v5564_v6 = vmul.f32 %v5438_v43, %v5438_v43 }
 0x31a   : > { %v5620_v49 = vadd.f32 %v5619_v2, %v5561_v53  ;;  %5950 = vst [vmem:[%s9467_s8 + $0xec] sm:$0x3] %v6526_v21  ;;  %v5495_v62 = vadd.f32 %v7687_v33, %v5494_v32 }
 0x31b   : > { %5948 = vst [vmem:[%s9467_s8 + $0xe4] sm:$0xf] %v6524_v5 }
 0x31c   : > { %v5496_v58 = vadd.f32 %v7684_v52, %v5495_v62  ;;  %v5621_v59 = vadd.f32 %v5620_v49, %v5562_v20 }
 0x31e   : > { %v5497_v42 = vadd.f32 %v5496_v58, %v5438_v43  ;;  %v5622_v37 = vadd.f32 %v5621_v59, %v5563_v61 }
 0x320   : > { %v5498_v34 = vrot.slane %v5497_v42, 4  ;;  %v5623_v31 = vadd.f32 %v5622_v37, %v5564_v6 }
 0x322   : > { %v5499_v55 = vadd.f32 %v5498_v34, %v5497_v42  ;;  %v5624_v44 = vrot.slane %v5623_v31, 4 }
 0x324   : > { %v5500_v24 = vrot.slane %v5499_v55, 2  ;;  %v5625_v51 = vadd.f32 %v5624_v44, %v5623_v31 }
 0x326   : > { %v5501_v11 = vadd.f32 %v5500_v24, %v5499_v55  ;;  %v5626_v29 = vrot.slane %v5625_v51, 2 }
 0x328   : > { %v5502_v28 = vrot.slane %v5501_v11, 1  ;;  %v5627_v40 = vadd.f32 %v5626_v29, %v5625_v51 }
 0x32a   : > { %v5503_v4 = vadd.f32 %v5502_v28, %v5501_v11  ;;  %v5628_v15 = vrot.slane %v5627_v40, 1 }
 0x32c   : > { %5504 = vst [vmem:[%s181_s15] sm:$0x1] %v5503_v4  ;;  %v5629_v8 = vadd.f32 %v5628_v15, %v5627_v40 }
 0x32e   : > { %5630 = vst [vmem:[%s181_s15 + $0x1] sm:$0x1] %v5629_v8 }
 0x32f PF: > { %s14_s12 = sadd.s32 1, %s8407_s12  }
 0x330   : > { %p11_p4 = scmp.ge.s32.totalorder %s14_s12, 4  }
 0x332   :  { %13 = sbr.rel (!%p11_p4) target bundleno = 1 (0x1), region = 78 }

</bundles_post_ra>
